<compile_context>
chip_gen: v7x
topology: tpu7x:2x2x1
jax: 0.10.0
libtpu: 0.0.40
codegen_flags: <defaults>
</compile_context>

<pallas_src>
import functools

import jax
import jax.numpy as jnp
import numpy as np
from jax.experimental import pallas as pl
from jax.experimental.pallas import tpu as pltpu


def _bilinear_matrix(l_in: int, scale: int = 2) -> np.ndarray:
    """1-D interpolation matrix for nn.Upsample(scale_factor=2, mode='bilinear',
    align_corners=False): out = U @ in along one spatial axis."""
    l_out = l_in * scale
    U = np.zeros((l_out, l_in), dtype=np.float32)
    for o in range(l_out):
        src = (o + 0.5) / scale - 0.5
        src = max(src, 0.0)              # PyTorch clamps negative source coords
        i0 = min(int(np.floor(src)), l_in - 1)
        i1 = min(i0 + 1, l_in - 1)
        w1 = src - i0
        U[o, i0] += 1.0 - w1
        U[o, i1] += w1
    return U


def _upconv_stats_kernel(x_ref, uwt_ref, w_ref, y_ref, stats_ref, stats_acc_ref, *,
                         H, W, Wo, Cin_p, Cout, tile_ih, tile_oh):
    """Per (image, output-row tile): bilinear x2 upsample -> 3x3 conv (im2col bf16
    matmul) -> lane-dense channel-major pre-BN block + streamed BN statistics."""
    t = pl.program_id(1)
    n_t = pl.num_programs(1)

    # ---- this tile's input rows plus one halo row on each side (clamped) -----
    i0 = pl.multiple_of(t * tile_ih, tile_ih)
    prev_i = jnp.maximum(i0 - 1, 0)                  # clamp == edge replication
    next_i = jnp.minimum(i0 + tile_ih, H - 1)
    top = x_ref[pl.ds(prev_i, 1), :, :]              # [1, Cin_p, W]
    mid = x_ref[pl.ds(i0, tile_ih), :, :]            # [tile_ih, Cin_p, W]
    bot = x_ref[pl.ds(next_i, 1), :, :]              # [1, Cin_p, W]
    xh = jnp.concatenate([top, mid, bot], axis=0)    # [R, Cin_p, W]
    R = tile_ih + 2

    # ---- W-axis x2 upsample: one un-batched fp32 matmul against [W, Wo] ------
    xw = jnp.dot(xh.reshape(R * Cin_p, W), uwt_ref[...],
                 preferred_element_type=jnp.float32)           # [R*Cin_p, Wo]
    xw = xw.reshape(R, Cin_p, Wo)

    # ---- H-axis x2 upsample: 0.75/0.25 two-tap shifts + leading interleave ---
    prev = jnp.concatenate([xw[:1], xw[:R - 1]], axis=0)
    nxt = jnp.concatenate([xw[1:], xw[R - 1:]], axis=0)
    even = 0.75 * xw + 0.25 * prev                   # output rows 2i
    odd = 0.75 * xw + 0.25 * nxt                     # output rows 2i+1
    up = jnp.concatenate([even[:, None], odd[:, None]], axis=1)  # [R, 2, Cin_p, Wo]
    up = up.reshape(2 * R, Cin_p, Wo)
    # keep output rows r0-1 .. r0+tile_oh (tile plus 3x3-conv halo)
    up = up[1:2 * R - 1]                             # [tile_oh+2, Cin_p, Wo]
    rows = tile_oh + 2

    # ---- 3x3-conv zero padding at the global top/bottom boundary -------------
    ridx = jax.lax.broadcasted_iota(jnp.int32, (rows, 1, 1), 0)
    kill = jnp.logical_or(jnp.logical_and(t == 0, ridx == 0),
                          jnp.logical_and(t == n_t - 1, ridx == rows - 1))
    up = jnp.where(kill, 0.0, up)

    # ---- relayout once before the matmul: channels onto the lane axis --------
    up = jnp.transpose(up, (0, 2, 1))                # [rows, Wo, Cin_p]

    # ---- zero padding along W, im2col, bf16 MXU matmul ------------------------
    zc = jnp.zeros((rows, 1, Cin_p), jnp.float32)
    padded = jnp.concatenate([zc, up, zc], axis=1)   # [rows, Wo+2, Cin_p]
    taps = [padded[kh:kh + tile_oh, kw:kw + Wo, :]
            for kh in range(3) for kw in range(3)]
    patches = jnp.concatenate(taps, axis=2)          # [tile_oh, Wo, 9*Cin_p]
    patches = patches.reshape(tile_oh * Wo, 9 * Cin_p).astype(jnp.bfloat16)
    acc = jnp.dot(patches, w_ref[...],
                  preferred_element_type=jnp.float32)          # [P_tile, Cout] f32

    # ---- streamed BN statistics: accumulate per image, write once per image --
    @pl.when(t == 0)
    def _():
        stats_acc_ref[...] = jnp.zeros_like(stats_acc_ref)

    s = jnp.sum(acc, axis=0, keepdims=True)          # [1, Cout]
    ss = jnp.sum(acc * acc, axis=0, keepdims=True)   # [1, Cout]
    stats_acc_ref[...] += jnp.concatenate([s, ss], axis=0)     # [2, Cout]

    @pl.when(t == n_t - 1)
    def _():
        stats_ref[...] = stats_acc_ref[...]

    # ---- lane-dense, channel-major pre-BN block (bf16) ------------------------
    y_ref[...] = jnp.transpose(acc).astype(jnp.bfloat16)       # [Cout, P_tile]


def _bn_relu_kernel(y_ref, scale_ref, shift_ref, o_ref):
    """Per (image, spatial chunk): y * scale + shift then ReLU (BN affine folded)."""
    o_ref[...] = jnp.maximum(
        y_ref[...].astype(jnp.float32) * scale_ref[...] + shift_ref[...], 0.0)


def _vmem_budget_bytes():
    """Per-generation VMEM budget (leave headroom for double-buffered blocks)."""
    try:
        cap = int(pltpu.get_tpu_info().vmem_capacity_bytes)
    except Exception:
        cap = 64 * 1024 * 1024          # conservative default (v7x per-TC VMEM)
    return int(min(cap * 0.6, 96 * 1024 * 1024))


def _pick_tile_oh(H, Ho, Wo, Cin_p, Cout, budget_bytes):
    """Largest output-row tile whose working set fits comfortably, with lane-aligned
    stores ((tile*Wo) % 128 == 0) unless the tile is the whole image."""
    per_row = Wo * (9 * Cin_p * 6      # im2col taps (f32) + bf16 patches
                    + Cin_p * 24       # upsample intermediates (f32)
                    + Cout * 4         # f32 accumulator
                    + Cout * 4)        # bf16 y block, double buffered
    valid = [d for d in range(2, Ho + 1, 2)
             if Ho % d == 0 and H % (d // 2) == 0
             and ((d * Wo) % 128 == 0 or d == Ho)]
    if not valid:
        return Ho
    fitting = [d for d in valid if d * per_row <= budget_bytes // 3]
    return max(fitting) if fitting else min(valid)


def bilinear_block_forward(x_nchw, conv_w, gamma, beta, eps=1e-5, tile_oh=None):
    """conv_w has shape [3, 3, Cin, Cout] (HWIO). Input and output are NCHW f32."""
    N, Cin, H, W = x_nchw.shape
    Cout = conv_w.shape[-1]
    Ho, Wo = 2 * H, 2 * W
    P = Ho * Wo
    assert W % 4 == 0, "W must be a multiple of 4 (so Wo is a sublane multiple)"

    budget = _vmem_budget_bytes()

    # pad input channels to a sublane multiple (zero channels are a conv no-op)
    Cin_p = max(8, ((Cin + 7) // 8) * 8)
    x_p = jnp.pad(x_nchw.astype(jnp.float32),
                  ((0, 0), (0, Cin_p - Cin), (0, 0), (0, 0)))
    x_k = jnp.transpose(x_p, (0, 2, 1, 3))                      # [N, H, Cin_p, W]

    w_p = jnp.pad(conv_w.astype(jnp.float32),
                  ((0, 0), (0, 0), (0, Cin_p - Cin), (0, 0)))   # [3,3,Cin_p,Cout]
    w_mat = w_p.reshape(9 * Cin_p, Cout).astype(jnp.bfloat16)   # bf16 MXU operand

    uwt = jnp.asarray(_bilinear_matrix(W)).T                    # [W, Wo], passed once

    if tile_oh is None:
        tile_oh = _pick_tile_oh(H, Ho, Wo, Cin_p, Cout, budget)
    assert Ho % tile_oh == 0 and tile_oh % 2 == 0 and H % (tile_oh // 2) == 0
    assert (tile_oh * Wo) % 128 == 0 or tile_oh == Ho
    tile_ih = tile_oh // 2
    n_tiles = Ho // tile_oh

    kernel1 = functools.partial(
        _upconv_stats_kernel, H=H, W=W, Wo=Wo, Cin_p=Cin_p, Cout=Cout,
        tile_ih=tile_ih, tile_oh=tile_oh)

    y, stats = pl.pallas_call(
        kernel1,
        out_shape=(jax.ShapeDtypeStruct((N, Cout, P), jnp.bfloat16),
                   jax.ShapeDtypeStruct((N, 2, Cout), jnp.float32)),
        grid=(N, n_tiles),
        in_specs=[
            pl.BlockSpec((None, H, Cin_p, W), lambda n, t: (n, 0, 0, 0)),
            pl.BlockSpec((W, Wo), lambda n, t: (0, 0)),
            pl.BlockSpec((9 * Cin_p, Cout), lambda n, t: (0, 0)),
        ],
        out_specs=(
            pl.BlockSpec((None, Cout, tile_oh * Wo), lambda n, t: (n, 0, t)),
            pl.BlockSpec((None, 2, Cout), lambda n, t: (n, 0, 0)),
        ),
        scratch_shapes=[pltpu.VMEM((2, Cout), jnp.float32)],
        compiler_params=pltpu.CompilerParams(
            dimension_semantics=("parallel", "arbitrary"),
            vmem_limit_bytes=budget),
    )(x_k, uwt, w_mat)

    # ---- Chan/Welford-style cross-image combine of per-image BN statistics ----
    cnt_i = float(P)                                   # per-image, per-channel count
    sums = stats[:, 0, :]                              # [N, Cout]
    sqs = stats[:, 1, :]                               # [N, Cout]
    mean_i = sums / cnt_i
    m2_i = jnp.maximum(sqs - sums * mean_i, 0.0)       # per-image centered SS
    mean = jnp.mean(mean_i, axis=0)                    # equal counts per image
    m2 = jnp.sum(m2_i, axis=0) + cnt_i * jnp.sum((mean_i - mean[None, :]) ** 2, axis=0)
    var = m2 / (N * cnt_i)                             # biased var (BN training mode)
    scale = gamma.astype(jnp.float32) * jax.lax.rsqrt(var + eps)
    shift = beta.astype(jnp.float32) - mean * scale

    # ---- kernel 2: BN affine + ReLU (reads bf16, writes f32, lane-dense) ------
    chunk = P
    while (Cout * chunk * 12 > budget // 4) and chunk % 256 == 0:
        chunk //= 2

    out = pl.pallas_call(
        _bn_relu_kernel,
        out_shape=jax.ShapeDtypeStruct((N, Cout, P), jnp.float32),
        grid=(N, P // chunk),
        in_specs=[
            pl.BlockSpec((None, Cout, chunk), lambda n, c: (n, 0, c)),
            pl.BlockSpec((Cout, 1), lambda n, c: (0, 0)),
            pl.BlockSpec((Cout, 1), lambda n, c: (0, 0)),
        ],
        out_specs=pl.BlockSpec((None, Cout, chunk), lambda n, c: (n, 0, c)),
        compiler_params=pltpu.CompilerParams(
            dimension_semantics=("parallel", "parallel"),
            vmem_limit_bytes=budget),
    )(y, scale.reshape(Cout, 1), shift.reshape(Cout, 1))

    return out.reshape(N, Cout, Ho, Wo)                # NCHW, no transpose needed


def reference_forward(x_nchw, conv_w, gamma, beta, eps=1e-5,
                      match_kernel_precision=False):
    """Pure-JAX reference (NCHW). With match_kernel_precision=True the conv operands
    and the stored pre-BN activations are rounded to bf16 the way the kernel does,
    isolating structural bugs from the intentional bf16 precision loss."""
    N, Cin, H, W = x_nchw.shape
    Cout = conv_w.shape[-1]
    hi = jax.lax.Precision.HIGHEST
    Uh = jnp.asarray(_bilinear_matrix(H))
    Uw = jnp.asarray(_bilinear_matrix(W))
    up = jnp.einsum('oh,nchw->ncow', Uh, x_nchw.astype(jnp.float32), precision=hi)
    up = jnp.einsum('pw,ncow->ncop', Uw, up, precision=hi)       # [N, Cin, 2H, 2W]
    w_oihw = jnp.transpose(conv_w.astype(jnp.float32), (3, 2, 0, 1))
    if match_kernel_precision:
        up = up.astype(jnp.bfloat16).astype(jnp.float32)
        w_oihw = w_oihw.astype(jnp.bfloat16).astype(jnp.float32)
    y = jax.lax.conv_general_dilated(
        up, w_oihw, window_strides=(1, 1), padding=((1, 1), (1, 1)),
        dimension_numbers=('NCHW', 'OIHW', 'NCHW'), precision=hi)
    mean = jnp.mean(y, axis=(0, 2, 3), keepdims=True)
    var = jnp.mean((y - mean) ** 2, axis=(0, 2, 3), keepdims=True)
    scale = gamma.reshape(1, Cout, 1, 1) * jax.lax.rsqrt(var + eps)
    shift = beta.reshape(1, Cout, 1, 1) - mean * scale
    if match_kernel_precision:
        y = y.astype(jnp.bfloat16).astype(jnp.float32)
    return jnp.maximum(y * scale + shift, 0.0)


if __name__ == "__main__":
    key = jax.random.PRNGKey(0)
    kx, kw, kg, kb = jax.random.split(key, 4)

    N, Cin, H, W = 2, 4, 16, 16     # x2 upsample -> 32x32 spatial
    Cout = 8

    x = jax.random.normal(kx, (N, Cin, H, W), jnp.float32)
    conv_w = jax.random.normal(kw, (3, 3, Cin, Cout), jnp.float32) / np.sqrt(9 * Cin)
    gamma = 1.0 + 0.1 * jax.random.normal(kg, (Cout,), jnp.float32)
    beta = 0.1 * jax.random.normal(kb, (Cout,), jnp.float32)

    # tile_oh=16 -> 2 spatial tiles per image: exercises the halo / streamed-stats path.
    fwd = jax.jit(functools.partial(bilinear_block_forward, tile_oh=16))
    out = jax.block_until_ready(fwd(x, conv_w, gamma, beta))

    # Tight check vs. a precision-matched reference (same bf16 rounding points).
    ref_m = reference_forward(x, conv_w, gamma, beta, match_kernel_precision=True)
    err_m = float(jnp.max(jnp.abs(out - ref_m)))
    # Looser check vs. the full-fp32 reference (bound reflects intentional bf16 use).
    ref_f = reference_forward(x, conv_w, gamma, beta)
    err_f = float(jnp.max(jnp.abs(out - ref_f)))
    err_f_mean = float(jnp.mean(jnp.abs(out - ref_f)))

    if err_m > 2e-2 or err_f > 5e-2 or err_f_mean > 1e-2:
        raise AssertionError(
            f"mismatch vs reference: max(bf16-matched)={err_m:.2e} "
            f"max(fp32)={err_f:.2e} mean(fp32)={err_f_mean:.2e}")

    print("KERNEL_OK")
</pallas_src>

<mosaic_0001>
module attributes {stable_mosaic.version = 11 : i64} {
  func.func @_upconv_stats_kernel(%arg0: i32, %arg1: i32, %arg2: memref<1x16x8x16xf32, #tpu.memory_space<vmem>>, %arg3: memref<16x32xf32, #tpu.memory_space<vmem>>, %arg4: memref<72x8xbf16, #tpu.memory_space<vmem>>, %arg5: memref<1x8x512xbf16, #tpu.memory_space<vmem>>, %arg6: memref<1x2x8xf32, #tpu.memory_space<vmem>>, %arg7: memref<2x8xf32, #tpu.memory_space<vmem>>) attributes {dimension_semantics = [#tpu.dimension_semantics<parallel>, #tpu.dimension_semantics<arbitrary>], iteration_bounds = array<i64: 2, 2>, scalar_prefetch = 0 : i64, scratch_operands = 1 : i64, tpu.core_type = #tpu.core_type<tc>, window_params = [{transform_indices = @transform_0, window_bounds = array<i64: 1, 16, 8, 16>}, {pipeline_mode = #tpu.pipeline_mode<synchronous>, transform_indices = @transform_1, window_bounds = array<i64: 16, 32>}, {pipeline_mode = #tpu.pipeline_mode<synchronous>, transform_indices = @transform_2, window_bounds = array<i64: 72, 8>}, {transform_indices = @transform_3, window_bounds = array<i64: 1, 8, 512>}, {transform_indices = @transform_4, window_bounds = array<i64: 1, 2, 8>}]} {
    %c8_i32 = arith.constant 8 : i32
    %0 = arith.muli %arg1, %c8_i32 : i32
    %1 = tpu.assume_multiple %0, 8 : i32
    %c1_i32 = arith.constant 1 : i32
    %2 = arith.subi %1, %c1_i32 : i32
    %c0_i32 = arith.constant 0 : i32
    %3 = arith.maxsi %2, %c0_i32 : i32
    %c8_i32_0 = arith.constant 8 : i32
    %4 = arith.addi %1, %c8_i32_0 : i32
    %c15_i32 = arith.constant 15 : i32
    %5 = arith.minsi %4, %c15_i32 : i32
    %c0 = arith.constant 0 : index
    %6 = arith.index_cast %3 : i32 to index
    %c0_1 = arith.constant 0 : index
    %c0_2 = arith.constant 0 : index
    %7 = vector.load %arg2[%c0, %6, %c0_1, %c0_2] : memref<1x16x8x16xf32, #tpu.memory_space<vmem>>, vector<1x1x8x16xf32>
    %8 = vector.shape_cast %7 : vector<1x1x8x16xf32> to vector<1x8x16xf32>
    %c0_3 = arith.constant 0 : index
    %9 = arith.index_cast %1 : i32 to index
    %c0_4 = arith.constant 0 : index
    %c0_5 = arith.constant 0 : index
    %10 = vector.load %arg2[%c0_3, %9, %c0_4, %c0_5] : memref<1x16x8x16xf32, #tpu.memory_space<vmem>>, vector<1x8x8x16xf32>
    %11 = vector.shape_cast %10 : vector<1x8x8x16xf32> to vector<8x8x16xf32>
    %c0_6 = arith.constant 0 : index
    %12 = arith.index_cast %5 : i32 to index
    %c0_7 = arith.constant 0 : index
    %c0_8 = arith.constant 0 : index
    %13 = vector.load %arg2[%c0_6, %12, %c0_7, %c0_8] : memref<1x16x8x16xf32, #tpu.memory_space<vmem>>, vector<1x1x8x16xf32>
    %14 = vector.shape_cast %13 : vector<1x1x8x16xf32> to vector<1x8x16xf32>
    %15 = tpu.concatenate %8, %11, %14 in 0 : vector<1x8x16xf32>, vector<8x8x16xf32>, vector<1x8x16xf32> -> vector<10x8x16xf32>
    %16 = vector.shape_cast %15 : vector<10x8x16xf32> to vector<80x16xf32>
    %c0_9 = arith.constant 0 : index
    %c0_10 = arith.constant 0 : index
    %17 = vector.load %arg3[%c0_9, %c0_10] : memref<16x32xf32, #tpu.memory_space<vmem>>, vector<16x32xf32>
    %cst = arith.constant dense<0.000000e+00> : vector<80x32xf32>
    %18 = tpu.matmul %16, %17, %cst {dimension_numbers = #tpu.dot_dimension_numbers<[1], [0], [0], [1], [0, 0, 1, 1], [], []>} : vector<80x16xf32>, vector<16x32xf32>, vector<80x32xf32> -> vector<80x32xf32>
    %19 = vector.shape_cast %18 : vector<80x32xf32> to vector<10x8x32xf32>
    %20 = vector.extract_strided_slice %19 {offsets = [0, 0, 0], sizes = [1, 8, 32], strides = [1, 1, 1]} : vector<10x8x32xf32> to vector<1x8x32xf32>
    %21 = vector.extract_strided_slice %19 {offsets = [0, 0, 0], sizes = [9, 8, 32], strides = [1, 1, 1]} : vector<10x8x32xf32> to vector<9x8x32xf32>
    %22 = tpu.concatenate %20, %21 in 0 : vector<1x8x32xf32>, vector<9x8x32xf32> -> vector<10x8x32xf32>
    %23 = vector.extract_strided_slice %19 {offsets = [1, 0, 0], sizes = [9, 8, 32], strides = [1, 1, 1]} : vector<10x8x32xf32> to vector<9x8x32xf32>
    %24 = vector.extract_strided_slice %19 {offsets = [9, 0, 0], sizes = [1, 8, 32], strides = [1, 1, 1]} : vector<10x8x32xf32> to vector<1x8x32xf32>
    %25 = tpu.concatenate %23, %24 in 0 : vector<9x8x32xf32>, vector<1x8x32xf32> -> vector<10x8x32xf32>
    %cst_11 = arith.constant 7.500000e-01 : f32
    %26 = vector.broadcast %cst_11 : f32 to vector<10x8x32xf32>
    %27 = arith.mulf %26, %19 : vector<10x8x32xf32>
    %cst_12 = arith.constant 2.500000e-01 : f32
    %28 = vector.broadcast %cst_12 : f32 to vector<10x8x32xf32>
    %29 = arith.mulf %28, %22 : vector<10x8x32xf32>
    %30 = arith.addf %27, %29 : vector<10x8x32xf32>
    %cst_13 = arith.constant 7.500000e-01 : f32
    %31 = vector.broadcast %cst_13 : f32 to vector<10x8x32xf32>
    %32 = arith.mulf %31, %19 : vector<10x8x32xf32>
    %cst_14 = arith.constant 2.500000e-01 : f32
    %33 = vector.broadcast %cst_14 : f32 to vector<10x8x32xf32>
    %34 = arith.mulf %33, %25 : vector<10x8x32xf32>
    %35 = arith.addf %32, %34 : vector<10x8x32xf32>
    %36 = vector.shape_cast %30 : vector<10x8x32xf32> to vector<10x1x8x32xf32>
    %37 = vector.shape_cast %35 : vector<10x8x32xf32> to vector<10x1x8x32xf32>
    %38 = tpu.concatenate %36, %37 in 1 : vector<10x1x8x32xf32>, vector<10x1x8x32xf32> -> vector<10x2x8x32xf32>
    %39 = vector.shape_cast %38 : vector<10x2x8x32xf32> to vector<20x8x32xf32>
    %40 = vector.extract_strided_slice %39 {offsets = [1, 0, 0], sizes = [18, 8, 32], strides = [1, 1, 1]} : vector<20x8x32xf32> to vector<18x8x32xf32>
    %41 = tpu.iota {dimensions = array<i32: 0>} : vector<18x1x1xi32>
    %c0_i32_15 = arith.constant 0 : i32
    %42 = arith.cmpi eq, %arg1, %c0_i32_15 : i32
    %c0_i32_16 = arith.constant 0 : i32
    %43 = vector.broadcast %c0_i32_16 : i32 to vector<18x1x1xi32>
    %44 = arith.cmpi eq, %41, %43 : vector<18x1x1xi32>
    %45 = vector.broadcast %42 : i1 to vector<18x1x1xi1>
    %46 = arith.andi %45, %44 : vector<18x1x1xi1>
    %c1_i32_17 = arith.constant 1 : i32
    %47 = arith.cmpi eq, %arg1, %c1_i32_17 : i32
    %c17_i32 = arith.constant 17 : i32
    %48 = vector.broadcast %c17_i32 : i32 to vector<18x1x1xi32>
    %49 = arith.cmpi eq, %41, %48 : vector<18x1x1xi32>
    %50 = vector.broadcast %47 : i1 to vector<18x1x1xi1>
    %51 = arith.andi %50, %49 : vector<18x1x1xi1>
    %52 = arith.ori %46, %51 : vector<18x1x1xi1>
    %cst_18 = arith.constant 0.000000e+00 : f32
    %53 = vector.shape_cast %52 : vector<18x1x1xi1> to vector<18x1x1xi1>
    %54 = vector.broadcast %53 : vector<18x1x1xi1> to vector<18x8x32xi1>
    %55 = vector.broadcast %cst_18 : f32 to vector<18x8x32xf32>
    %56 = arith.select %54, %55, %40 : vector<18x8x32xi1>, vector<18x8x32xf32>
    %57 = tpu.transpose %56, [0, 2, 1] : vector<18x8x32xf32> -> vector<18x32x8xf32>
    %cst_19 = arith.constant 0.000000e+00 : f32
    %58 = vector.broadcast %cst_19 : f32 to vector<18x1x8xf32>
    %59 = tpu.concatenate %58, %57, %58 in 1 : vector<18x1x8xf32>, vector<18x32x8xf32>, vector<18x1x8xf32> -> vector<18x34x8xf32>
    %60 = vector.extract_strided_slice %59 {offsets = [0, 0, 0], sizes = [16, 32, 8], strides = [1, 1, 1]} : vector<18x34x8xf32> to vector<16x32x8xf32>
    %61 = vector.extract_strided_slice %59 {offsets = [0, 1, 0], sizes = [16, 32, 8], strides = [1, 1, 1]} : vector<18x34x8xf32> to vector<16x32x8xf32>
    %62 = vector.extract_strided_slice %59 {offsets = [0, 2, 0], sizes = [16, 32, 8], strides = [1, 1, 1]} : vector<18x34x8xf32> to vector<16x32x8xf32>
    %63 = vector.extract_strided_slice %59 {offsets = [1, 0, 0], sizes = [16, 32, 8], strides = [1, 1, 1]} : vector<18x34x8xf32> to vector<16x32x8xf32>
    %64 = vector.extract_strided_slice %59 {offsets = [1, 1, 0], sizes = [16, 32, 8], strides = [1, 1, 1]} : vector<18x34x8xf32> to vector<16x32x8xf32>
    %65 = vector.extract_strided_slice %59 {offsets = [1, 2, 0], sizes = [16, 32, 8], strides = [1, 1, 1]} : vector<18x34x8xf32> to vector<16x32x8xf32>
    %66 = vector.extract_strided_slice %59 {offsets = [2, 0, 0], sizes = [16, 32, 8], strides = [1, 1, 1]} : vector<18x34x8xf32> to vector<16x32x8xf32>
    %67 = vector.extract_strided_slice %59 {offsets = [2, 1, 0], sizes = [16, 32, 8], strides = [1, 1, 1]} : vector<18x34x8xf32> to vector<16x32x8xf32>
    %68 = vector.extract_strided_slice %59 {offsets = [2, 2, 0], sizes = [16, 32, 8], strides = [1, 1, 1]} : vector<18x34x8xf32> to vector<16x32x8xf32>
    %69 = tpu.concatenate %60, %61, %62, %63, %64, %65, %66, %67, %68 in 2 : vector<16x32x8xf32>, vector<16x32x8xf32>, vector<16x32x8xf32>, vector<16x32x8xf32>, vector<16x32x8xf32>, vector<16x32x8xf32>, vector<16x32x8xf32>, vector<16x32x8xf32>, vector<16x32x8xf32> -> vector<16x32x72xf32>
    %70 = vector.shape_cast %69 : vector<16x32x72xf32> to vector<512x72xf32>
    %71 = arith.truncf %70 : vector<512x72xf32> to vector<512x72xbf16>
    %c0_20 = arith.constant 0 : index
    %c0_21 = arith.constant 0 : index
    %72 = vector.load %arg4[%c0_20, %c0_21] : memref<72x8xbf16, #tpu.memory_space<vmem>>, vector<72x8xbf16>
    %cst_22 = arith.constant dense<0.000000e+00> : vector<512x8xf32>
    %73 = tpu.matmul %71, %72, %cst_22 {dimension_numbers = #tpu.dot_dimension_numbers<[1], [0], [0], [1], [0, 0, 1, 1], [], []>} : vector<512x72xbf16>, vector<72x8xbf16>, vector<512x8xf32> -> vector<512x8xf32>
    %c0_i32_23 = arith.constant 0 : i32
    %74 = arith.cmpi eq, %arg1, %c0_i32_23 : i32
    %75 = arith.extui %74 : i1 to i32
    %c0_i32_24 = arith.constant 0 : i32
    %76 = arith.cmpi ne, %75, %c0_i32_24 : i32
    scf.if %76 {
      %cst_36 = arith.constant 0.000000e+00 : f32
      %94 = vector.broadcast %cst_36 : f32 to vector<2x8xf32>
      %c0_37 = arith.constant 0 : index
      %c0_38 = arith.constant 0 : index
      %95 = vector.load %arg7[%c0_37, %c0_38] : memref<2x8xf32, #tpu.memory_space<vmem>>, vector<2x8xf32>
      tpu.vector_store %arg7[%c0_37, %c0_38], %94 {strides = array<i32>} : memref<2x8xf32, #tpu.memory_space<vmem>>, vector<2x8xf32>,
    } else {
    }
    %cst_25 = arith.constant dense<0.000000e+00> : vector<8xf32>
    %77 = vector.multi_reduction <add>, %73, %cst_25 [0] : vector<512x8xf32> to vector<8xf32>
    %78 = vector.shape_cast %77 : vector<8xf32> to vector<1x8xf32>
    %79 = arith.mulf %73, %73 : vector<512x8xf32>
    %cst_26 = arith.constant dense<0.000000e+00> : vector<8xf32>
    %80 = vector.multi_reduction <add>, %79, %cst_26 [0] : vector<512x8xf32> to vector<8xf32>
    %81 = vector.shape_cast %80 : vector<8xf32> to vector<1x8xf32>
    %c0_27 = arith.constant 0 : index
    %c0_28 = arith.constant 0 : index
    %82 = vector.load %arg7[%c0_27, %c0_28] : memref<2x8xf32, #tpu.memory_space<vmem>>, vector<2x8xf32>
    %83 = tpu.concatenate %78, %81 in 0 : vector<1x8xf32>, vector<1x8xf32> -> vector<2x8xf32>
    %84 = arith.addf %82, %83 : vector<2x8xf32>
    %c0_29 = arith.constant 0 : index
    %c0_30 = arith.constant 0 : index
    %85 = vector.load %arg7[%c0_29, %c0_30] : memref<2x8xf32, #tpu.memory_space<vmem>>, vector<2x8xf32>
    tpu.vector_store %arg7[%c0_29, %c0_30], %84 {strides = array<i32>} : memref<2x8xf32, #tpu.memory_space<vmem>>, vector<2x8xf32>,
    %c1_i32_31 = arith.constant 1 : i32
    %86 = arith.cmpi eq, %arg1, %c1_i32_31 : i32
    %87 = arith.extui %86 : i1 to i32
    %c0_i32_32 = arith.constant 0 : i32
    %88 = arith.cmpi ne, %87, %c0_i32_32 : i32
    scf.if %88 {
      %c0_36 = arith.constant 0 : index
      %c0_37 = arith.constant 0 : index
      %94 = vector.load %arg7[%c0_36, %c0_37] : memref<2x8xf32, #tpu.memory_space<vmem>>, vector<2x8xf32>
      %c0_38 = arith.constant 0 : index
      %c0_39 = arith.constant 0 : index
      %c0_40 = arith.constant 0 : index
      %95 = vector.load %arg6[%c0_38, %c0_39, %c0_40] : memref<1x2x8xf32, #tpu.memory_space<vmem>>, vector<1x2x8xf32>
      %96 = vector.shape_cast %95 : vector<1x2x8xf32> to vector<2x8xf32>
      %97 = vector.shape_cast %94 : vector<2x8xf32> to vector<1x2x8xf32>
      tpu.vector_store %arg6[%c0_38, %c0_39, %c0_40], %97 {strides = array<i32>} : memref<1x2x8xf32, #tpu.memory_space<vmem>>, vector<1x2x8xf32>,
    } else {
    }
    %89 = tpu.transpose %73, [1, 0] : vector<512x8xf32> -> vector<8x512xf32>
    %90 = arith.truncf %89 : vector<8x512xf32> to vector<8x512xbf16>
    %c0_33 = arith.constant 0 : index
    %c0_34 = arith.constant 0 : index
    %c0_35 = arith.constant 0 : index
    %91 = vector.load %arg5[%c0_33, %c0_34, %c0_35] : memref<1x8x512xbf16, #tpu.memory_space<vmem>>, vector<1x8x512xbf16>
    %92 = vector.shape_cast %91 : vector<1x8x512xbf16> to vector<8x512xbf16>
    %93 = vector.shape_cast %90 : vector<8x512xbf16> to vector<1x8x512xbf16>
    tpu.vector_store %arg5[%c0_33, %c0_34, %c0_35], %93 {strides = array<i32>} : memref<1x8x512xbf16, #tpu.memory_space<vmem>>, vector<1x8x512xbf16>,
    return
  }
  func.func @transform_0(%arg0: i32, %arg1: i32) -> (i32, i32, i32, i32) {
    %c0_i32 = arith.constant 0 : i32
    %c0_i32_0 = arith.constant 0 : i32
    %c0_i32_1 = arith.constant 0 : i32
    %c0_i32_2 = arith.constant 0 : i32
    return %arg0, %c0_i32, %c0_i32_0, %c0_i32_1 : i32, i32, i32, i32
  }
  func.func @transform_1(%arg0: i32, %arg1: i32) -> (i32, i32) {
    %c0_i32 = arith.constant 0 : i32
    %c0_i32_0 = arith.constant 0 : i32
    %c0_i32_1 = arith.constant 0 : i32
    return %c0_i32, %c0_i32_0 : i32, i32
  }
  func.func @transform_2(%arg0: i32, %arg1: i32) -> (i32, i32) {
    %c0_i32 = arith.constant 0 : i32
    %c0_i32_0 = arith.constant 0 : i32
    %c0_i32_1 = arith.constant 0 : i32
    return %c0_i32, %c0_i32_0 : i32, i32
  }
  func.func @transform_3(%arg0: i32, %arg1: i32) -> (i32, i32, i32) {
    %c0_i32 = arith.constant 0 : i32
    %c0_i32_0 = arith.constant 0 : i32
    return %arg0, %c0_i32, %arg1 : i32, i32, i32
  }
  func.func @transform_4(%arg0: i32, %arg1: i32) -> (i32, i32, i32) {
    %c0_i32 = arith.constant 0 : i32
    %c0_i32_0 = arith.constant 0 : i32
    %c0_i32_1 = arith.constant 0 : i32
    return %arg0, %c0_i32, %c0_i32_0 : i32, i32, i32
  }
}

module attributes {stable_mosaic.version = 11 : i64} {
  func.func @_bn_relu_kernel(%arg0: i32, %arg1: i32, %arg2: memref<1x8x1024xbf16, #tpu.memory_space<vmem>>, %arg3: memref<8x1xf32, #tpu.memory_space<vmem>>, %arg4: memref<8x1xf32, #tpu.memory_space<vmem>>, %arg5: memref<1x8x1024xf32, #tpu.memory_space<vmem>>) attributes {dimension_semantics = [#tpu.dimension_semantics<parallel>, #tpu.dimension_semantics<parallel>], iteration_bounds = array<i64: 2, 1>, scalar_prefetch = 0 : i64, scratch_operands = 0 : i64, tpu.core_type = #tpu.core_type<tc>, window_params = [{transform_indices = @transform_0, window_bounds = array<i64: 1, 8, 1024>}, {pipeline_mode = #tpu.pipeline_mode<synchronous>, transform_indices = @transform_1, window_bounds = array<i64: 8, 1>}, {pipeline_mode = #tpu.pipeline_mode<synchronous>, transform_indices = @transform_2, window_bounds = array<i64: 8, 1>}, {transform_indices = @transform_3, window_bounds = array<i64: 1, 8, 1024>}]} {
    %c0 = arith.constant 0 : index
    %c0_0 = arith.constant 0 : index
    %c0_1 = arith.constant 0 : index
    %0 = vector.load %arg2[%c0, %c0_0, %c0_1] : memref<1x8x1024xbf16, #tpu.memory_space<vmem>>, vector<1x8x1024xbf16>
    %1 = vector.shape_cast %0 : vector<1x8x1024xbf16> to vector<8x1024xbf16>
    %2 = arith.extf %1 : vector<8x1024xbf16> to vector<8x1024xf32>
    %c0_2 = arith.constant 0 : index
    %c0_3 = arith.constant 0 : index
    %3 = vector.load %arg3[%c0_2, %c0_3] : memref<8x1xf32, #tpu.memory_space<vmem>>, vector<8x1xf32>
    %4 = vector.broadcast %3 : vector<8x1xf32> to vector<8x1024xf32>
    %5 = arith.mulf %2, %4 : vector<8x1024xf32>
    %c0_4 = arith.constant 0 : index
    %c0_5 = arith.constant 0 : index
    %6 = vector.load %arg4[%c0_4, %c0_5] : memref<8x1xf32, #tpu.memory_space<vmem>>, vector<8x1xf32>
    %7 = vector.broadcast %6 : vector<8x1xf32> to vector<8x1024xf32>
    %8 = arith.addf %5, %7 : vector<8x1024xf32>
    %cst = arith.constant 0.000000e+00 : f32
    %9 = vector.broadcast %cst : f32 to vector<8x1024xf32>
    %10 = arith.maximumf %8, %9 : vector<8x1024xf32>
    %c0_6 = arith.constant 0 : index
    %c0_7 = arith.constant 0 : index
    %c0_8 = arith.constant 0 : index
    %11 = vector.load %arg5[%c0_6, %c0_7, %c0_8] : memref<1x8x1024xf32, #tpu.memory_space<vmem>>, vector<1x8x1024xf32>
    %12 = vector.shape_cast %11 : vector<1x8x1024xf32> to vector<8x1024xf32>
    %13 = vector.shape_cast %10 : vector<8x1024xf32> to vector<1x8x1024xf32>
    tpu.vector_store %arg5[%c0_6, %c0_7, %c0_8], %13 {strides = array<i32>} : memref<1x8x1024xf32, #tpu.memory_space<vmem>>, vector<1x8x1024xf32>,
    return
  }
  func.func @transform_0(%arg0: i32, %arg1: i32) -> (i32, i32, i32) {
    %c0_i32 = arith.constant 0 : i32
    %c0_i32_0 = arith.constant 0 : i32
    return %arg0, %c0_i32, %arg1 : i32, i32, i32
  }
  func.func @transform_1(%arg0: i32, %arg1: i32) -> (i32, i32) {
    %c0_i32 = arith.constant 0 : i32
    %c0_i32_0 = arith.constant 0 : i32
    %c0_i32_1 = arith.constant 0 : i32
    return %c0_i32, %c0_i32_0 : i32, i32
  }
  func.func @transform_2(%arg0: i32, %arg1: i32) -> (i32, i32) {
    %c0_i32 = arith.constant 0 : i32
    %c0_i32_0 = arith.constant 0 : i32
    %c0_i32_1 = arith.constant 0 : i32
    return %c0_i32, %c0_i32_0 : i32, i32
  }
  func.func @transform_3(%arg0: i32, %arg1: i32) -> (i32, i32, i32) {
    %c0_i32 = arith.constant 0 : i32
    %c0_i32_0 = arith.constant 0 : i32
    return %arg0, %c0_i32, %arg1 : i32, i32, i32
  }
}

</mosaic_0001>

<bundles_post_ra>
// kernel: bilinear_block_forward.3
= control target key start
LH: loop header
LB: loop body
LE: loop exit
PB: predicated region body
PF: predicated region fallthrough
CT: control target
= control target key end

     0   :  { %s437_s12 = smov 0   ;;  %s439_s13 = smov 0   ;;  %s480_s0 = inlined_call_operand.vmem [shape: bf16[2,8,1024], index: 0, kind: input, shape index: {}]   ;;  %s481_s1 = inlined_call_operand.vmem [shape: f32[8,1], index: 1, kind: input, shape index: {}]   ;;  %s482_s2 = inlined_call_operand.vmem [shape: f32[8,1], index: 2, kind: input, shape index: {}]   ;;  %s483_s3 = inlined_call_operand.vmem [shape: f32[2,8,1024], index: 3, kind: output, shape index: {}]  }
   0x1   :  { %s441_s14 = smov 0  }
   0x2 LB: > { %s25_s15 = sadd.s32 1, %s410_s13  ;;  %p357_p0 = scmp.ge.s32.totalorder %s414_s14, 1  ;;  %s414_s14 = sphi %s441_s14, %s13_s14   ;;  %s410_s13 = sphi %s439_s13, %s485_s13   ;;  %s406_s12 = sphi %s437_s12, %s484_s12  }
   0x3   : > { %p27_p1 = scmp.ge.s32.totalorder %s25_s15, 2  ;;  %p158_p2 = scmp.lt.s32.totalorder %s414_s14, 3 }
   0x5   : > { %s487_s15 = smov (%p27_p1, %s25_s15), 0  ;;  %p159_p3 = pnand %p357_p0, %p158_p2 }
   0x6   : > { %v222_v0 = vld [vmem:[%s481_s1] sm:$0xff] (!%p159_p3)  ;;  %v416_v1 = vmov (!%p159_p3), 0   ;;  %p191_p4 = scmp.lt.s32.totalorder (!%p159_p3), %s406_s12, 1 }
   0x7   : > { %162 = sbr.rel (%p159_p3) target bundleno = 148 (0x94), region = 32  ;;  %391 = vset.pattern.permute.xlu0 (!%p159_p3), %v416_v1  ;;  %v236_v2 = vld [vmem:[%s482_s2] sm:$0xff] (!%p159_p3) }
   0x8   : > { %225 = vperm.xlu0 (!%p159_p3), %391, %v222_v0  }
   0xc   : > { %239 = vperm.xlu0 (!%p159_p3), %391, %v236_v2  }
   0xe   : > { %s489_s12 = smov (!%p191_p4, %s406_s12), 1 }
   0xf   : > { %s364_s20 = sshll.u32 %s489_s12, 5  ;;  %s365_s24 = sshll.u32 %s489_s12, 6 }
  0x10   : > { %s198_s23 = scalar_lea.vmem %s480_s0, %s364_s20  ;;  %s208_s27 = scalar_lea.vmem %s483_s3, %s365_s24 }
  0x11   : > { %v210_v3 = vld [vmem:[%s198_s23] sm:$0xff]  ;;  %v211_v4 = vld [vmem:[%s198_s23 + $0x8] sm:$0xff]  ;;  %v212_v5 = vld [vmem:[%s198_s23 + $0x10] sm:$0xff] }
  0x12   : > { %v213_v6 = vld [vmem:[%s198_s23 + $0x18] sm:$0xff]  ;;  %v214_v7 = vunpack.c.l.bf16 %v210_v3  ;;  %v215_v8 = vunpack.c.h.bf16 %v210_v3  ;;  %v216_v9 = vunpack.c.l.bf16 %v211_v4  ;;  %v217_v10 = vunpack.c.h.bf16 %v211_v4 }
  0x13   : > { %v218_v12 = vunpack.c.l.bf16 %v212_v5  ;;  %v219_v13 = vunpack.c.h.bf16 %v212_v5  ;;  %v220_v14 = vunpack.c.l.bf16 %v213_v6  ;;  %v221_v15 = vunpack.c.h.bf16 %v213_v6 }
  0x87   : > { %v226_v11 = vpop.permute.xlu0 %225 }
  0x88   : > { %v228_v16 = vmul.f32 %v226_v11, %v214_v7  ;;  %v229_v17 = vmul.f32 %v226_v11, %v215_v8  ;;  %v230_v18 = vmul.f32 %v226_v11, %v216_v9  ;;  %v231_v19 = vmul.f32 %v226_v11, %v217_v10 }
  0x89   : > { %v232_v21 = vmul.f32 %v226_v11, %v218_v12  ;;  %v233_v22 = vmul.f32 %v226_v11, %v219_v13  ;;  %v234_v23 = vmul.f32 %v226_v11, %v220_v14  ;;  %v235_v24 = vmul.f32 %v226_v11, %v221_v15 }
  0x8b   : > { %v240_v20 = vpop.permute.xlu0 %239 }
  0x8c   : > { %v242_v25 = vadd.f32 %v240_v20, %v228_v16  ;;  %v243_v26 = vadd.f32 %v240_v20, %v229_v17  ;;  %v244_v27 = vadd.f32 %v240_v20, %v230_v18  ;;  %v245_v28 = vadd.f32 %v240_v20, %v231_v19 }
  0x8d   : > { %v246_v29 = vadd.f32 %v240_v20, %v232_v21  ;;  %v247_v30 = vadd.f32 %v240_v20, %v233_v22  ;;  %v248_v31 = vadd.f32 %v240_v20, %v234_v23  ;;  %v249_v32 = vadd.f32 %v240_v20, %v235_v24 }
  0x8e   : > { %v250_v33 = vmax.f32 %v242_v25, 0.0  ;;  %v251_v34 = vmax.f32 %v243_v26, 0.0  ;;  %v252_v35 = vmax.f32 %v244_v27, 0.0  ;;  %v253_v36 = vmax.f32 %v245_v28, 0.0 }
  0x8f   : > { %v254_v37 = vmax.f32 %v246_v29, 0.0  ;;  %v255_v38 = vmax.f32 %v247_v30, 0.0  ;;  %v256_v39 = vmax.f32 %v248_v31, 0.0  ;;  %v257_v40 = vmax.f32 %v249_v32, 0.0 }
  0x90   : > { %258 = vst [vmem:[%s208_s27] sm:$0xff] %v250_v33  ;;  %259 = vst [vmem:[%s208_s27 + $0x8] sm:$0xff] %v251_v34 }
  0x91   : > { %260 = vst [vmem:[%s208_s27 + $0x10] sm:$0xff] %v252_v35  ;;  %261 = vst [vmem:[%s208_s27 + $0x18] sm:$0xff] %v253_v36 }
  0x92   : > { %262 = vst [vmem:[%s208_s27 + $0x20] sm:$0xff] %v254_v37  ;;  %263 = vst [vmem:[%s208_s27 + $0x28] sm:$0xff] %v255_v38 }
  0x93   : > { %264 = vst [vmem:[%s208_s27 + $0x30] sm:$0xff] %v256_v39  ;;  %265 = vst [vmem:[%s208_s27 + $0x38] sm:$0xff] %v257_v40 }
  0x94 PF: > { %s13_s14 = sadd.s32 1, %s414_s14   ;;  %s484_s12 = smov %s410_s13 }
  0x95   : > { %p10_p5 = scmp.ge.s32.totalorder %s13_s14, 4   ;;  %s485_s13 = smov %s487_s15 }
  0x97   :  { %12 = sbr.rel (!%p10_p5) target bundleno = 2 (0x2), region = 62 }

// kernel: bilinear_block_forward.2
= control target key start
LH: loop header
LB: loop body
LE: loop exit
PB: predicated region body
PF: predicated region fallthrough
CT: control target
= control target key end

     0   :  { %s6766_s15 = smov 0   ;;  %s6768_s16 = smov 0   ;;  %s10755_s0 = inlined_call_operand.vmem [shape: f32[2,16,8,16], index: 0, kind: input, shape index: {}]   ;;  %s10756_s1 = inlined_call_operand.vmem [shape: f32[16,32], index: 1, kind: input, shape index: {}]   ;;  %s10757_s2 = inlined_call_operand.vmem [shape: bf16[72,8], index: 2, kind: input, shape index: {}]   ;;  %s10758_s3 = inlined_call_operand.vmem [shape: bf16[2,8,1024], index: 3, kind: output, shape index: {0}]   ;;  %s10759_s4 = inlined_call_operand.vmem [shape: f32[2,2,8], index: 4, kind: output, shape index: {1}]  }
   0x1   :  { %s6770_s17 = smov 0   ;;  %s6772_s18 = smov 0  }
   0x2   :  { %s6774_s19 = smov 0  }
   0x3 LB: > { %s24_s20 = sadd.s32 1, %s6722_s17  ;;  %s27_s21 = sadd.s32 1, %s6726_s18  ;;  %s6730_s19 = sphi %s6774_s19, %s15_s19   ;;  %s6726_s18 = sphi %s6772_s18, %s11997_s18   ;;  %s6722_s17 = sphi %s6770_s17, %s11996_s17   ;;  %s6718_s16 = sphi %s6768_s16, %s11995_s16   ;;  %s6714_s15 = sphi %s6766_s15, %s11994_s15  }
   0x4   : > { %p25_p0 = scmp.ge.s32.totalorder %s24_s20, 2  ;;  %p4858_p1 = scmp.ge.s32.totalorder %s6730_s19, 1 }
   0x5   : > { %p179_p2 = scmp.lt.s32.totalorder %s6730_s19, 5 }
   0x6   : > { %s11999_s20 = smov (%p25_p0, %s24_s20), 0  ;;  %s12001_s21 = smov (!%p25_p0, %s27_s21), %s6726_s18 }
   0x7   : > { %p180_p3 = pnand %p4858_p1, %p179_p2  ;;  %p29_p4 = scmp.ge.s32.totalorder %s12001_s21, 2 }
   0x9   : > { %s12003_s21 = smov (%p29_p4, %s12001_s21), 0  ;;  %183 = sbr.rel (%p180_p3) target bundleno = 1584 (0x630), region = 32 }
  0x10   : > { %v256_v0 = vld [vmem:[%s10756_s1] sm:$0xff]  ;;  %v257_v1 = vld [vmem:[%s10756_s1 + $0x8] sm:$0xff]  ;;  %p213_p5 = scmp.lt.s32.totalorder %s6718_s16, 1  ;;  %s4861_s26 = sshll.u32 %s6714_s15, 2  ;;  %vm258_vm0 = vcmask 130048   ;;  %vm1120_vm3 = vcmask 1040384  }
  0x11   : > { %v5069_v2 = vpack.c.bf16 %v257_v1, %v256_v0  ;;  %p221_p6 = scmp.lt.s32.totalorder %s4861_s26, 7  ;;  %s4865_s28 = sshll.u32 %s6714_s15, 3  ;;  %vm1399_vm4 = vcmask 1046528   ;;  %vm1736_vm5 = vcmask 1045504   ;;  %vm3265_vm6 = vcmask 64512  }
  0x12   : > { %s12005_s16 = smov (!%p213_p5, %s6718_s16), 1  ;;  %s4866_s13 = sadd.s32 4294967295, %s4865_s28  ;;  %vm3394_vm7 = vcmask 195584   ;;  %vm3949_vm8 = vcmask 1043456   ;;  %vm3459_vm9 = vcmask 261120   ;;  %vm3524_vm10 = vcmask 326656  }
  0x13   : > { %5070 = vmatprep.subr.bf16.mxu0 %v5069_v2  ;;  %s12007_s26 = smov (!%p221_p6, %s4861_s26), 7  ;;  %s4862_s27 = sshll.u32 %s12005_s16, 3  ;;  %vm3589_vm11 = vcmask 392192   ;;  %vm3654_vm12 = vcmask 457728   ;;  %vm3719_vm13 = vcmask 523264   ;;  %vm3852_vm14 = vcmask 588800  }
  0x14   : > { %5072 = vmatpush3.bf16.msra.mxu0 %v5069_v2  ;;  %s4923_s29 = sshll.u32 %s12005_s16, 7  ;;  %s224_s30 = sadd.s32 %s4862_s27, %s12007_s26 }
  0x15   : > { %s4863_s5 = sshll.u32 %s224_s30, 2  ;;  %s4864_s6 = sshll.u32 %s12005_s16, 1 }
  0x16   : > { %s6809_s9 = scalar_lea.vmem %s10758_s3, %s4863_s5  ;;  %s6814_s12 = scalar_lea.vmem %s10759_s4, %s4864_s6 }
  0x17   : > { %s217_s23 = scalar_lea.vmem %s10755_s0, %s4923_s29  ;;  %p235_p7 = scmp.gt.s32.totalorder %s4866_s13, 0 }
  0x18   : > { %s4924_s24 = sshll.u32 %s6714_s15, 6  ;;  %s237_s16 = sadd.s32 8, %s4865_s28 }
  0x19   : > { %s12009_s13 = smov (!%p235_p7, %s4866_s13), 0  ;;  %s244_s25 = scalar_lea.vmem %s217_s23, %s4924_s24 }
  0x1a   : > { %s4867_s26 = sshll.u32 %s12009_s13, 3  ;;  %v245_v3 = vld [vmem:[%s244_s25] sm:$0xff]  ;;  %v246_v5 = vld [vmem:[%s244_s25 + $0x8] sm:$0xff]  ;;  %p238_p8 = scmp.lt.s32.totalorder %s237_s16, 15  ;;  %v247_v6 = vld [vmem:[%s244_s25 + $0x10] sm:$0xff] }
  0x1b   : > { %s241_s27 = scalar_lea.vmem %s217_s23, %s4867_s26  ;;  %v248_v7 = vld [vmem:[%s244_s25 + $0x18] sm:$0xff]  ;;  %v249_v8 = vld [vmem:[%s244_s25 + $0x20] sm:$0xff]  ;;  %v250_v9 = vld [vmem:[%s244_s25 + $0x28] sm:$0xff]  ;;  %p442_p9 = scmp.eq.s32.totalorder %s6714_s15, 0 }
  0x1c   : > { %v242_v4 = vld [vmem:[%s241_s27] sm:$0xff]  ;;  %s12011_s16 = smov (!%p238_p8, %s237_s16), 15  ;;  %v251_v10 = vld [vmem:[%s244_s25 + $0x30] sm:$0xff]  ;;  %v252_v11 = vld [vmem:[%s244_s25 + $0x38] sm:$0xff]  ;;  %p446_p10 = scmp.eq.s32.totalorder %s6714_s15, 1 }
  0x1d   : > { %4980 = vmatprep.mubr.msk.f32.mxu0 %vm258_vm0, %v242_v4  ;;  %s4869_s28 = sshll.u32 %s12011_s16, 3  ;;  %s6732_s6 = smov 24  }
  0x1e   : > { %4981 = vmatmul.mubr.msk.f32.vlgmr.msra.gmra.mrb[0].mxu0 %vm258_vm0, %v245_v3  ;;  %s254_s29 = scalar_lea.vmem %s217_s23, %s4869_s28  ;;  %s6733_s7 = smov 8  }
  0x1f   : > { %4983 = vmatprep.mubr.msk.f32.mxu0 %vm258_vm0, %v246_v5  ;;  %v255_v12 = vld [vmem:[%s254_s29] sm:$0xff]  ;;  %s443_s30 = scalar_select %p442_p9, 1, 0 }
  0x20   : > { %s447_s5 = scalar_select %p446_p10, 1, 0 }
  0x21   : > { %v444_v14 = vstv %s443_s30  ;;  %s6734_s8 = smov 16   ;;  %s6735_s10 = smov 32  }
  0x22   : > { %4984 = vmatmul.mubr.msk.f32.gmra.mrb[2].mxu0 %vm258_vm0, %v247_v6  ;;  %vm445_vm1 = vcmp.eq.s32.totalorder %v444_v14, 1  ;;  %v448_v54 = vstv %s447_s5  ;;  %s6736_s11 = smov 40   ;;  %s6737_s13 = smov 48  }
  0x23   : > { %4986 = vmatprep.mubr.msk.f32.mxu0 %vm258_vm0, %v248_v7  ;;  %vm449_vm2 = vcmp.eq.s32.totalorder %v448_v54, 1  ;;  %s6738_s25 = smov 56   ;;  %s6739_s27 = smov 64  }
  0x24   : > { %p4917_p11 = scmp.ne.s32.totalorder %s6714_s15, 0 }
  0x25   : > { %vm4245_vm15 = vcmask (!%p4917_p11), 58368  }
  0x26   : > { %4987 = vmatmul.mubr.msk.f32.gmra.mrb[4].mxu0 %vm258_vm0, %v249_v8 }
  0x27   : > { %4989 = vmatprep.mubr.msk.f32.mxu0 %vm258_vm0, %v250_v9 }
  0x2a   : > { %4990 = vmatmul.mubr.msk.f32.gmra.mrb[6].mxu0 %vm258_vm0, %v251_v10 }
  0x2b   : > { %4992 = vmatprep.mubr.msk.f32.mxu0 %vm258_vm0, %v252_v11 }
  0x2e   : > { %4993 = vmatmul.mubr.msk.f32.gmra.mrb[8].mxu0 %vm258_vm0, %v255_v12 }
  0xf1   : > { %v4982_v13 = vpop.f32.mrb[0].mxu0 }
  0xf2   : > { %v405_v15 = vmul.f32 0.75, %v4982_v13  ;;  %v415_v16 = vmul.f32 0.25, %v4982_v13  ;;  %v355_v17 = vpop.f32.mrb[1].mxu0 }
  0xf3   : > { %v404_v18 = vmul.f32 0.75, %v355_v17  ;;  %v414_v19 = vmul.f32 0.25, %v355_v17 }
  0xf5   : > { %v4985_v20 = vpop.f32.mrb[2].mxu0  ;;  %v423_v21 = vadd.f32 %v414_v19, %v405_v15  ;;  %v433_v22 = vadd.f32 %v415_v16, %v404_v18 }
  0xf6   : > { %v407_v23 = vmul.f32 0.75, %v4985_v20  ;;  %v417_v24 = vmul.f32 0.25, %v4985_v20  ;;  %v365_v25 = vpop.f32.mrb[3].mxu0 }
  0xf7   : > { %v406_v26 = vmul.f32 0.75, %v365_v25  ;;  %v416_v27 = vmul.f32 0.25, %v365_v25  ;;  %v454_v28 = vsel %vm445_vm1, 0.0, %v433_v22 }
  0xf8   : > { %v5135_v29 = vpack.i.bf16 %v423_v21, %v454_v28 }
  0xf9   : > { %v425_v30 = vadd.f32 %v416_v27, %v407_v23  ;;  %v435_v31 = vadd.f32 %v417_v24, %v406_v26  ;;  %v4988_v32 = vpop.f32.mrb[4].mxu0  ;;  %v424_v33 = vadd.f32 %v415_v16, %v406_v26  ;;  %v434_v34 = vadd.f32 %v416_v27, %v405_v15 }
  0xfa   : > { %5136 = vxpose.xlu0.b32.start.end [1/1] (short) (narrow) %v5135_v29, 32  ;;  %v409_v35 = vmul.f32 0.75, %v4988_v32  ;;  %v419_v36 = vmul.f32 0.25, %v4988_v32  ;;  %v375_v37 = vpop.f32.mrb[5].mxu0 }
  0xfb   : > { %v5179_v38 = vpack.i.bf16 %v425_v30, %v435_v31  ;;  %v408_v39 = vmul.f32 0.75, %v375_v37  ;;  %v418_v40 = vmul.f32 0.25, %v375_v37  ;;  %v5157_v41 = vpack.i.bf16 %v424_v33, %v434_v34 }
  0xfd   : > { %5180 = vxpose.xlu1.b32.start.end [1/1] (short) (narrow) %v5179_v38, 32  ;;  %v426_v42 = vadd.f32 %v417_v24, %v408_v39  ;;  %v436_v43 = vadd.f32 %v418_v40, %v407_v23  ;;  %v4991_v44 = vpop.f32.mrb[6].mxu0  ;;  %v427_v45 = vadd.f32 %v418_v40, %v409_v35  ;;  %v437_v46 = vadd.f32 %v419_v36, %v408_v39 }
  0xfe   : > { %v411_v47 = vmul.f32 0.75, %v4991_v44  ;;  %v421_v48 = vmul.f32 0.25, %v4991_v44  ;;  %v385_v49 = vpop.f32.mrb[7].mxu0 }
  0xff   : > { %v5201_v50 = vpack.i.bf16 %v426_v42, %v436_v43  ;;  %v410_v51 = vmul.f32 0.75, %v385_v49  ;;  %v420_v52 = vmul.f32 0.25, %v385_v49  ;;  %v5223_v53 = vpack.i.bf16 %v427_v45, %v437_v46 }
 0x101   : > { %v428_v55 = vadd.f32 %v419_v36, %v410_v51  ;;  %v438_v56 = vadd.f32 %v420_v52, %v409_v35  ;;  %v4994_v57 = vpop.f32.mrb[8].mxu0  ;;  %v429_v58 = vadd.f32 %v420_v52, %v411_v47  ;;  %v439_v59 = vadd.f32 %v421_v48, %v410_v51 }
 0x102   : > { %v413_v60 = vmul.f32 0.75, %v4994_v57  ;;  %v432_v61 = vmul.f32 0.25, %v4994_v57  ;;  %v395_v62 = vpop.f32.mrb[9].mxu0 }
 0x103   : > { %v5245_v63 = vpack.i.bf16 %v428_v55, %v438_v56  ;;  %v412_v0 = vmul.f32 0.75, %v395_v62  ;;  %v422_v1 = vmul.f32 0.25, %v395_v62  ;;  %v5267_v2 = vpack.i.bf16 %v429_v58, %v439_v59 }
 0x105   : > { %v431_v3 = vadd.f32 %v422_v1, %v413_v60  ;;  %v430_v4 = vadd.f32 %v421_v48, %v412_v0  ;;  %v440_v5 = vadd.f32 %v422_v1, %v411_v47  ;;  %v441_v6 = vadd.f32 %v432_v61, %v412_v0 }
 0x107   : > { %5158 = vxpose.xlu0.b32.start.end [1/1] (short) (narrow) %v5157_v41, 32  ;;  %v5289_v7 = vpack.i.bf16 %v430_v4, %v440_v5  ;;  %v471_v8 = vsel %vm449_vm2, 0.0, %v431_v3 }
 0x108   : > { %v5311_v9 = vpack.i.bf16 %v471_v8, %v441_v6 }
 0x10a   : > { %5202 = vxpose.xlu1.b32.start.end [1/1] (short) (narrow) %v5201_v50, 32 }
 0x114   : > { %5224 = vxpose.xlu0.b32.start.end [1/1] (short) (narrow) %v5223_v53, 32 }
 0x117   : > { %5246 = vxpose.xlu1.b32.start.end [1/1] (short) (narrow) %v5245_v63, 32 }
 0x121   : > { %5268 = vxpose.xlu0.b32.start.end [1/1] (short) (narrow) %v5267_v2, 32 }
 0x124   : > { %5290 = vxpose.xlu1.b32.start.end [1/1] (short) (narrow) %v5289_v7, 32 }
 0x12e   : > { %5312 = vxpose.xlu0.b32.start.end [1/1] (short) (narrow) %v5311_v9, 32 }
 0x17a   : > { %v5137_v10 = vpop.trf.xlu0 }
 0x17b   : > { %v5141_v11 = vunpack.i.h.bf16 %v5137_v10  ;;  %v5138_v21 = vunpack.i.l.bf16 %v5137_v10 }
 0x17d   : > { %v6834_v12 = vpop.trf.xlu1  ;;  %v1128_v15 = vrot.slane %v5141_v11, 7  ;;  %v1121_v31 = vrot.slane %v5138_v21, 7 }
 0x17e   : > { %v5142_v13 = vpop.trf.xlu0  ;;  %v5182_v4 = vunpack.i.l.bf16 %v6834_v12 }
 0x17f   : > { %v5146_v14 = vunpack.i.h.bf16 %v5142_v13  ;;  %v5143_v19 = vunpack.i.l.bf16 %v5142_v13  ;;  %v6842_v24 = vsel %vm1120_vm3, 0.0, %v1128_v15  ;;  %v6869_v40 = vsel %vm1120_vm3, 0.0, %v1121_v31 }
 0x180   : > { %11148 = vst [vmem:[#allocation4_spill] sm:$0xff] %v6842_v24  ;;  %v1409_v37 = vrot.slane %v6842_v24, 1  ;;  %11152 = vst [vmem:[#allocation8_spill] sm:$0xff] %v6869_v40  ;;  %v1400_v49 = vrot.slane %v6869_v40, 1  ;;  %v1149_v21 = vrot.slane %v5182_v4, 7 }
 0x181   : > { %v1129_v16 = vrot.slane %v5146_v14, 7  ;;  %v6836_v17 = vpop.trf.xlu1  ;;  %v1122_v30 = vrot.slane %v5143_v19, 7 }
 0x182   : > { %v5147_v18 = vpop.trf.xlu0  ;;  %v5187_v6 = vunpack.i.l.bf16 %v6836_v17 }
 0x183   : > { %v5151_v20 = vunpack.i.h.bf16 %v5147_v18  ;;  %v5148_v22 = vunpack.i.l.bf16 %v5147_v18  ;;  %v6839_v23 = vsel %vm1120_vm3, %v1128_v15, %v1129_v16  ;;  %v6866_v39 = vsel %vm1120_vm3, %v1121_v31, %v1122_v30 }
 0x184   : > { %11147 = vst [vmem:[#allocation3_spill] sm:$0xff] %v6839_v23  ;;  %v5333_v27 = vpack.i.bf16 %v6839_v23, %v6842_v24  ;;  %v1410_v33 = vrot.slane %v6839_v23, 1  ;;  %11151 = vst [vmem:[#allocation7_spill] sm:$0xff] %v6866_v39  ;;  %v1401_v48 = vrot.slane %v6866_v39, 1  ;;  %v5190_v18 = vunpack.i.h.bf16 %v6836_v17 }
 0x185   : > { %v1131_v25 = vrot.slane %v5151_v20, 7  ;;  %v6844_v26 = vpop.trf.xlu1  ;;  %v6848_v28 = vrot.slane %v5148_v22, 7  ;;  %v6925_v22 = vrot.slane %v5187_v6, 7 }
 0x186   : > { %v6850_v29 = vpop.trf.xlu0  ;;  %5334 = vrot.lane.b32.xlu0 %v5333_v27, %s6732_s6  ;;  %v1411_v42 = vsel %vm1399_vm4, %v1409_v37, %v1410_v33  ;;  %v1402_v55 = vsel %vm1399_vm4, %v1400_v49, %v1401_v48 }
 0x187   : > { %v6854_v32 = vsel %vm1120_vm3, %v1129_v16, %v1131_v25  ;;  %v6863_v38 = vsel %vm1120_vm3, %v1122_v30, %v6848_v28  ;;  %v5156_v41 = vunpack.i.h.bf16 %v6850_v29  ;;  %v5185_v16 = vunpack.i.h.bf16 %v6834_v12 }
 0x188   : > { %11149 = vst [vmem:[#allocation5_spill] sm:$0xff] %v6854_v32  ;;  %v1412_v35 = vrot.slane %v6854_v32, 1  ;;  %11150 = vst [vmem:[#allocation6_spill] sm:$0xff] %v6863_v38  ;;  %v10760_v46 = vrot.slane %v6863_v38, 1  ;;  %v1749_v6 = vrot.slane %v6854_v32, 2 }
 0x189   : > { %v6857_v34 = vpop.trf.xlu1  ;;  %v1133_v50 = vrot.slane %v5156_v41, 7  ;;  %v1156_v37 = vrot.slane %v5185_v16, 7  ;;  %v1747_v16 = vrot.slane %v6839_v23, 2 }
 0x18a   : > { %v5159_v36 = vpop.trf.xlu0  ;;  %v1413_v43 = vsel %vm1399_vm4, %v1410_v33, %v1412_v35  ;;  %v1404_v54 = vsel %vm1399_vm4, %v1401_v48, %v10760_v46  ;;  %v6957_v48 = vsel %vm1120_vm3, 0.0, %v1149_v21 }
 0x18b   : > { %v6876_v45 = vpack.i.bf16 %v1413_v43, %v1411_v42  ;;  %v5160_v52 = vunpack.i.l.bf16 %v5159_v36  ;;  %v5373_v58 = vpack.i.bf16 %v1404_v54, %v1402_v55  ;;  %v6890_v60 = vsel %vm1120_vm3, %v1131_v25, %v1133_v50  ;;  %11162 = vst [vmem:[#allocation18_spill] sm:$0xff] %v6957_v48 }
 0x18c   : > { %11153 = vst [vmem:[#allocation9_spill] sm:$0xff] %v6890_v60  ;;  %v5163_v61 = vunpack.i.h.bf16 %v5159_v36  ;;  %v5383_v2 = vpack.i.bf16 %v6890_v60, %v6854_v32  ;;  %v1350_v10 = vsel %vm1120_vm3, %v1133_v50, 0.0  ;;  %v1414_v15 = vrot.slane %v6890_v60, 1 }
 0x18d   : > { %v6874_v44 = vpop.trf.xlu1  ;;  %5359 = vrot.lane.b32.xlu1 %v6876_v45, %s6733_s7  ;;  %v1135_v62 = vrot.slane %v5160_v52, 7  ;;  %v1416_v19 = vrot.slane %v1350_v10, 1  ;;  %v5153_v55 = vunpack.i.l.bf16 %v6850_v29 }
 0x18e   : > { %v5164_v47 = vpop.trf.xlu0  ;;  %v1142_v7 = vrot.slane %v5163_v61, 7  ;;  %v1415_v25 = vsel %vm1399_vm4, %v1412_v35, %v1414_v15  ;;  %v6944_v35 = vrot.slane %v5190_v18, 7 }
 0x18f   : > { %v5165_v51 = vunpack.i.l.bf16 %v5164_v47  ;;  %v5168_v59 = vunpack.i.h.bf16 %v5164_v47  ;;  %v6906_v8 = vsel %vm1120_vm3, 0.0, %v1135_v62  ;;  %v1417_v31 = vsel %vm1399_vm4, %v1414_v15, %v1416_v19 }
 0x190   : > { %11155 = vst [vmem:[#allocation11_spill] sm:$0xff] %v6906_v8  ;;  %v6929_v27 = vsel %vm1120_vm3, 0.0, %v1142_v7  ;;  %v5408_v36 = vpack.i.bf16 %v1417_v31, %v1415_v25  ;;  %v1418_v41 = vrot.slane %v6906_v8, 1  ;;  %v6954_v47 = vsel %vm1120_vm3, %v1149_v21, %v6925_v22 }
 0x191   : > { %v6883_v53 = vpop.trf.xlu1  ;;  %v1136_v57 = vrot.slane %v5165_v51, 7  ;;  %5374 = vrot.lane.b32.xlu1 %v5373_v58, %s6733_s7  ;;  %v1143_v5 = vrot.slane %v5168_v59, 7  ;;  %11158 = vst [vmem:[#allocation14_spill] sm:$0xff] %v6929_v27  ;;  %11161 = vst [vmem:[#allocation17_spill] sm:$0xff] %v6954_v47  ;;  %v6967_v51 = vpack.i.bf16 %v6954_v47, %v6957_v48  ;;  %v1427_v58 = vrot.slane %v6929_v27, 1 }
 0x192   : > { %v5169_v56 = vpop.trf.xlu0  ;;  %v6983_v61 = vsel %vm1120_vm3, %v1156_v37, %v6944_v35  ;;  %v1126_v15 = vrot.slane %v5153_v55, 7  ;;  %v1746_v25 = vrot.slane %v6842_v24, 2 }
 0x193   : > { %v5170_v0 = vunpack.i.l.bf16 %v5169_v56  ;;  %v6900_v3 = vsel %vm1120_vm3, %v1135_v62, %v1136_v57  ;;  %v5173_v11 = vunpack.i.h.bf16 %v5169_v56  ;;  %v6923_v20 = vsel %vm1120_vm3, %v1142_v7, %v1143_v5  ;;  %11164 = vst [vmem:[#allocation20_spill] sm:$0xff] %v6967_v51  ;;  %11166 = vst [vmem:[#allocation22_spill] sm:$0xff] %v6983_v61 }
 0x194   : > { %11154 = vst [vmem:[#allocation10_spill] sm:$0xff] %v6900_v3  ;;  %v6915_v14 = vpack.i.bf16 %v6900_v3, %v6906_v8  ;;  %11157 = vst [vmem:[#allocation13_spill] sm:$0xff] %v6923_v20  ;;  %v6942_v33 = vpack.i.bf16 %v6923_v20, %v6929_v27  ;;  %v1419_v42 = vrot.slane %v6900_v3, 1  ;;  %v6986_v62 = vsel %vm1120_vm3, 0.0, %v1156_v37 }
 0x195   : > { %v6893_v63 = vpop.trf.xlu1  ;;  %5384 = vrot.lane.b32.xlu1 %v5383_v2, %s6732_s6  ;;  %v6911_v13 = vrot.slane %v5170_v0, 7  ;;  %v6933_v12 = vrot.slane %v5173_v11, 7  ;;  %11167 = vst [vmem:[#allocation23_spill] sm:$0xff] %v6986_v62  ;;  %v6994_v29 = vpack.i.bf16 %v6983_v61, %v6986_v62  ;;  %v1751_v7 = vrot.slane %v6890_v60, 2 }
 0x196   : > { %v6895_v1 = vpop.trf.xlu0  ;;  %11156 = vst [vmem:[#allocation12_spill] sm:$0xff] %v6915_v14  ;;  %5339 = vrot.lane.b32.xlu0 %v6915_v14, %s6732_s6  ;;  %11160 = vst [vmem:[#allocation16_spill] sm:$0xff] %v6942_v33  ;;  %v1420_v52 = vsel %vm1399_vm4, %v1418_v41, %v1419_v42  ;;  %v1753_v11 = vrot.slane %v1350_v10, 2  ;;  %v1748_v37 = vsel %vm1736_vm5, %v1746_v25, %v1747_v16  ;;  %v7030_v55 = vsel %vm1120_vm3, %v1126_v15, 0.0 }
 0x197   : > { %v6937_v17 = vsel %vm1120_vm3, %v1136_v57, %v6911_v13  ;;  %v6963_v50 = vsel %vm1120_vm3, %v1143_v5, %v6933_v12  ;;  %v1428_v57 = vrot.slane %v6923_v20, 1  ;;  %11169 = vst [vmem:[#allocation25_spill] sm:$0xff] %v6994_v29  ;;  %v1752_v19 = vsel %vm1736_vm5, %v1749_v6, %v1751_v7 }
 0x198   : > { %11159 = vst [vmem:[#allocation15_spill] sm:$0xff] %v6937_v17  ;;  %v10762_v43 = vrot.slane %v6937_v17, 1  ;;  %11163 = vst [vmem:[#allocation19_spill] sm:$0xff] %v6963_v50  ;;  %v10761_v59 = vrot.slane %v6963_v50, 1  ;;  %v1754_v21 = vsel %vm1736_vm5, %v1751_v7, %v1753_v11  ;;  %v1750_v10 = vsel %vm1736_vm5, %v1747_v16, %v1749_v6 }
 0x199   : > { %v6908_v9 = vpop.trf.xlu1  ;;  %5409 = vrot.lane.b32.xlu1 %v5408_v36, %s6733_s7  ;;  %v1429_v2 = vsel %vm1399_vm4, %v1427_v58, %v1428_v57  ;;  %v7014_v31 = vpack.i.bf16 %v1754_v21, %v1752_v19  ;;  %v5175_v41 = vunpack.i.l.bf16 %v6895_v1  ;;  %v1740_v58 = vrot.slane %v6863_v38, 2 }
 0x19a   : > { %5344 = vrot.lane.b32.xlu0 %v6942_v33, %s6732_s6  ;;  %v1422_v54 = vsel %vm1399_vm4, %v1419_v42, %v10762_v43  ;;  %v1431_v4 = vsel %vm1399_vm4, %v1428_v57, %v10761_v59  ;;  %v7019_v42 = vpack.i.bf16 %v1750_v10, %v1748_v37  ;;  %v5204_v57 = vunpack.i.l.bf16 %v6874_v44 }
 0x19b   : > { %v6974_v56 = vpack.i.bf16 %v1422_v54, %v1420_v52  ;;  %v7000_v5 = vpack.i.bf16 %v1431_v4, %v1429_v2  ;;  %11172 = vst [vmem:[#allocation28_spill] sm:$0xff] %v7014_v31  ;;  %v7023_v52 = vsel %vm1120_vm3, %v6848_v28, %v1126_v15  ;;  %v1744_v28 = vrot.slane %v7030_v55, 2  ;;  %v5225_v4 = vpop.trf.xlu0 }
 0x19c   : > { %11173 = vst [vmem:[#allocation29_spill] sm:$0xff] %v7019_v42  ;;  %11174 = vst [vmem:[#allocation30_spill] sm:$0xff] %v7023_v52  ;;  %v1742_v2 = vrot.slane %v7023_v52, 2  ;;  %v5209_v6 = vunpack.i.l.bf16 %v6883_v53  ;;  %v7039_v7 = vrot.slane %v5175_v41, 7  ;;  %v5197_v15 = vunpack.i.l.bf16 %v6857_v34 }
 0x19d   : > { %v6931_v30 = vpop.trf.xlu1  ;;  %11165 = vst [vmem:[#allocation21_spill] sm:$0xff] %v6974_v56  ;;  %5414 = vrot.lane.b32.xlu1 %v6974_v56, %s6733_s7  ;;  %11170 = vst [vmem:[#allocation26_spill] sm:$0xff] %v7000_v5  ;;  %v5178_v16 = vunpack.i.h.bf16 %v6895_v1  ;;  %v5195_v25 = vunpack.i.h.bf16 %v6844_v26  ;;  %v5207_v37 = vunpack.i.h.bf16 %v6874_v44  ;;  %v1163_v10 = vrot.slane %v5204_v57, 7 }
 0x19e   : > { %5349 = vrot.lane.b32.xlu0 %v6967_v51, %s6732_s6  ;;  %v1743_v11 = vsel %vm1736_vm5, %v1740_v58, %v1742_v2  ;;  %v1745_v19 = vsel %vm1736_vm5, %v1742_v2, %v1744_v28  ;;  %v5212_v41 = vunpack.i.h.bf16 %v6883_v53  ;;  %v7053_v59 = vrot.slane %v5209_v6, 7 }
 0x19f   : > { %v5488_v46 = vpack.i.bf16 %v1745_v19, %v1743_v11  ;;  %v1737_v1 = vrot.slane %v6869_v40, 2  ;;  %v7060_v2 = vsel %vm1120_vm3, %v6911_v13, %v7039_v7  ;;  %v5192_v44 = vunpack.i.l.bf16 %v6844_v26  ;;  %v5230_v53 = vpop.trf.xlu0 }
 0x1a0   : > { %11177 = vst [vmem:[#allocation33_spill] sm:$0xff] %v7060_v2  ;;  %v7063_v28 = vrot.slane %v5197_v15, 7  ;;  %v5226_v57 = vunpack.i.l.bf16 %v5225_v4  ;;  %v1170_v19 = vrot.slane %v5207_v37, 7  ;;  %v7070_v32 = vpack.i.bf16 %v7060_v2, %v6937_v17 }
 0x1a1   : > { %v6959_v49 = vpop.trf.xlu1  ;;  %5419 = vrot.lane.b32.xlu1 %v7000_v5, %s6733_s7  ;;  %v7074_v26 = vrot.slane %v5212_v41, 7  ;;  %v5231_v15 = vunpack.i.l.bf16 %v5230_v53 }
 0x1a2   : > { %5354 = vrot.lane.b32.xlu0 %v6994_v29, %s6732_s6  ;;  %11178 = vst [vmem:[#allocation34_spill] sm:$0xff] %v7070_v32 }
 0x1a3   : > { %v7091_v41 = vpop.trf.xlu0 }
 0x1a5   : > { %v6988_v0 = vpop.trf.xlu1  ;;  %5434 = vrot.lane.b32.xlu1 %v7014_v31, %s6734_s8 }
 0x1a6   : > { %11168 = vst [vmem:[#allocation24_spill] sm:$0xff] %v6988_v0  ;;  %5364 = vrot.lane.b32.xlu0 %v7019_v42, %s6734_s8  ;;  %v7196_v42 = vsel %vm1120_vm3, %v7063_v28, 0.0 }
 0x1a7   : > { %v7139_v23 = vpop.trf.xlu0 }
 0x1a9   : > { %v7007_v18 = vpop.trf.xlu1  ;;  %5459 = vrot.lane.b32.xlu1 %v5408_v36, %s6735_s10  ;;  %v1738_v36 = vrot.slane %v6866_v39, 2  ;;  %v1159_v39 = vrot.slane %v5195_v25, 7 }
 0x1aa   : > { %11171 = vst [vmem:[#allocation27_spill] sm:$0xff] %v7007_v18  ;;  %5369 = vrot.lane.b32.xlu0 %v6876_v45, %s6735_s10  ;;  %v1147_v45 = vrot.slane %v5178_v16, 7  ;;  %v5200_v16 = vunpack.i.h.bf16 %v6857_v34  ;;  %v1443_v18 = vrot.slane %v7196_v42, 1 }
 0x1ab   : > { %v1739_v6 = vsel %vm1736_vm5, %v1737_v1, %v1738_v36  ;;  %v1741_v11 = vsel %vm1736_vm5, %v1738_v36, %v1740_v58  ;;  %v5229_v1 = vunpack.i.h.bf16 %v5225_v4  ;;  %v7085_v58 = vsel %vm1120_vm3, 0.0, %v1163_v10 }
 0x1ac   : > { %v5378_v43 = vpack.i.bf16 %v1741_v11, %v1739_v6  ;;  %11181 = vst [vmem:[#allocation37_spill] sm:$0xff] %v7085_v58  ;;  %v7089_v37 = vsel %vm1120_vm3, %v6933_v12, %v1147_v45  ;;  %v1152_v36 = vrot.slane %v5192_v44, 7  ;;  %v1177_v6 = vrot.slane %v5226_v57, 7 }
 0x1ad   : > { %v7025_v54 = vpop.trf.xlu1  ;;  %5489 = vrot.lane.b32.xlu1 %v5488_v46, %s6734_s8  ;;  %v7078_v46 = vsel %vm1120_vm3, %v1163_v10, %v7053_v59  ;;  %11182 = vst [vmem:[#allocation38_spill] sm:$0xff] %v7089_v37  ;;  %v5234_v11 = vunpack.i.h.bf16 %v5230_v53  ;;  %v7101_v4 = vpack.i.bf16 %v7089_v37, %v6963_v50  ;;  %v7105_v10 = vsel %vm1120_vm3, %v1170_v19, %v7074_v26 }
 0x1ae   : > { %11175 = vst [vmem:[#allocation31_spill] sm:$0xff] %v7025_v54  ;;  %11180 = vst [vmem:[#allocation36_spill] sm:$0xff] %v7078_v46  ;;  %5379 = vrot.lane.b32.xlu0 %v5378_v43, %s6734_s8  ;;  %v7095_v34 = vpack.i.bf16 %v7078_v46, %v7085_v58  ;;  %v7097_v43 = vrot.slane %v5231_v15, 7  ;;  %v7108_v12 = vsel %vm1120_vm3, 0.0, %v1170_v19  ;;  %v7112_v44 = vsel %vm1120_vm3, %v1152_v36, %v7063_v28 }
 0x1af   : > { %11184 = vst [vmem:[#allocation40_spill] sm:$0xff] %v7101_v4  ;;  %11185 = vst [vmem:[#allocation41_spill] sm:$0xff] %v7105_v10  ;;  %v1161_v53 = vrot.slane %v5200_v16, 7  ;;  %v1184_v57 = vrot.slane %v5229_v1, 7  ;;  %v5393_v15 = vpack.i.bf16 %v7105_v10, %v7108_v12  ;;  %v7122_v40 = vrot.slane %v5234_v11, 7 }
 0x1b0   : > { %11183 = vst [vmem:[#allocation39_spill] sm:$0xff] %v7095_v34  ;;  %11186 = vst [vmem:[#allocation42_spill] sm:$0xff] %v7108_v12  ;;  %v7126_v19 = vsel %vm1120_vm3, %v6925_v22, %v1152_v36  ;;  %v7134_v1 = vsel %vm1120_vm3, %v1177_v6, %v7097_v43  ;;  %v7137_v24 = vsel %vm1120_vm3, 0.0, %v1177_v6  ;;  %v7153_v36 = vsel %vm1120_vm3, %v7039_v7, 0.0 }
 0x1b1   : > { %v7046_v21 = vpop.trf.xlu1  ;;  %5494 = vrot.lane.b32.xlu1 %v7070_v32, %s6732_s6  ;;  %11187 = vst [vmem:[#allocation43_spill] sm:$0xff] %v7112_v44  ;;  %11189 = vst [vmem:[#allocation45_spill] sm:$0xff] %v7126_v19  ;;  %v7130_v16 = vpack.i.bf16 %v7112_v44, %v7126_v19  ;;  %v7146_v22 = vpack.i.bf16 %v7134_v1, %v7137_v24  ;;  %v7149_v25 = vsel %vm1120_vm3, %v1159_v39, %v1161_v53 }
 0x1b2   : > { %11176 = vst [vmem:[#allocation32_spill] sm:$0xff] %v7046_v21  ;;  %5389 = vrot.lane.b32.xlu0 %v7095_v34, %s6732_s6  ;;  %11191 = vst [vmem:[#allocation47_spill] sm:$0xff] %v7134_v1  ;;  %v7157_v6 = vsel %vm1120_vm3, %v1184_v57, %v7122_v40  ;;  %v7160_v11 = vsel %vm1120_vm3, 0.0, %v1184_v57  ;;  %v1423_v32 = vrot.slane %v7060_v2, 1  ;;  %v1425_v57 = vrot.slane %v7153_v36, 1 }
 0x1b3   : > { %11190 = vst [vmem:[#allocation46_spill] sm:$0xff] %v7130_v16  ;;  %11192 = vst [vmem:[#allocation48_spill] sm:$0xff] %v7137_v24  ;;  %v5403_v7 = vpack.i.bf16 %v7157_v6, %v7160_v11  ;;  %v1439_v34 = vrot.slane %v7126_v19, 1  ;;  %v7184_v29 = vsel %vm1120_vm3, %v1147_v45, 0.0  ;;  %v1432_v45 = vrot.slane %v7089_v37, 1 }
 0x1b4   : > { %11193 = vst [vmem:[#allocation49_spill] sm:$0xff] %v7146_v22  ;;  %11194 = vst [vmem:[#allocation50_spill] sm:$0xff] %v7149_v25  ;;  %v1426_v33 = vsel %vm1399_vm4, %v1423_v32, %v1425_v57  ;;  %v11202_v28 = vrot.slane %v6963_v50, 1  ;;  %v7218_v0 = vsel %vm1120_vm3, %v1161_v53, 0.0  ;;  %v1758_v53 = vrot.slane %v6937_v17, 2 }
 0x1b5   : > { %v7072_v13 = vpop.trf.xlu1  ;;  %5499 = vrot.lane.b32.xlu1 %v7101_v4, %s6732_s6  ;;  %11195 = vst [vmem:[#allocation51_spill] sm:$0xff] %v7157_v6  ;;  %11196 = vst [vmem:[#allocation52_spill] sm:$0xff] %v7160_v11  ;;  %v1450_v21 = vrot.slane %v7149_v25, 1 }
 0x1b6   : > { %11179 = vst [vmem:[#allocation35_spill] sm:$0xff] %v7072_v13  ;;  %5394 = vrot.lane.b32.xlu0 %v5393_v15, %s6732_s6  ;;  %v7164_v15 = vsel %vm1120_vm3, %v6944_v35, %v1159_v39  ;;  %v1436_v39 = vrot.slane %v6957_v48, 1  ;;  %v1437_v35 = vrot.slane %v6954_v47, 1  ;;  %v1433_v57 = vsel %vm1399_vm4, %v11202_v28, %v1432_v45 }
 0x1b7   : > { %11197 = vst [vmem:[#allocation53_spill] sm:$0xff] %v7164_v15  ;;  %v7170_v4 = vpack.i.bf16 %v7149_v25, %v7164_v15  ;;  %v1441_v13 = vrot.slane %v7112_v44, 1 }
 0x1b8   : > { %v1438_v31 = vsel %vm1399_vm4, %v1436_v39, %v1437_v35 }
 0x1b9   : > { %v7120_v60 = vpop.trf.xlu1  ;;  %5504 = vrot.lane.b32.xlu1 %v7130_v16, %s6732_s6  ;;  %v7166_v16 = vpop.trf.xlu0  ;;  %11198 = vst [vmem:[#allocation54_spill] sm:$0xff] %v7170_v4  ;;  %v1442_v28 = vsel %vm1399_vm4, %v1439_v34, %v1441_v13 }
 0x1ba   : > { %11188 = vst [vmem:[#allocation44_spill] sm:$0xff] %v7120_v60  ;;  %5399 = vrot.lane.b32.xlu0 %v7146_v22, %s6732_s6  ;;  %v11199_v22 = vrot.slane %v6937_v17, 1 }
 0x1bc   : > { %v1424_v51 = vsel %vm1399_vm4, %v11199_v22, %v1423_v32  ;;  %v1434_v32 = vrot.slane %v7184_v29, 1 }
 0x1bd   : > { %5509 = vrot.lane.b32.xlu1 %v7170_v4, %s6732_s6  ;;  %v7190_v14 = vpack.i.bf16 %v1426_v33, %v1424_v51  ;;  %v1440_v4 = vsel %vm1399_vm4, %v1437_v35, %v1439_v34  ;;  %v7200_v60 = vpop.trf.xlu0  ;;  %v1445_v33 = vrot.slane %v6986_v62, 1  ;;  %v1446_v51 = vrot.slane %v6983_v61, 1 }
 0x1be   : > { %5404 = vrot.lane.b32.xlu0 %v5403_v7, %s6732_s6  ;;  %v7207_v22 = vpack.i.bf16 %v1440_v4, %v1438_v31  ;;  %v1448_v7 = vrot.slane %v7164_v15, 1  ;;  %v1435_v39 = vsel %vm1399_vm4, %v1432_v45, %v1434_v32  ;;  %v1444_v45 = vsel %vm1399_vm4, %v1441_v13, %v1443_v18 }
 0x1bf   : > { %11200 = vst [vmem:[#allocation55_spill] sm:$0xff] %v7190_v14  ;;  %v1447_v35 = vsel %vm1399_vm4, %v1445_v33, %v1446_v51  ;;  %v7222_v31 = vpack.i.bf16 %v1435_v39, %v1433_v57  ;;  %v1756_v33 = vrot.slane %v6900_v3, 2  ;;  %v1755_v57 = vrot.slane %v6906_v8, 2 }
 0x1c0   : > { %11201 = vst [vmem:[#allocation56_spill] sm:$0xff] %v7207_v22  ;;  %v1449_v4 = vsel %vm1399_vm4, %v1446_v51, %v1448_v7  ;;  %v1452_v51 = vrot.slane %v7218_v0, 1  ;;  %v1767_v34 = vrot.slane %v6963_v50, 2  ;;  %v7241_v18 = vpack.i.bf16 %v1444_v45, %v1442_v28 }
 0x1c1   : > { %5534 = vrot.lane.b32.xlu1 %v7190_v14, %s6733_s7  ;;  %11203 = vst [vmem:[#allocation57_spill] sm:$0xff] %v7222_v31  ;;  %v7229_v32 = vpack.i.bf16 %v1449_v4, %v1447_v35  ;;  %v7234_v54 = vpop.trf.xlu0  ;;  %v1759_v13 = vsel %vm1736_vm5, %v1756_v33, %v1758_v53  ;;  %v1765_v39 = vrot.slane %v6923_v20, 2  ;;  %v1757_v35 = vsel %vm1736_vm5, %v1755_v57, %v1756_v33 }
 0x1c2   : > { %5424 = vrot.lane.b32.xlu0 %v7207_v22, %s6733_s7  ;;  %11205 = vst [vmem:[#allocation59_spill] sm:$0xff] %v7241_v18  ;;  %v1451_v4 = vsel %vm1399_vm4, %v1448_v7, %v1450_v21  ;;  %v1453_v17 = vsel %vm1399_vm4, %v1450_v21, %v1452_v51  ;;  %v1760_v8 = vrot.slane %v7060_v2, 2  ;;  %v7251_v50 = vpack.i.bf16 %v1759_v13, %v1757_v35 }
 0x1c3   : > { %11204 = vst [vmem:[#allocation58_spill] sm:$0xff] %v7229_v32  ;;  %v1764_v28 = vrot.slane %v6929_v27, 2  ;;  %v1762_v45 = vrot.slane %v7153_v36, 2  ;;  %v1768_v3 = vsel %vm1736_vm5, %v1765_v39, %v1767_v34  ;;  %v1773_v20 = vrot.slane %v6957_v48, 2 }
 0x1c4   : > { %v1774_v33 = vrot.slane %v6954_v47, 2  ;;  %v1776_v7 = vrot.slane %v7126_v19, 2  ;;  %v7261_v21 = vpack.i.bf16 %v1453_v17, %v1451_v4  ;;  %v1761_v13 = vsel %vm1736_vm5, %v1758_v53, %v1760_v8 }
 0x1c5   : > { %5539 = vrot.lane.b32.xlu1 %v7222_v31, %s6733_s7  ;;  %v1766_v57 = vsel %vm1736_vm5, %v1764_v28, %v1765_v39  ;;  %v7264_v51 = vpop.trf.xlu0  ;;  %v1763_v36 = vsel %vm1736_vm5, %v1760_v8, %v1762_v45  ;;  %v1769_v35 = vrot.slane %v7089_v37, 2  ;;  %v1771_v48 = vrot.slane %v7184_v29, 2 }
 0x1c6   : > { %5429 = vrot.lane.b32.xlu0 %v7229_v32, %s6733_s7  ;;  %11206 = vst [vmem:[#allocation60_spill] sm:$0xff] %v7261_v21  ;;  %v7272_v19 = vpack.i.bf16 %v1768_v3, %v1766_v57  ;;  %v1775_v17 = vsel %vm1736_vm5, %v1773_v20, %v1774_v33  ;;  %v1782_v4 = vrot.slane %v6986_v62, 2  ;;  %v1783_v39 = vrot.slane %v6983_v61, 2 }
 0x1c7   : > { %v1777_v28 = vsel %vm1736_vm5, %v1774_v33, %v1776_v7  ;;  %v1785_v53 = vrot.slane %v7164_v15, 2  ;;  %v7281_v8 = vpack.i.bf16 %v1763_v36, %v1761_v13  ;;  %v1778_v29 = vrot.slane %v7112_v44, 2 }
 0x1c8   : > { %11207 = vst [vmem:[#allocation61_spill] sm:$0xff] %v7272_v19  ;;  %v1780_v3 = vrot.slane %v7196_v42, 2  ;;  %v1770_v45 = vsel %vm1736_vm5, %v1767_v34, %v1769_v35  ;;  %v1772_v20 = vsel %vm1736_vm5, %v1769_v35, %v1771_v48  ;;  %v7289_v57 = vpack.i.bf16 %v1777_v28, %v1775_v17 }
 0x1c9   : > { %5544 = vrot.lane.b32.xlu1 %v7241_v18, %s6733_s7  ;;  %v7291_v33 = vpop.trf.xlu0  ;;  %v1784_v15 = vsel %vm1736_vm5, %v1782_v4, %v1783_v39  ;;  %v1786_v13 = vsel %vm1736_vm5, %v1783_v39, %v1785_v53  ;;  %v7297_v36 = vpack.i.bf16 %v1772_v20, %v1770_v45  ;;  %v1779_v42 = vsel %vm1736_vm5, %v1776_v7, %v1778_v29 }
 0x1ca   : > { %5439 = vrot.lane.b32.xlu0 %v7251_v50, %s6734_s8  ;;  %11208 = vst [vmem:[#allocation62_spill] sm:$0xff] %v7289_v57  ;;  %11209 = vst [vmem:[#allocation63_spill] sm:$0xff] %v7291_v33  ;;  %v1781_v48 = vsel %vm1736_vm5, %v1778_v29, %v1780_v3  ;;  %v1787_v34 = vrot.slane %v7149_v25, 2  ;;  %v1789_v35 = vrot.slane %v7218_v0, 2  ;;  %v7305_v17 = vpack.i.bf16 %v1786_v13, %v1784_v15 }
 0x1cb   : > { %11210 = vst [vmem:[#allocation64_spill] sm:$0xff] %v7297_v36  ;;  %v7309_v4 = vpack.i.bf16 %v1781_v48, %v1779_v42  ;;  %v5253_v29 = vunpack.i.l.bf16 %v6959_v49  ;;  %v1405_v3 = vrot.slane %v7023_v52, 1  ;;  %v1407_v45 = vrot.slane %v7030_v55, 1 }
 0x1cc   : > { %11211 = vst [vmem:[#allocation65_spill] sm:$0xff] %v7305_v17  ;;  %v1788_v7 = vsel %vm1736_vm5, %v1785_v53, %v1787_v34  ;;  %v1790_v28 = vsel %vm1736_vm5, %v1787_v34, %v1789_v35  ;;  %v5248_v53 = vunpack.i.l.bf16 %v6931_v30  ;;  %v5219_v13 = vunpack.i.l.bf16 %v6908_v9 }
 0x1cd   : > { %5549 = vrot.lane.b32.xlu1 %v7261_v21, %s6733_s7  ;;  %11212 = vst [vmem:[#allocation66_spill] sm:$0xff] %v7309_v4  ;;  %v7311_v39 = vpop.trf.xlu0  ;;  %v7319_v0 = vpack.i.bf16 %v1790_v28, %v1788_v7  ;;  %v5214_v42 = vunpack.i.l.bf16 %v6893_v63  ;;  %v5251_v48 = vunpack.i.h.bf16 %v6931_v30  ;;  %v5256_v35 = vunpack.i.h.bf16 %v6959_v49 }
 0x1ce   : > { %5444 = vrot.lane.b32.xlu0 %v7272_v19, %s6734_s8  ;;  %11213 = vst [vmem:[#allocation67_spill] sm:$0xff] %v7311_v39  ;;  %v1191_v34 = vrot.slane %v5248_v53, 7  ;;  %v7343_v7 = vrot.slane %v5253_v29, 7  ;;  %v11215_v55 = vrot.slane %v6863_v38, 1  ;;  %v1168_v30 = vrot.slane %v5219_v13, 7 }
 0x1cf   : > { %11214 = vst [vmem:[#allocation68_spill] sm:$0xff] %v7319_v0  ;;  %v5275_v53 = vunpack.i.l.bf16 %v7200_v60  ;;  %v1166_v52 = vrot.slane %v5214_v42, 7  ;;  %v1198_v49 = vrot.slane %v5251_v48, 7  ;;  %v7356_v38 = vrot.slane %v5256_v35, 7 }
 0x1d0   : > { %v1406_v28 = vsel %vm1399_vm4, %v11215_v55, %v1405_v3  ;;  %v5273_v42 = vunpack.i.h.bf16 %v7166_v16  ;;  %v1464_v62 = vrot.slane %v7105_v10, 1 }
 0x1d1   : > { %5574 = vrot.lane.b32.xlu1 %v7281_v8, %s6734_s8  ;;  %v7323_v15 = vpop.trf.xlu0  ;;  %v7370_v48 = vrot.slane %v5275_v53, 7  ;;  %v7373_v35 = vsel %vm1120_vm3, %v1166_v52, %v1168_v30  ;;  %v7389_v53 = vsel %vm1120_vm3, 0.0, %v1198_v49 }
 0x1d2   : > { %5449 = vrot.lane.b32.xlu0 %v7289_v57, %s6734_s8  ;;  %11218 = vst [vmem:[#allocation71_spill] sm:$0xff] %v7373_v35  ;;  %11221 = vst [vmem:[#allocation74_spill] sm:$0xff] %v7389_v53 }
 0x1d5   : > { %5579 = vrot.lane.b32.xlu1 %v7297_v36, %s6734_s8  ;;  %v7335_v20 = vpop.trf.xlu0 }
 0x1d6   : > { %5454 = vrot.lane.b32.xlu0 %v7305_v17, %s6734_s8 }
 0x1d9   : > { %5584 = vrot.lane.b32.xlu1 %v7309_v4, %s6734_s8 }
 0x1da   : > { %5464 = vrot.lane.b32.xlu0 %v6974_v56, %s6735_s10  ;;  %v1455_v56 = vrot.slane %v7078_v46, 1 }
 0x1dd   : > { %5589 = vrot.lane.b32.xlu1 %v7319_v0, %s6734_s8  ;;  %v1481_v0 = vrot.slane %v7160_v11, 1 }
 0x1de   : > { %5469 = vrot.lane.b32.xlu0 %v7000_v5, %s6735_s10  ;;  %v5222_v5 = vunpack.i.h.bf16 %v6908_v9  ;;  %v7361_v9 = vsel %vm1120_vm3, %v1191_v34, %v7343_v7 }
 0x1df   : > { %11216 = vst [vmem:[#allocation69_spill] sm:$0xff] %v7361_v9 }
 0x1e0   : > { %v1175_v13 = vrot.slane %v5222_v5, 7 }
 0x1e1   : > { %5614 = vrot.lane.b32.xlu1 %v7190_v14, %s6735_s10 }
 0x1e2   : > { %5474 = vrot.lane.b32.xlu0 %v7207_v22, %s6735_s10  ;;  %v1408_v22 = vsel %vm1399_vm4, %v1405_v3, %v1407_v45  ;;  %v5270_v3 = vunpack.i.l.bf16 %v7166_v16  ;;  %v7364_v45 = vsel %vm1120_vm3, 0.0, %v1191_v34  ;;  %v7382_v16 = vsel %vm1120_vm3, %v7053_v59, %v1166_v52 }
 0x1e3   : > { %v5483_v29 = vpack.i.bf16 %v1408_v22, %v1406_v28  ;;  %11217 = vst [vmem:[#allocation70_spill] sm:$0xff] %v7364_v45  ;;  %v5278_v22 = vunpack.i.h.bf16 %v7200_v60  ;;  %v5236_v28 = vunpack.i.l.bf16 %v7091_v41  ;;  %v5513_v5 = vpack.i.bf16 %v7361_v9, %v7364_v45  ;;  %11219 = vst [vmem:[#allocation72_spill] sm:$0xff] %v7382_v16 }
 0x1e4   : > { %v1205_v34 = vrot.slane %v5270_v3, 7  ;;  %v7386_v60 = vsel %vm1120_vm3, %v1198_v49, %v7356_v38  ;;  %v1212_v3 = vrot.slane %v5273_v42, 7  ;;  %v5239_v49 = vunpack.i.h.bf16 %v7091_v41 }
 0x1e5   : > { %5619 = vrot.lane.b32.xlu1 %v7222_v31, %s6735_s10  ;;  %v5217_v31 = vunpack.i.h.bf16 %v6893_v63  ;;  %v5241_v63 = vunpack.i.l.bf16 %v7139_v23  ;;  %11220 = vst [vmem:[#allocation73_spill] sm:$0xff] %v7386_v60  ;;  %v1457_v25 = vrot.slane %v7382_v16, 1 }
 0x1e6   : > { %5479 = vrot.lane.b32.xlu0 %v7229_v32, %s6735_s10  ;;  %v7397_v32 = vrot.slane %v5278_v22, 7  ;;  %v7404_v52 = vsel %vm1120_vm3, %v1205_v34, %v7370_v48  ;;  %v7416_v22 = vsel %vm1120_vm3, 0.0, %v1205_v34  ;;  %v1187_v34 = vrot.slane %v5239_v49, 7 }
 0x1e7   : > { %v1173_v55 = vrot.slane %v5217_v31, 7  ;;  %v5244_v31 = vunpack.i.h.bf16 %v7139_v23  ;;  %11224 = vst [vmem:[#allocation77_spill] sm:$0xff] %v7404_v52  ;;  %v5518_v23 = vpack.i.bf16 %v7386_v60, %v7389_v53  ;;  %11226 = vst [vmem:[#allocation79_spill] sm:$0xff] %v7416_v22  ;;  %v5523_v41 = vpack.i.bf16 %v7404_v52, %v7416_v22 }
 0x1e8   : > { %v1459_v49 = vrot.slane %v7373_v35, 1  ;;  %v7470_v61 = vsel %vm1120_vm3, %v7122_v40, %v1187_v34  ;;  %v1458_v47 = vsel %vm1399_vm4, %v1455_v56, %v1457_v25 }
 0x1e9   : > { %5624 = vrot.lane.b32.xlu1 %v7241_v18, %s6735_s10  ;;  %v7400_v59 = vsel %vm1120_vm3, %v1173_v55, %v1175_v13  ;;  %v7413_v42 = vsel %vm1120_vm3, %v7074_v26, %v1173_v55  ;;  %v1189_v18 = vrot.slane %v5244_v31, 7  ;;  %v7430_v26 = vsel %vm1120_vm3, %v1212_v3, %v7397_v32  ;;  %11234 = vst [vmem:[#allocation87_spill] sm:$0xff] %v7470_v61 }
 0x1ea   : > { %5484 = vrot.lane.b32.xlu0 %v5483_v29, %s6733_s7  ;;  %v1182_v29 = vrot.slane %v5241_v63, 7  ;;  %11223 = vst [vmem:[#allocation76_spill] sm:$0xff] %v7400_v59  ;;  %v1180_v63 = vrot.slane %v5236_v28, 7  ;;  %11225 = vst [vmem:[#allocation78_spill] sm:$0xff] %v7413_v42  ;;  %v7433_v55 = vsel %vm1120_vm3, 0.0, %v1212_v3  ;;  %v7436_v28 = vsel %vm1120_vm3, %v1168_v30, 0.0 }
 0x1eb   : > { %11229 = vst [vmem:[#allocation82_spill] sm:$0xff] %v7430_v26  ;;  %v5528_v3 = vpack.i.bf16 %v7430_v26, %v7433_v55  ;;  %v1466_v2 = vrot.slane %v7413_v42, 1  ;;  %v1468_v40 = vrot.slane %v7400_v59, 1 }
 0x1ec   : > { %v7426_v14 = vsel %vm1120_vm3, %v1180_v63, %v1182_v29  ;;  %v7442_v31 = vsel %vm1120_vm3, %v7097_v43, %v1180_v63  ;;  %v7457_v43 = vsel %vm1120_vm3, %v1187_v34, %v1189_v18  ;;  %v1461_v63 = vrot.slane %v7436_v28, 1 }
 0x1ed   : > { %5629 = vrot.lane.b32.xlu1 %v7261_v21, %s6735_s10  ;;  %v7395_v21 = vpack.i.bf16 %v7373_v35, %v7382_v16  ;;  %11228 = vst [vmem:[#allocation81_spill] sm:$0xff] %v7426_v14  ;;  %11230 = vst [vmem:[#allocation83_spill] sm:$0xff] %v7442_v31  ;;  %v7452_v30 = vpack.i.bf16 %v7426_v14, %v7442_v31  ;;  %v1486_v36 = vrot.slane %v7457_v43, 1 }
 0x1ee   : > { %5514 = vrot.lane.b32.xlu0 %v5513_v5, %s6732_s6  ;;  %v7421_v5 = vpack.i.bf16 %v7400_v59, %v7413_v42  ;;  %11233 = vst [vmem:[#allocation86_spill] sm:$0xff] %v7457_v43  ;;  %v1462_v27 = vsel %vm1399_vm4, %v1459_v49, %v1461_v63  ;;  %v1475_v63 = vrot.slane %v7442_v31, 1 }
 0x1ef   : > { %11222 = vst [vmem:[#allocation75_spill] sm:$0xff] %v7395_v21  ;;  %11232 = vst [vmem:[#allocation85_spill] sm:$0xff] %v7452_v30 }
 0x1f0   : > { %11227 = vst [vmem:[#allocation80_spill] sm:$0xff] %v7421_v5 }
 0x1f1   : > { %5654 = vrot.lane.b32.xlu1 %v7395_v21, %s6732_s6 }
 0x1f2   : > { %5519 = vrot.lane.b32.xlu0 %v5518_v23, %s6732_s6  ;;  %v1454_v23 = vrot.slane %v7085_v58, 1 }
 0x1f4   : > { %v1456_v37 = vsel %vm1399_vm4, %v1454_v23, %v1455_v56  ;;  %v7485_v23 = vsel %vm1120_vm3, %v1182_v29, 0.0 }
 0x1f5   : > { %5659 = vrot.lane.b32.xlu1 %v7421_v5, %s6732_s6  ;;  %v7462_v5 = vsel %vm1120_vm3, %v1175_v13, 0.0  ;;  %v5668_v13 = vpack.i.bf16 %v7457_v43, %v7470_v61  ;;  %v7488_v56 = vpack.i.bf16 %v1458_v47, %v1456_v37  ;;  %v1469_v47 = vsel %vm1399_vm4, %v1466_v2, %v1468_v40 }
 0x1f6   : > { %5524 = vrot.lane.b32.xlu0 %v5523_v41, %s6732_s6  ;;  %v1463_v41 = vrot.slane %v7108_v12, 1  ;;  %v1470_v34 = vrot.slane %v7462_v5, 1 }
 0x1f7   : > { %11236 = vst [vmem:[#allocation89_spill] sm:$0xff] %v7488_v56 }
 0x1f8   : > { %v1471_v37 = vsel %vm1399_vm4, %v1468_v40, %v1470_v34  ;;  %v1484_v34 = vrot.slane %v7470_v61, 1 }
 0x1f9   : > { %5664 = vrot.lane.b32.xlu1 %v7452_v30, %s6732_s6  ;;  %v1460_v30 = vsel %vm1399_vm4, %v1457_v25, %v1459_v49  ;;  %v1472_v25 = vrot.slane %v7137_v24, 1  ;;  %v1473_v49 = vrot.slane %v7134_v1, 1 }
 0x1fa   : > { %5529 = vrot.lane.b32.xlu0 %v5528_v3, %s6732_s6  ;;  %v1465_v3 = vsel %vm1399_vm4, %v1463_v41, %v1464_v62  ;;  %v7499_v29 = vpack.i.bf16 %v1462_v27, %v1460_v30  ;;  %v1477_v41 = vrot.slane %v7426_v14, 1  ;;  %v1482_v27 = vrot.slane %v7157_v6, 1 }
 0x1fb   : > { %v1476_v30 = vsel %vm1399_vm4, %v1473_v49, %v1475_v63 }
 0x1fc   : > { %11238 = vst [vmem:[#allocation91_spill] sm:$0xff] %v7499_v29 }
 0x1fd   : > { %5669 = vrot.lane.b32.xlu1 %v5668_v13, %s6732_s6  ;;  %v7506_v13 = vsel %vm1120_vm3, %v1189_v18, 0.0  ;;  %v7521_v18 = vpack.i.bf16 %v1471_v37, %v1469_v47  ;;  %v1485_v47 = vsel %vm1399_vm4, %v1482_v27, %v1484_v34  ;;  %v1791_v37 = vrot.slane %v7085_v58, 2 }
 0x1fe   : > { %5554 = vrot.lane.b32.xlu0 %v7488_v56, %s6733_s7  ;;  %v1796_v58 = vrot.slane %v7373_v35, 2 }
 0x1ff   : > { %v7447_v44 = vpop.permute.xlu1 %5359  ;;  %11241 = vst [vmem:[#allocation94_spill] sm:$0xff] %v7521_v18 }
 0x200   : > { %11231 = vst [vmem:[#allocation84_spill] sm:$0xff] %v7447_v44  ;;  %v1467_v44 = vsel %vm1399_vm4, %v1464_v62, %v1466_v2  ;;  %v1479_v62 = vrot.slane %v7485_v23, 1  ;;  %v1474_v2 = vsel %vm1399_vm4, %v1472_v25, %v1473_v49  ;;  %v1488_v25 = vrot.slane %v7506_v13, 1 }
 0x201   : > { %5689 = vrot.lane.b32.xlu1 %v7499_v29, %s6733_s7  ;;  %v7531_v49 = vpack.i.bf16 %v1476_v30, %v1474_v2  ;;  %v1798_v2 = vrot.slane %v7436_v28, 2  ;;  %v1801_v28 = vrot.slane %v7105_v10, 2 }
 0x203   : > { %v7480_v21 = vpop.permute.xlu1 %5374  ;;  %11243 = vst [vmem:[#allocation96_spill] sm:$0xff] %v7531_v49 }
 0x204   : > { %11235 = vst [vmem:[#allocation88_spill] sm:$0xff] %v7480_v21  ;;  %v7495_v21 = vpop.permute.xlu0 %5334 }
 0x205   : > { %11237 = vst [vmem:[#allocation90_spill] sm:$0xff] %v7495_v21  ;;  %v7510_v21 = vpack.i.bf16 %v1467_v44, %v1465_v3  ;;  %v1478_v44 = vsel %vm1399_vm4, %v1475_v63, %v1477_v41  ;;  %v1480_v3 = vsel %vm1399_vm4, %v1477_v41, %v1479_v62  ;;  %5694 = vrot.lane.b32.xlu1 %v7521_v18, %s6733_s7  ;;  %v1794_v63 = vrot.slane %v7382_v16, 2 }
 0x206   : > { %v7540_v41 = vpack.i.bf16 %v1480_v3, %v1478_v44  ;;  %v1800_v44 = vrot.slane %v7108_v12, 2 }
 0x207   : > { %11239 = vst [vmem:[#allocation92_spill] sm:$0xff] %v7510_v21  ;;  %v7516_v40 = vpop.permute.xlu1 %5384  ;;  %5559 = vrot.lane.b32.xlu0 %v7510_v21, %s6733_s7 }
 0x208   : > { %11240 = vst [vmem:[#allocation93_spill] sm:$0xff] %v7516_v40  ;;  %v7523_v4 = vpop.permute.xlu0 %5339  ;;  %v1483_v40 = vsel %vm1399_vm4, %v1481_v0, %v1482_v27  ;;  %11244 = vst [vmem:[#allocation97_spill] sm:$0xff] %v7540_v41  ;;  %v1487_v0 = vsel %vm1399_vm4, %v1484_v34, %v1486_v36  ;;  %v1489_v27 = vsel %vm1399_vm4, %v1486_v36, %v1488_v25 }
 0x209   : > { %11242 = vst [vmem:[#allocation95_spill] sm:$0xff] %v7523_v4  ;;  %v1792_v4 = vrot.slane %v7078_v46, 2  ;;  %5699 = vrot.lane.b32.xlu1 %v7540_v41, %s6733_s7  ;;  %v7552_v16 = vpack.i.bf16 %v1485_v47, %v1483_v40  ;;  %v7561_v36 = vpack.i.bf16 %v1489_v27, %v1487_v0  ;;  %v1807_v40 = vrot.slane %v7462_v5, 2 }
 0x20a   : > { %v1797_v25 = vsel %vm1736_vm5, %v1794_v63, %v1796_v58  ;;  %v1799_v47 = vsel %vm1736_vm5, %v1796_v58, %v1798_v2  ;;  %v1809_v0 = vrot.slane %v7137_v24, 2  ;;  %v1810_v27 = vrot.slane %v7134_v1, 2 }
 0x20b   : > { %5564 = vrot.lane.b32.xlu0 %v7531_v49, %s6733_s7  ;;  %v7545_v30 = vpop.permute.xlu1 %5409  ;;  %11247 = vst [vmem:[#allocation100_spill] sm:$0xff] %v7552_v16  ;;  %v1793_v3 = vsel %vm1736_vm5, %v1791_v37, %v1792_v4  ;;  %v1795_v46 = vsel %vm1736_vm5, %v1792_v4, %v1794_v63  ;;  %11248 = vst [vmem:[#allocation101_spill] sm:$0xff] %v7561_v36  ;;  %v1805_v37 = vrot.slane %v7400_v59, 2  ;;  %v1812_v63 = vrot.slane %v7442_v31, 2 }
 0x20c   : > { %v7542_v62 = vpop.permute.xlu0 %5344  ;;  %11246 = vst [vmem:[#allocation99_spill] sm:$0xff] %v7545_v30  ;;  %v7571_v4 = vpack.i.bf16 %v1795_v46, %v1793_v3  ;;  %v1802_v35 = vsel %vm1736_vm5, %v1800_v44, %v1801_v28  ;;  %v7582_v58 = vpack.i.bf16 %v1799_v47, %v1797_v25  ;;  %v1816_v46 = vrot.slane %v7485_v23, 2 }
 0x20d   : > { %11245 = vst [vmem:[#allocation98_spill] sm:$0xff] %v7542_v62  ;;  %v1803_v62 = vrot.slane %v7413_v42, 2  ;;  %5704 = vrot.lane.b32.xlu1 %v7561_v36, %s6733_s7  ;;  %v1808_v24 = vsel %vm1736_vm5, %v1805_v37, %v1807_v40  ;;  %v1814_v1 = vrot.slane %v7426_v14, 2  ;;  %v1811_v25 = vsel %vm1736_vm5, %v1809_v0, %v1810_v27 }
 0x20e   : > { %11250 = vst [vmem:[#allocation103_spill] sm:$0xff] %v7571_v4  ;;  %11252 = vst [vmem:[#allocation105_spill] sm:$0xff] %v7582_v58  ;;  %v1813_v47 = vsel %vm1736_vm5, %v1810_v27, %v1812_v63  ;;  %v1818_v23 = vrot.slane %v7160_v11, 2  ;;  %v1819_v31 = vrot.slane %v7157_v6, 2  ;;  %v1823_v0 = vrot.slane %v7457_v43, 2 }
 0x20f   : > { %5569 = vrot.lane.b32.xlu0 %v7552_v16, %s6733_s7  ;;  %v7573_v42 = vpop.permute.xlu1 %5414  ;;  %v1804_v5 = vsel %vm1736_vm5, %v1801_v28, %v1803_v62  ;;  %v1806_v3 = vsel %vm1736_vm5, %v1803_v62, %v1805_v37  ;;  %v1821_v62 = vrot.slane %v7470_v61, 2  ;;  %v1815_v37 = vsel %vm1736_vm5, %v1812_v63, %v1814_v1 }
 0x210   : > { %v7563_v34 = vpop.permute.xlu0 %5349  ;;  %11251 = vst [vmem:[#allocation104_spill] sm:$0xff] %v7573_v42  ;;  %v7592_v44 = vpack.i.bf16 %v1804_v5, %v1802_v35  ;;  %v7603_v40 = vpack.i.bf16 %v1808_v24, %v1806_v3  ;;  %v1825_v35 = vrot.slane %v7506_v13, 2  ;;  %v1817_v5 = vsel %vm1736_vm5, %v1814_v1, %v1816_v46 }
 0x211   : > { %11249 = vst [vmem:[#allocation102_spill] sm:$0xff] %v7563_v34  ;;  %5729 = vrot.lane.b32.xlu1 %v7582_v58, %s6734_s8  ;;  %v7611_v27 = vpack.i.bf16 %v1813_v47, %v1811_v25  ;;  %v1820_v24 = vsel %vm1736_vm5, %v1818_v23, %v1819_v31  ;;  %v1822_v3 = vsel %vm1736_vm5, %v1819_v31, %v1821_v62  ;;  %v1499_v6 = vrot.slane %v7389_v53, 1 }
 0x212   : > { %11254 = vst [vmem:[#allocation107_spill] sm:$0xff] %v7592_v44  ;;  %11256 = vst [vmem:[#allocation109_spill] sm:$0xff] %v7603_v40  ;;  %v7621_v13 = vpack.i.bf16 %v1817_v5, %v1815_v37  ;;  %v1824_v1 = vsel %vm1736_vm5, %v1821_v62, %v1823_v0  ;;  %v1826_v63 = vsel %vm1736_vm5, %v1823_v0, %v1825_v35  ;;  %v11265_v62 = vld [vmem:[#allocation31_spill] sm:$0xff]  ;;  %v11268_v0 = vld [vmem:[#allocation32_spill] sm:$0xff] }
 0x213   : > { %5594 = vrot.lane.b32.xlu0 %v7571_v4, %s6734_s8  ;;  %v7594_v28 = vpop.permute.xlu1 %5419  ;;  %11257 = vst [vmem:[#allocation110_spill] sm:$0xff] %v7611_v27  ;;  %v7627_v46 = vpack.i.bf16 %v1822_v3, %v1820_v24  ;;  %v7635_v47 = vpack.i.bf16 %v1826_v63, %v1824_v1  ;;  %v5292_v35 = vunpack.i.l.bf16 %v11265_v62  ;;  %v5297_v24 = vunpack.i.l.bf16 %v11268_v0  ;;  %v11269_v3 = vld [vmem:[#allocation24_spill] sm:$0xff]  ;;  %v11270_v63 = vld [vmem:[#allocation27_spill] sm:$0xff] }
 0x214   : > { %v7585_v2 = vpop.permute.xlu0 %5354  ;;  %11255 = vst [vmem:[#allocation108_spill] sm:$0xff] %v7594_v28  ;;  %11260 = vst [vmem:[#allocation113_spill] sm:$0xff] %v7621_v13  ;;  %v5258_v1 = vunpack.i.l.bf16 %v11269_v3  ;;  %v5263_v10 = vunpack.i.l.bf16 %v11270_v63  ;;  %v5288_v28 = vunpack.i.h.bf16 %v7264_v51 }
 0x215   : > { %11253 = vst [vmem:[#allocation106_spill] sm:$0xff] %v7585_v2  ;;  %5734 = vrot.lane.b32.xlu1 %v7603_v40, %s6734_s8  ;;  %11263 = vst [vmem:[#allocation116_spill] sm:$0xff] %v7635_v47 }
 0x217   : > { %5599 = vrot.lane.b32.xlu0 %v7592_v44, %s6734_s8  ;;  %v7613_v14 = vpop.permute.xlu1 %5434 }
 0x218   : > { %11258 = vst [vmem:[#allocation111_spill] sm:$0xff] %v7613_v14  ;;  %v7615_v59 = vpop.permute.xlu0 %5364  ;;  %v5283_v14 = vunpack.i.h.bf16 %v7234_v54 }
 0x219   : > { %11259 = vst [vmem:[#allocation112_spill] sm:$0xff] %v7615_v59  ;;  %5739 = vrot.lane.b32.xlu1 %v7621_v13, %s6734_s8 }
 0x21b   : > { %5604 = vrot.lane.b32.xlu0 %v7611_v27, %s6734_s8  ;;  %v7629_v25 = vpop.permute.xlu1 %5459 }
 0x21c   : > { %11261 = vst [vmem:[#allocation114_spill] sm:$0xff] %v7629_v25  ;;  %v7633_v31 = vpop.permute.xlu0 %5369  ;;  %v5300_v25 = vunpack.i.h.bf16 %v11268_v0 }
 0x21d   : > { %11262 = vst [vmem:[#allocation115_spill] sm:$0xff] %v7633_v31  ;;  %5744 = vrot.lane.b32.xlu1 %v7635_v47, %s6734_s8  ;;  %v1517_v47 = vrot.slane %v7433_v55, 1 }
 0x21f   : > { %5609 = vrot.lane.b32.xlu0 %v7627_v46, %s6734_s8  ;;  %v7639_v23 = vpop.permute.xlu1 %5489 }
 0x220   : > { %11264 = vst [vmem:[#allocation117_spill] sm:$0xff] %v7639_v23  ;;  %v7644_v37 = vpop.permute.xlu0 %5379  ;;  %v1219_v23 = vrot.slane %v5292_v35, 7  ;;  %v1196_v35 = vrot.slane %v5263_v10, 7  ;;  %v5319_v10 = vunpack.i.l.bf16 %v7311_v39 }
 0x221   : > { %11266 = vst [vmem:[#allocation31_spill] sm:$0xff] %v7644_v37  ;;  %5769 = vrot.lane.b32.xlu1 %v7499_v29, %s6735_s10  ;;  %v1194_v37 = vrot.slane %v5258_v1, 7  ;;  %v5314_v1 = vunpack.i.l.bf16 %v7291_v33 }
 0x223   : > { %5634 = vrot.lane.b32.xlu0 %v7488_v56, %s6735_s10  ;;  %v7648_v5 = vpop.permute.xlu1 %5494  ;;  %v5295_v56 = vunpack.i.h.bf16 %v11265_v62  ;;  %v5266_v62 = vunpack.i.h.bf16 %v11270_v63 }
 0x224   : > { %11267 = vst [vmem:[#allocation118_spill] sm:$0xff] %v7648_v5  ;;  %v7656_v31 = vpop.permute.xlu0 %5389  ;;  %v7663_v5 = vrot.slane %v5297_v24, 7  ;;  %v7678_v24 = vrot.slane %v5300_v25, 7  ;;  %v7694_v25 = vsel %vm1120_vm3, %v1194_v37, %v1196_v35 }
 0x225   : > { %11271 = vst [vmem:[#allocation32_spill] sm:$0xff] %v7656_v31  ;;  %5774 = vrot.lane.b32.xlu1 %v7521_v18, %s6735_s10  ;;  %v1226_v2 = vrot.slane %v5295_v56, 7  ;;  %v7670_v31 = vsel %vm1120_vm3, 0.0, %v1219_v23  ;;  %v1203_v63 = vrot.slane %v5266_v62, 7  ;;  %11278 = vst [vmem:[#allocation123_spill] sm:$0xff] %v7694_v25 }
 0x226   : > { %11273 = vst [vmem:[#allocation27_spill] sm:$0xff] %v7670_v31 }
 0x227   : > { %5639 = vrot.lane.b32.xlu0 %v7510_v21, %s6735_s10  ;;  %v7660_v29 = vpop.permute.xlu1 %5499  ;;  %v5261_v21 = vunpack.i.h.bf16 %v11269_v3  ;;  %v7682_v3 = vsel %vm1120_vm3, %v1219_v23, %v7663_v5  ;;  %v5285_v23 = vunpack.i.l.bf16 %v7264_v51  ;;  %v7704_v62 = vsel %vm1120_vm3, 0.0, %v1226_v2 }
 0x228   : > { %11272 = vst [vmem:[#allocation24_spill] sm:$0xff] %v7660_v29  ;;  %v7672_v18 = vpop.permute.xlu0 %5394  ;;  %11276 = vst [vmem:[#allocation121_spill] sm:$0xff] %v7682_v3 }
 0x229   : > { %11274 = vst [vmem:[#allocation119_spill] sm:$0xff] %v7672_v18  ;;  %5779 = vrot.lane.b32.xlu1 %v7540_v41, %s6735_s10  ;;  %v1201_v56 = vrot.slane %v5261_v21, 7  ;;  %v7691_v41 = vsel %vm1120_vm3, %v7343_v7, %v1194_v37  ;;  %v5673_v21 = vpack.i.bf16 %v7682_v3, %v7670_v31  ;;  %11280 = vst [vmem:[#allocation125_spill] sm:$0xff] %v7704_v62  ;;  %v1233_v18 = vrot.slane %v5314_v1, 7 }
 0x22a   : > { %11277 = vst [vmem:[#allocation122_spill] sm:$0xff] %v7691_v41  ;;  %v7708_v7 = vsel %vm1120_vm3, %v1226_v2, %v7678_v24  ;;  %v7710_v37 = vrot.slane %v5319_v10, 7  ;;  %v1210_v2 = vrot.slane %v5285_v23, 7  ;;  %v1490_v10 = vrot.slane %v7364_v45, 1 }
 0x22b   : > { %5644 = vrot.lane.b32.xlu0 %v7531_v49, %s6735_s10  ;;  %v7676_v0 = vpop.permute.xlu1 %5504  ;;  %v5280_v49 = vunpack.i.l.bf16 %v7234_v54  ;;  %11281 = vst [vmem:[#allocation126_spill] sm:$0xff] %v7708_v7  ;;  %v5678_v1 = vpack.i.bf16 %v7708_v7, %v7704_v62  ;;  %v7734_v54 = vsel %vm1120_vm3, 0.0, %v1233_v18 }
 0x22c   : > { %11275 = vst [vmem:[#allocation120_spill] sm:$0xff] %v7676_v0  ;;  %v7697_v0 = vpop.permute.xlu0 %5399 }
 0x22d   : > { %11279 = vst [vmem:[#allocation124_spill] sm:$0xff] %v7697_v0  ;;  %5784 = vrot.lane.b32.xlu1 %v7561_v36, %s6735_s10  ;;  %v5798_v0 = vpack.i.bf16 %v7694_v25, %v7691_v41  ;;  %v1208_v59 = vrot.slane %v5280_v49, 7  ;;  %v7740_v49 = vsel %vm1120_vm3, %v1233_v18, %v7710_v37  ;;  %v1509_v36 = vrot.slane %v7404_v52, 1 }
 0x22f   : > { %5649 = vrot.lane.b32.xlu0 %v7552_v16, %s6735_s10  ;;  %v7712_v29 = vpop.permute.xlu1 %5509  ;;  %v7718_v16 = vsel %vm1120_vm3, %v1201_v56, %v1203_v63  ;;  %v7754_v61 = vsel %vm1120_vm3, %v1208_v59, %v1210_v2 }
 0x230   : > { %11282 = vst [vmem:[#allocation127_spill] sm:$0xff] %v7712_v29  ;;  %11283 = vst [vmem:[#allocation128_spill] sm:$0xff] %v7718_v16  ;;  %v7722_v34 = vpop.permute.xlu0 %5404  ;;  %v7731_v29 = vsel %vm1120_vm3, %v7356_v38, %v1201_v56  ;;  %v1215_v38 = vrot.slane %v5283_v14, 7  ;;  %v7751_v56 = vsel %vm1120_vm3, %v7370_v48, %v1208_v59  ;;  %v1500_v48 = vrot.slane %v7386_v60, 1 }
 0x231   : > { %11284 = vst [vmem:[#allocation129_spill] sm:$0xff] %v7722_v34  ;;  %5799 = vrot.lane.b32.xlu1 %v5798_v0, %s6732_s6  ;;  %11285 = vst [vmem:[#allocation130_spill] sm:$0xff] %v7731_v29  ;;  %v1493_v0 = vrot.slane %v7691_v41, 1  ;;  %v5803_v23 = vpack.i.bf16 %v7718_v16, %v7731_v29  ;;  %v7747_v34 = vsel %vm1120_vm3, %v1196_v35, 0.0 }
 0x232   : > { %11287 = vst [vmem:[#allocation132_spill] sm:$0xff] %v7751_v56  ;;  %v7781_v42 = vsel %vm1120_vm3, %v7397_v32, %v1215_v38  ;;  %v1501_v39 = vsel %vm1399_vm4, %v1499_v6, %v1500_v48  ;;  %v1511_v32 = vrot.slane %v7751_v56, 1  ;;  %v1504_v6 = vrot.slane %v7718_v16, 1 }
 0x233   : > { %5674 = vrot.lane.b32.xlu0 %v5673_v21, %s6732_s6  ;;  %v1491_v21 = vrot.slane %v7361_v9, 1  ;;  %v7736_v51 = vpop.permute.xlu1 %5534  ;;  %11291 = vst [vmem:[#allocation136_spill] sm:$0xff] %v7781_v42 }
 0x234   : > { %11286 = vst [vmem:[#allocation131_spill] sm:$0xff] %v7736_v51  ;;  %v1217_v51 = vrot.slane %v5288_v28, 7  ;;  %v7756_v18 = vpop.permute.xlu0 %5424  ;;  %v1502_v28 = vrot.slane %v7731_v29, 1  ;;  %v1512_v12 = vsel %vm1399_vm4, %v1509_v36, %v1511_v32 }
 0x235   : > { %11288 = vst [vmem:[#allocation133_spill] sm:$0xff] %v7756_v18  ;;  %5804 = vrot.lane.b32.xlu1 %v5803_v23, %s6732_s6  ;;  %v1492_v35 = vsel %vm1399_vm4, %v1490_v10, %v1491_v21  ;;  %v1494_v14 = vsel %vm1399_vm4, %v1491_v21, %v1493_v0  ;;  %v5808_v23 = vpack.i.bf16 %v7754_v61, %v7751_v56  ;;  %v7775_v18 = vsel %vm1120_vm3, %v1203_v63, 0.0 }
 0x236   : > { %v1497_v10 = vrot.slane %v7747_v34, 1  ;;  %v1495_v21 = vrot.slane %v7694_v25, 1  ;;  %v7791_v63 = vsel %vm1120_vm3, %v1215_v38, %v1217_v51  ;;  %v1503_v33 = vsel %vm1399_vm4, %v1500_v48, %v1502_v28 }
 0x237   : > { %5679 = vrot.lane.b32.xlu0 %v5678_v1, %s6732_s6  ;;  %v7761_v1 = vpack.i.bf16 %v7740_v49, %v7734_v54  ;;  %v7770_v59 = vpop.permute.xlu1 %5539  ;;  %11293 = vst [vmem:[#allocation138_spill] sm:$0xff] %v7791_v63  ;;  %v7807_v48 = vsel %vm1120_vm3, %v1210_v2, 0.0  ;;  %v7812_v11 = vpack.i.bf16 %v1503_v33, %v1501_v39  ;;  %v1505_v39 = vsel %vm1399_vm4, %v1502_v28, %v1504_v6 }
 0x238   : > { %11290 = vst [vmem:[#allocation135_spill] sm:$0xff] %v7770_v59  ;;  %v7783_v30 = vpop.permute.xlu0 %5429  ;;  %v1508_v59 = vrot.slane %v7416_v22, 1  ;;  %v1498_v38 = vsel %vm1399_vm4, %v1495_v21, %v1497_v10  ;;  %v1520_v10 = vrot.slane %v7781_v42, 1  ;;  %v1515_v33 = vrot.slane %v7807_v48, 1 }
 0x239   : > { %11289 = vst [vmem:[#allocation134_spill] sm:$0xff] %v7761_v1  ;;  %11292 = vst [vmem:[#allocation137_spill] sm:$0xff] %v7783_v30  ;;  %5809 = vrot.lane.b32.xlu1 %v5808_v23, %s6732_s6  ;;  %v1496_v23 = vsel %vm1399_vm4, %v1493_v0, %v1495_v21  ;;  %v1518_v0 = vrot.slane %v7430_v26, 1 }
 0x23a   : > { %v7823_v21 = vpack.i.bf16 %v1498_v38, %v1496_v23  ;;  %v1827_v23 = vrot.slane %v7364_v45, 2  ;;  %v1828_v38 = vrot.slane %v7361_v9, 2  ;;  %v1522_v9 = vrot.slane %v7791_v63, 1 }
 0x23b   : > { %5684 = vrot.lane.b32.xlu0 %v7761_v1, %s6732_s6  ;;  %v7786_v1 = vpack.i.bf16 %v1494_v14, %v1492_v35  ;;  %v7798_v30 = vpop.permute.xlu1 %5544  ;;  %v5813_v35 = vpack.i.bf16 %v7791_v63, %v7781_v42  ;;  %v1506_v14 = vrot.slane %v7775_v18, 1  ;;  %v1519_v28 = vsel %vm1399_vm4, %v1517_v47, %v1518_v0 }
 0x23c   : > { %11294 = vst [vmem:[#allocation139_spill] sm:$0xff] %v7798_v30  ;;  %v7809_v43 = vpop.permute.xlu0 %5439  ;;  %v1510_v30 = vsel %vm1399_vm4, %v1508_v59, %v1509_v36  ;;  %v1513_v36 = vrot.slane %v7754_v61, 1 }
 0x23d   : > { %11295 = vst [vmem:[#allocation140_spill] sm:$0xff] %v7809_v43  ;;  %5814 = vrot.lane.b32.xlu1 %v5813_v35, %s6732_s6  ;;  %v1507_v59 = vsel %vm1399_vm4, %v1504_v6, %v1506_v14  ;;  %v7830_v35 = vsel %vm1120_vm3, %v1217_v51, 0.0  ;;  %v7836_v13 = vpack.i.bf16 %v1512_v12, %v1510_v30  ;;  %v1521_v14 = vsel %vm1399_vm4, %v1518_v0, %v1520_v10 }
 0x23e   : > { %v1830_v6 = vrot.slane %v7691_v41, 2  ;;  %v1524_v12 = vrot.slane %v7830_v35, 1  ;;  %v1514_v30 = vsel %vm1399_vm4, %v1511_v32, %v1513_v36  ;;  %v7857_v0 = vpack.i.bf16 %v1521_v14, %v1519_v28 }
 0x23f   : > { %5709 = vrot.lane.b32.xlu0 %v7786_v1, %s6733_s7  ;;  %v7821_v2 = vpop.permute.xlu1 %5549  ;;  %v1829_v41 = vsel %vm1736_vm5, %v1827_v23, %v1828_v38  ;;  %v1839_v32 = vrot.slane %v7731_v29, 2  ;;  %v11303_v29 = vld [vmem:[#allocation44_spill] sm:$0xff] }
 0x240   : > { %11296 = vst [vmem:[#allocation141_spill] sm:$0xff] %v7821_v2  ;;  %v7832_v43 = vpop.permute.xlu0 %5444  ;;  %v7847_v2 = vpack.i.bf16 %v1507_v59, %v1505_v39  ;;  %11300 = vst [vmem:[#allocation145_spill] sm:$0xff] %v7857_v0  ;;  %v1831_v39 = vsel %vm1736_vm5, %v1828_v38, %v1830_v6  ;;  %v1836_v59 = vrot.slane %v7389_v53, 2  ;;  %v1523_v38 = vsel %vm1399_vm4, %v1520_v10, %v1522_v9 }
 0x241   : > { %11297 = vst [vmem:[#allocation142_spill] sm:$0xff] %v7832_v43  ;;  %5819 = vrot.lane.b32.xlu1 %v7823_v21, %s6733_s7  ;;  %v1516_v43 = vsel %vm1399_vm4, %v1513_v36, %v1515_v33  ;;  %v1834_v33 = vrot.slane %v7747_v34, 2  ;;  %v11301_v36 = vld [vmem:[#allocation35_spill] sm:$0xff]  ;;  %v1525_v14 = vsel %vm1399_vm4, %v1522_v9, %v1524_v12  ;;  %v5310_v53 = vunpack.i.h.bf16 %v11303_v29 }
 0x242   : > { %v5302_v45 = vunpack.i.l.bf16 %v11301_v36  ;;  %v7870_v28 = vpack.i.bf16 %v1516_v43, %v1514_v30  ;;  %v5305_v23 = vunpack.i.h.bf16 %v11301_v36  ;;  %v5307_v34 = vunpack.i.l.bf16 %v11303_v29 }
 0x243   : > { %5714 = vrot.lane.b32.xlu0 %v7812_v11, %s6733_s7  ;;  %v7845_v51 = vpop.permute.xlu1 %5574  ;;  %v1845_v43 = vrot.slane %v7416_v22, 2  ;;  %v1846_v9 = vrot.slane %v7404_v52, 2  ;;  %v1848_v12 = vrot.slane %v7751_v56, 2  ;;  %v1843_v36 = vrot.slane %v7775_v18, 2 }
 0x244   : > { %11298 = vst [vmem:[#allocation143_spill] sm:$0xff] %v7845_v51  ;;  %v7853_v47 = vpop.permute.xlu0 %5449  ;;  %v1837_v51 = vrot.slane %v7386_v60, 2  ;;  %v1832_v60 = vrot.slane %v7694_v25, 2  ;;  %v1222_v29 = vrot.slane %v5302_v45, 7  ;;  %v1231_v52 = vrot.slane %v5310_v53, 7 }
 0x245   : > { %11299 = vst [vmem:[#allocation144_spill] sm:$0xff] %v7853_v47  ;;  %5824 = vrot.lane.b32.xlu1 %v7847_v2, %s6733_s7  ;;  %v1224_v25 = vrot.slane %v5307_v34, 7  ;;  %v1854_v18 = vrot.slane %v7433_v55, 2 }
 0x246   : > { %v1838_v30 = vsel %vm1736_vm5, %v1836_v59, %v1837_v51  ;;  %v1840_v10 = vsel %vm1736_vm5, %v1837_v51, %v1839_v32  ;;  %v1833_v22 = vsel %vm1736_vm5, %v1830_v6, %v1832_v60  ;;  %v1835_v59 = vsel %vm1736_vm5, %v1832_v60, %v1834_v33 }
 0x247   : > { %5719 = vrot.lane.b32.xlu0 %v7836_v13, %s6733_s7  ;;  %v7868_v47 = vpop.permute.xlu1 %5579  ;;  %v1841_v51 = vrot.slane %v7718_v16, 2  ;;  %v7903_v45 = vpack.i.bf16 %v1840_v10, %v1838_v30  ;;  %v1855_v6 = vrot.slane %v7430_v26, 2  ;;  %v1857_v60 = vrot.slane %v7781_v42, 2 }
 0x248   : > { %11302 = vst [vmem:[#allocation35_spill] sm:$0xff] %v7868_v47  ;;  %v7878_v40 = vpop.permute.xlu0 %5454  ;;  %v7882_v47 = vpack.i.bf16 %v1831_v39, %v1829_v41  ;;  %v7894_v41 = vpack.i.bf16 %v1525_v14, %v1523_v38  ;;  %v1229_v39 = vrot.slane %v5305_v23, 7  ;;  %v1847_v38 = vsel %vm1736_vm5, %v1845_v43, %v1846_v9 }
 0x249   : > { %11304 = vst [vmem:[#allocation44_spill] sm:$0xff] %v7878_v40  ;;  %5829 = vrot.lane.b32.xlu1 %v7870_v28, %s6733_s7  ;;  %v1849_v23 = vsel %vm1736_vm5, %v1846_v9, %v1848_v12  ;;  %v7912_v53 = vsel %vm1120_vm3, %v7663_v5, %v1222_v29  ;;  %v7915_v33 = vsel %vm1120_vm3, %v1224_v25, 0.0  ;;  %v7921_v34 = vpack.i.bf16 %v1835_v59, %v1833_v22 }
 0x24a   : > { %11305 = vst [vmem:[#allocation146_spill] sm:$0xff] %v7894_v41  ;;  %11306 = vst [vmem:[#allocation147_spill] sm:$0xff] %v7912_v53  ;;  %v1850_v43 = vrot.slane %v7754_v61, 2  ;;  %v7925_v30 = vsel %vm1120_vm3, %v1231_v52, 0.0  ;;  %v1852_v10 = vrot.slane %v7807_v48, 2  ;;  %v1842_v5 = vsel %vm1736_vm5, %v1839_v32, %v1841_v51 }
 0x24b   : > { %5724 = vrot.lane.b32.xlu0 %v7857_v0, %s6733_s7  ;;  %v7892_v40 = vpop.permute.xlu1 %5584  ;;  %v1844_v9 = vsel %vm1736_vm5, %v1841_v51, %v1843_v36  ;;  %v7932_v42 = vsel %vm1120_vm3, %v7678_v24, %v1229_v39  ;;  %v7935_v26 = vsel %vm1120_vm3, %v1222_v29, %v1224_v25  ;;  %v7938_v22 = vsel %vm1120_vm3, %v1229_v39, %v1231_v52 }
 0x24c   : > { %v7899_v56 = vpop.permute.xlu0 %5464  ;;  %11308 = vst [vmem:[#allocation149_spill] sm:$0xff] %v7932_v42  ;;  %11309 = vst [vmem:[#allocation150_spill] sm:$0xff] %v7935_v26  ;;  %v7944_v48 = vpack.i.bf16 %v1849_v23, %v1847_v38  ;;  %v1870_v32 = vrot.slane %v7915_v33, 2  ;;  %v1856_v36 = vsel %vm1736_vm5, %v1854_v18, %v1855_v6  ;;  %v1858_v24 = vsel %vm1736_vm5, %v1855_v6, %v1857_v60 }
 0x24d   : > { %5834 = vrot.lane.b32.xlu1 %v7894_v41, %s6733_s7  ;;  %11310 = vst [vmem:[#allocation151_spill] sm:$0xff] %v7938_v22  ;;  %v1868_v51 = vrot.slane %v7935_v26, 2  ;;  %v1879_v25 = vrot.slane %v7925_v30, 2  ;;  %v1861_v52 = vrot.slane %v7830_v35, 2  ;;  %v7956_v39 = vpack.i.bf16 %v1844_v9, %v1842_v5 }
 0x24e   : > { %v1851_v38 = vsel %vm1736_vm5, %v1848_v12, %v1850_v43  ;;  %v1853_v23 = vsel %vm1736_vm5, %v1850_v43, %v1852_v10  ;;  %v1859_v18 = vrot.slane %v7791_v63, 2  ;;  %v1866_v6 = vrot.slane %v7912_v53, 2 }
 0x24f   : > { %5749 = vrot.lane.b32.xlu0 %v7882_v47, %s6734_s8  ;;  %v7919_v14 = vpop.permute.xlu1 %5589  ;;  %v7967_v35 = vpack.i.bf16 %v1858_v24, %v1856_v36  ;;  %v1875_v5 = vrot.slane %v7932_v42, 2  ;;  %v1871_v12 = vsel %vm1736_vm5, %v1868_v51, %v1870_v32  ;;  %v7976_v10 = vpack.i.bf16 %v1853_v23, %v1851_v38 }
 0x250   : > { %11307 = vst [vmem:[#allocation148_spill] sm:$0xff] %v7919_v14  ;;  %v7940_v59 = vpop.permute.xlu0 %5469  ;;  %v1869_v9 = vsel %vm1736_vm5, %v1866_v6, %v1868_v51  ;;  %v1860_v63 = vsel %vm1736_vm5, %v1857_v60, %v1859_v18  ;;  %v1526_v51 = vrot.slane %v7670_v31, 1  ;;  %v1527_v38 = vrot.slane %v7682_v3, 1 }
 0x251   : > { %11311 = vst [vmem:[#allocation152_spill] sm:$0xff] %v7940_v59  ;;  %5849 = vrot.lane.b32.xlu1 %v7921_v34, %s6734_s8  ;;  %v1877_v59 = vrot.slane %v7938_v22, 2  ;;  %11314 = vst [vmem:[#allocation155_spill] sm:$0xff] %v7967_v35  ;;  %v7986_v32 = vpack.i.bf16 %v1871_v12, %v1869_v9  ;;  %v1529_v23 = vrot.slane %v7912_v53, 1 }
 0x252   : > { %v1528_v9 = vsel %vm1399_vm4, %v1526_v51, %v1527_v38 }
 0x253   : > { %5754 = vrot.lane.b32.xlu0 %v7903_v45, %s6734_s8  ;;  %v7954_v29 = vpop.permute.xlu1 %5614  ;;  %v1878_v36 = vsel %vm1736_vm5, %v1875_v5, %v1877_v59  ;;  %v1880_v24 = vsel %vm1736_vm5, %v1877_v59, %v1879_v25  ;;  %11317 = vst [vmem:[#allocation158_spill] sm:$0xff] %v7986_v32  ;;  %v1530_v12 = vsel %vm1399_vm4, %v1527_v38, %v1529_v23  ;;  %v1863_v38 = vrot.slane %v7670_v31, 2 }
 0x254   : > { %11312 = vst [vmem:[#allocation153_spill] sm:$0xff] %v7954_v29  ;;  %v7963_v14 = vpop.permute.xlu0 %5474  ;;  %v7997_v59 = vpack.i.bf16 %v1880_v24, %v1878_v36  ;;  %v8016_v36 = vpack.i.bf16 %v1530_v12, %v1528_v9  ;;  %v1872_v12 = vrot.slane %v7704_v62, 2 }
 0x255   : > { %11313 = vst [vmem:[#allocation154_spill] sm:$0xff] %v7963_v14  ;;  %5854 = vrot.lane.b32.xlu1 %v7956_v39, %s6734_s8  ;;  %v1862_v14 = vsel %vm1736_vm5, %v1859_v18, %v1861_v52  ;;  %v1535_v18 = vrot.slane %v7704_v62, 1  ;;  %v5903_v62 = vpack.i.bf16 %v7935_v26, %v7912_v53 }
 0x256   : > { %v7995_v52 = vpack.i.bf16 %v1862_v14, %v1860_v63  ;;  %11320 = vst [vmem:[#allocation161_spill] sm:$0xff] %v7997_v59  ;;  %11324 = vst [vmem:[#allocation165_spill] sm:$0xff] %v8016_v36 }
 0x257   : > { %5759 = vrot.lane.b32.xlu0 %v7944_v48, %s6734_s8  ;;  %v7974_v43 = vpop.permute.xlu1 %5619 }
 0x258   : > { %11315 = vst [vmem:[#allocation156_spill] sm:$0xff] %v7974_v43  ;;  %v7982_v29 = vpop.permute.xlu0 %5479  ;;  %11319 = vst [vmem:[#allocation160_spill] sm:$0xff] %v7995_v52  ;;  %v1538_v43 = vrot.slane %v7932_v42, 1 }
 0x259   : > { %11316 = vst [vmem:[#allocation157_spill] sm:$0xff] %v7982_v29  ;;  %5859 = vrot.lane.b32.xlu1 %v7976_v10, %s6734_s8  ;;  %v1536_v29 = vrot.slane %v7708_v7, 1 }
 0x25b   : > { %5764 = vrot.lane.b32.xlu0 %v7967_v35, %s6734_s8  ;;  %v7993_v60 = vpop.permute.xlu1 %5624  ;;  %v1537_v24 = vsel %vm1399_vm4, %v1535_v18, %v1536_v29  ;;  %v1539_v51 = vsel %vm1399_vm4, %v1536_v29, %v1538_v43 }
 0x25c   : > { %11318 = vst [vmem:[#allocation159_spill] sm:$0xff] %v7993_v60  ;;  %v7999_v25 = vpop.permute.xlu0 %5484  ;;  %v1864_v60 = vrot.slane %v7682_v3, 2  ;;  %v8030_v9 = vpack.i.bf16 %v1539_v51, %v1537_v24  ;;  %v1873_v3 = vrot.slane %v7708_v7, 2 }
 0x25d   : > { %11321 = vst [vmem:[#allocation162_spill] sm:$0xff] %v7999_v25  ;;  %5864 = vrot.lane.b32.xlu1 %v7995_v52, %s6734_s8 }
 0x25e   : > { %11326 = vst [vmem:[#allocation167_spill] sm:$0xff] %v8030_v9  ;;  %v1865_v18 = vsel %vm1736_vm5, %v1863_v38, %v1864_v60  ;;  %v1867_v29 = vsel %vm1736_vm5, %v1864_v60, %v1866_v6  ;;  %v5324_v6 = vunpack.i.l.bf16 %v7323_v15  ;;  %v1874_v60 = vsel %vm1736_vm5, %v1872_v12, %v1873_v3 }
 0x25f   : > { %5789 = vrot.lane.b32.xlu0 %v7786_v1, %s6735_s10  ;;  %v8010_v63 = vpop.permute.xlu1 %5629  ;;  %v8045_v24 = vpack.i.bf16 %v1867_v29, %v1865_v18  ;;  %v1876_v51 = vsel %vm1736_vm5, %v1873_v3, %v1875_v5  ;;  %v1533_v38 = vrot.slane %v7915_v33, 1  ;;  %v5908_v5 = vpack.i.bf16 %v7938_v22, %v7932_v42 }
 0x260   : > { %11322 = vst [vmem:[#allocation163_spill] sm:$0xff] %v8010_v63  ;;  %v8012_v14 = vpop.permute.xlu0 %5514  ;;  %v8061_v12 = vpack.i.bf16 %v1876_v51, %v1874_v60  ;;  %v1236_v3 = vrot.slane %v5324_v6, 7 }
 0x261   : > { %11323 = vst [vmem:[#allocation164_spill] sm:$0xff] %v8012_v14  ;;  %5889 = vrot.lane.b32.xlu1 %v7823_v21, %s6735_s10  ;;  %11328 = vst [vmem:[#allocation169_spill] sm:$0xff] %v8045_v24 }
 0x262   : > { %11330 = vst [vmem:[#allocation171_spill] sm:$0xff] %v8061_v12  ;;  %v1237_v6 = vsel %vm1120_vm3, %v7710_v37, %v1236_v3 }
 0x263   : > { %5794 = vrot.lane.b32.xlu0 %v7812_v11, %s6735_s10  ;;  %v8024_v25 = vpop.permute.xlu1 %5654 }
 0x264   : > { %v8026_v63 = vpop.permute.xlu0 %5519 }
 0x265   : > { %11325 = vst [vmem:[#allocation166_spill] sm:$0xff] %v8026_v63  ;;  %5894 = vrot.lane.b32.xlu1 %v7847_v2, %s6735_s10  ;;  %v5329_v63 = vunpack.i.l.bf16 %v7335_v20 }
 0x267   : > { %5839 = vrot.lane.b32.xlu0 %v8016_v36, %s6733_s7  ;;  %v8038_v31 = vpop.permute.xlu1 %5659  ;;  %v1238_v18 = vrot.slane %v5329_v63, 7  ;;  %v1542_v63 = vrot.slane %v7925_v30, 1 }
 0x268   : > { %v8041_v14 = vpop.permute.xlu0 %5524 }
 0x269   : > { %11327 = vst [vmem:[#allocation168_spill] sm:$0xff] %v8041_v14  ;;  %5899 = vrot.lane.b32.xlu1 %v7870_v28, %s6735_s10  ;;  %v1531_v14 = vrot.slane %v7935_v26, 1  ;;  %v1365_v42 = vsel %vm1120_vm3, %v1238_v18, 0.0 }
 0x26b   : > { %5844 = vrot.lane.b32.xlu0 %v8030_v9, %s6733_s7  ;;  %v8053_v7 = vpop.permute.xlu1 %5664  ;;  %v1532_v53 = vsel %vm1399_vm4, %v1529_v23, %v1531_v14  ;;  %v1534_v26 = vsel %vm1399_vm4, %v1531_v14, %v1533_v38 }
 0x26c   : > { %v8058_v29 = vpop.permute.xlu0 %5529  ;;  %v8079_v51 = vpack.i.bf16 %v1534_v26, %v1532_v53  ;;  %v2274_v53 = vrot.slane %v1365_v42, 1 }
 0x26d   : > { %11329 = vst [vmem:[#allocation170_spill] sm:$0xff] %v8058_v29  ;;  %5904 = vrot.lane.b32.xlu1 %v5903_v62, %s6732_s6  ;;  %v1239_v29 = vsel %vm1120_vm3, %v1236_v3, %v1238_v18  ;;  %v1540_v62 = vrot.slane %v7938_v22, 1  ;;  %v2268_v18 = vrot.slane %v7740_v49, 1 }
 0x26e   : > { %11333 = vst [vmem:[#allocation174_spill] sm:$0xff] %v8079_v51  ;;  %v8085_v14 = vpack.i.bf16 %v1239_v29, %v1237_v6 }
 0x26f   : > { %5869 = vrot.lane.b32.xlu0 %v8045_v24, %s6734_s8  ;;  %v8065_v33 = vpop.permute.xlu1 %5669  ;;  %v1541_v30 = vsel %vm1399_vm4, %v1538_v43, %v1540_v62  ;;  %v1543_v38 = vsel %vm1399_vm4, %v1540_v62, %v1542_v63  ;;  %v2267_v43 = vrot.slane %v7734_v54, 1  ;;  %v2272_v63 = vrot.slane %v1239_v29, 1 }
 0x270   : > { %11331 = vst [vmem:[#allocation172_spill] sm:$0xff] %v8065_v33  ;;  %v8074_v60 = vpop.permute.xlu0 %5554  ;;  %11335 = vst [vmem:[#allocation176_spill] sm:$0xff] %v8085_v14  ;;  %v8098_v37 = vpack.i.bf16 %v1543_v38, %v1541_v30  ;;  %v2468_v62 = vrot.slane %v7734_v54, 2  ;;  %v2475_v38 = vrot.slane %v1365_v42, 2 }
 0x271   : > { %11332 = vst [vmem:[#allocation173_spill] sm:$0xff] %v8074_v60  ;;  %5909 = vrot.lane.b32.xlu1 %v5908_v5, %s6732_s6  ;;  %v2270_v5 = vrot.slane %v1237_v6, 1  ;;  %v11509_v60 = vld [vmem:[#allocation141_spill] sm:$0xff] }
 0x272   : > { %11338 = vst [vmem:[#allocation179_spill] sm:$0xff] %v8098_v37  ;;  %v5552_v33 = vunpack.i.h.bf16 %v11509_v60 }
 0x273   : > { %5874 = vrot.lane.b32.xlu0 %v8061_v12, %s6734_s8  ;;  %v8083_v23 = vpop.permute.xlu1 %5689  ;;  %v2273_v54 = vsel %vm1399_vm4, %v2270_v5, %v2272_v63 }
 0x274   : > { %11334 = vst [vmem:[#allocation175_spill] sm:$0xff] %v8083_v23  ;;  %v2271_v23 = vsel %vm1399_vm4, %v2268_v18, %v2270_v5 }
 0x275   : > { %5914 = vrot.lane.b32.xlu1 %v8085_v14, %s6732_s6  ;;  %v2469_v14 = vrot.slane %v7740_v49, 2  ;;  %v2275_v49 = vsel %vm1399_vm4, %v2272_v63, %v2274_v53 }
 0x276   : > { %v8134_v53 = vpack.i.bf16 %v2275_v49, %v2273_v54 }
 0x277   : > { %5879 = vrot.lane.b32.xlu0 %v7836_v13, %s6735_s10  ;;  %v8096_v26 = vpop.permute.xlu1 %5694 }
 0x278   : > { %11337 = vst [vmem:[#allocation178_spill] sm:$0xff] %v8096_v26  ;;  %11345 = vst [vmem:[#allocation186_spill] sm:$0xff] %v8134_v53 }
 0x279   : > { %v8090_v22 = vpop.permute.xlu0 %5559  ;;  %5919 = vrot.lane.b32.xlu1 %v8079_v51, %s6733_s7 }
 0x27a   : > { %11336 = vst [vmem:[#allocation177_spill] sm:$0xff] %v8090_v22  ;;  %v2471_v22 = vrot.slane %v1237_v6, 2  ;;  %v2470_v6 = vsel %vm1736_vm5, %v2468_v62, %v2469_v14 }
 0x27b   : > { %5884 = vrot.lane.b32.xlu0 %v7857_v0, %s6735_s10  ;;  %v8110_v30 = vpop.permute.xlu1 %5699  ;;  %v2269_v0 = vsel %vm1399_vm4, %v2267_v43, %v2268_v18 }
 0x27c   : > { %11340 = vst [vmem:[#allocation181_spill] sm:$0xff] %v8110_v30  ;;  %v8132_v18 = vpack.i.bf16 %v2271_v23, %v2269_v0  ;;  %v11350_v0 = vld [vmem:[#allocation29_spill] sm:$0xff] }
 0x27d   : > { %v8100_v3 = vpop.permute.xlu0 %5564  ;;  %5924 = vrot.lane.b32.xlu1 %v8098_v37, %s6733_s7 }
 0x27e   : > { %11339 = vst [vmem:[#allocation180_spill] sm:$0xff] %v8100_v3  ;;  %v2473_v3 = vrot.slane %v1239_v29, 2  ;;  %11344 = vst [vmem:[#allocation185_spill] sm:$0xff] %v8132_v18 }
 0x27f   : > { %5944 = vrot.lane.b32.xlu0 %v8016_v36, %s6735_s10  ;;  %v2472_v36 = vsel %vm1736_vm5, %v2469_v14, %v2471_v22  ;;  %v8124_v42 = vpop.permute.xlu1 %5704 }
 0x280   : > { %11342 = vst [vmem:[#allocation183_spill] sm:$0xff] %v8124_v42  ;;  %v2474_v29 = vsel %vm1736_vm5, %v2471_v22, %v2473_v3  ;;  %v8136_v5 = vpack.i.bf16 %v2472_v36, %v2470_v6 }
 0x281   : > { %v8112_v26 = vpop.permute.xlu0 %5569  ;;  %5929 = vrot.lane.b32.xlu1 %v7986_v32, %s6734_s8 }
 0x282   : > { %11341 = vst [vmem:[#allocation182_spill] sm:$0xff] %v8112_v26  ;;  %v2476_v26 = vsel %vm1736_vm5, %v2473_v3, %v2475_v38  ;;  %11346 = vst [vmem:[#allocation187_spill] sm:$0xff] %v8136_v5 }
 0x283   : > { %5954 = vrot.lane.b32.xlu0 %v8030_v9, %s6735_s10  ;;  %v8140_v14 = vpop.permute.xlu1 %5729  ;;  %v8142_v63 = vpack.i.bf16 %v2476_v26, %v2474_v29  ;;  %v11366_v9 = vld [vmem:[#allocation64_spill] sm:$0xff] }
 0x284   : > { %11347 = vst [vmem:[#allocation188_spill] sm:$0xff] %v8140_v14 }
 0x285   : > { %v8128_v43 = vpop.permute.xlu0 %5594  ;;  %11348 = vst [vmem:[#allocation189_spill] sm:$0xff] %v8142_v63  ;;  %5934 = vrot.lane.b32.xlu1 %v7997_v59, %s6734_s8 }
 0x286   : > { %11343 = vst [vmem:[#allocation184_spill] sm:$0xff] %v8128_v43 }
 0x287   : > { %5964 = vrot.lane.b32.xlu0 %v8132_v18, %s6735_s10  ;;  %v8150_v23 = vpop.permute.xlu1 %5734 }
 0x288   : > { %11351 = vst [vmem:[#allocation29_spill] sm:$0xff] %v8150_v23  ;;  %v11449_v23 = vld [vmem:[#allocation102_spill] sm:$0xff] }
 0x289   : > { %v8144_v22 = vpop.permute.xlu0 %5599  ;;  %5939 = vrot.lane.b32.xlu1 %v7894_v41, %s6735_s10 }
 0x28a   : > { %11349 = vst [vmem:[#allocation190_spill] sm:$0xff] %v8144_v22 }
 0x28b   : > { %5974 = vrot.lane.b32.xlu0 %v11350_v0, %s6736_s11  ;;  %v8158_v26 = vpop.permute.xlu1 %5739  ;;  %v11361_v0 = vld [vmem:[#allocation28_spill] sm:$0xff] }
 0x28c   : > { %11353 = vst [vmem:[#allocation192_spill] sm:$0xff] %v8158_v26 }
 0x28d   : > { %v8152_v36 = vpop.permute.xlu0 %5604  ;;  %5949 = vrot.lane.b32.xlu1 %v8079_v51, %s6735_s10 }
 0x28e   : > { %11352 = vst [vmem:[#allocation191_spill] sm:$0xff] %v8152_v36  ;;  %v11442_v36 = vld [vmem:[#allocation104_spill] sm:$0xff] }
 0x28f   : > { %5984 = vrot.lane.b32.xlu0 %v7251_v50, %s6736_s11  ;;  %v8166_v62 = vpop.permute.xlu1 %5744 }
 0x290   : > { %11355 = vst [vmem:[#allocation194_spill] sm:$0xff] %v8166_v62 }
 0x291   : > { %v8160_v3 = vpop.permute.xlu0 %5609  ;;  %5959 = vrot.lane.b32.xlu1 %v8098_v37, %s6735_s10 }
 0x292   : > { %11354 = vst [vmem:[#allocation193_spill] sm:$0xff] %v8160_v3 }
 0x293   : > { %5994 = vrot.lane.b32.xlu0 %v7272_v19, %s6736_s11  ;;  %v8174_v54 = vpop.permute.xlu1 %5769  ;;  %v11508_v19 = vld [vmem:[#allocation45_spill] sm:$0xff] }
 0x294   : > { %11357 = vst [vmem:[#allocation196_spill] sm:$0xff] %v8174_v54 }
 0x295   : > { %v8168_v38 = vpop.permute.xlu0 %5634  ;;  %5969 = vrot.lane.b32.xlu1 %v8134_v53, %s6735_s10 }
 0x296   : > { %11356 = vst [vmem:[#allocation195_spill] sm:$0xff] %v8168_v38 }
 0x297   : > { %6004 = vrot.lane.b32.xlu0 %v7289_v57, %s6736_s11  ;;  %v8182_v6 = vpop.permute.xlu1 %5774 }
 0x298   : > { %11359 = vst [vmem:[#allocation198_spill] sm:$0xff] %v8182_v6  ;;  %v11418_v6 = vld [vmem:[#allocation67_spill] sm:$0xff] }
 0x299   : > { %v8176_v49 = vpop.permute.xlu0 %5639  ;;  %5979 = vrot.lane.b32.xlu1 %v11361_v0, %s6736_s11 }
 0x29a   : > { %11358 = vst [vmem:[#allocation197_spill] sm:$0xff] %v8176_v49  ;;  %v5327_v49 = vunpack.i.h.bf16 %v7323_v15  ;;  %v6615_v15 = vld [vmem:[%s10757_s2 + $0x10] sm:$0xff]  }
 0x29b   : > { %6014 = vrot.lane.b32.xlu0 %v7305_v17, %s6736_s11  ;;  %v8190_v18 = vpop.permute.xlu1 %5779 }
 0x29c   : > { %11362 = vst [vmem:[#allocation28_spill] sm:$0xff] %v8190_v18 }
 0x29d   : > { %v8184_v29 = vpop.permute.xlu0 %5644  ;;  %5989 = vrot.lane.b32.xlu1 %v7281_v8, %s6736_s11 }
 0x29e   : > { %11360 = vst [vmem:[#allocation199_spill] sm:$0xff] %v8184_v29 }
 0x29f   : > { %6024 = vrot.lane.b32.xlu0 %v7571_v4, %s6736_s11  ;;  %v8198_v53 = vpop.permute.xlu1 %5784 }
 0x2a0   : > { %11364 = vst [vmem:[#allocation201_spill] sm:$0xff] %v8198_v53 }
 0x2a1   : > { %v8192_v37 = vpop.permute.xlu0 %5649  ;;  %5999 = vrot.lane.b32.xlu1 %v11366_v9, %s6736_s11 }
 0x2a2   : > { %11363 = vst [vmem:[#allocation200_spill] sm:$0xff] %v8192_v37  ;;  %v11369_v37 = vld [vmem:[#allocation66_spill] sm:$0xff] }
 0x2a3   : > { %6034 = vrot.lane.b32.xlu0 %v7592_v44, %s6736_s11  ;;  %v8206_v0 = vpop.permute.xlu1 %5799 }
 0x2a4   : > { %11367 = vst [vmem:[#allocation203_spill] sm:$0xff] %v8206_v0 }
 0x2a5   : > { %v8200_v17 = vpop.permute.xlu0 %5674  ;;  %6009 = vrot.lane.b32.xlu1 %v11369_v37, %s6736_s11  ;;  %v11429_v37 = vld [vmem:[#allocation90_spill] sm:$0xff] }
 0x2a6   : > { %11365 = vst [vmem:[#allocation202_spill] sm:$0xff] %v8200_v17  ;;  %v11372_v17 = vld [vmem:[#allocation68_spill] sm:$0xff] }
 0x2a7   : > { %6044 = vrot.lane.b32.xlu0 %v7611_v27, %s6736_s11  ;;  %v8214_v44 = vpop.permute.xlu1 %5804 }
 0x2a8   : > { %11370 = vst [vmem:[#allocation205_spill] sm:$0xff] %v8214_v44 }
 0x2a9   : > { %v8208_v4 = vpop.permute.xlu0 %5679  ;;  %6019 = vrot.lane.b32.xlu1 %v11372_v17, %s6736_s11 }
 0x2aa   : > { %11368 = vst [vmem:[#allocation204_spill] sm:$0xff] %v8208_v4 }
 0x2ab   : > { %6054 = vrot.lane.b32.xlu0 %v7627_v46, %s6736_s11  ;;  %v8222_v27 = vpop.permute.xlu1 %5809 }
 0x2ac   : > { %11373 = vst [vmem:[#allocation207_spill] sm:$0xff] %v8222_v27 }
 0x2ad   : > { %v8216_v53 = vpop.permute.xlu0 %5684  ;;  %6029 = vrot.lane.b32.xlu1 %v7582_v58, %s6736_s11 }
 0x2ae   : > { %11371 = vst [vmem:[#allocation206_spill] sm:$0xff] %v8216_v53  ;;  %v11377_v53 = vld [vmem:[#allocation109_spill] sm:$0xff] }
 0x2af   : > { %6064 = vrot.lane.b32.xlu0 %v7882_v47, %s6736_s11  ;;  %v8230_v4 = vpop.permute.xlu1 %5814 }
 0x2b0   : > { %11375 = vst [vmem:[#allocation209_spill] sm:$0xff] %v8230_v4 }
 0x2b1   : > { %v8224_v0 = vpop.permute.xlu0 %5709  ;;  %6039 = vrot.lane.b32.xlu1 %v11377_v53, %s6736_s11 }
 0x2b2   : > { %11374 = vst [vmem:[#allocation208_spill] sm:$0xff] %v8224_v0  ;;  %v11380_v0 = vld [vmem:[#allocation113_spill] sm:$0xff] }
 0x2b3   : > { %6074 = vrot.lane.b32.xlu0 %v7903_v45, %s6736_s11  ;;  %v8238_v17 = vpop.permute.xlu1 %5819 }
 0x2b4   : > { %11378 = vst [vmem:[#allocation211_spill] sm:$0xff] %v8238_v17 }
 0x2b5   : > { %v8232_v44 = vpop.permute.xlu0 %5714  ;;  %6049 = vrot.lane.b32.xlu1 %v11380_v0, %s6736_s11 }
 0x2b6   : > { %11376 = vst [vmem:[#allocation210_spill] sm:$0xff] %v8232_v44  ;;  %v11383_v44 = vld [vmem:[#allocation116_spill] sm:$0xff] }
 0x2b7   : > { %6084 = vrot.lane.b32.xlu0 %v7944_v48, %s6736_s11  ;;  %v8246_v58 = vpop.permute.xlu1 %5824 }
 0x2b8   : > { %11381 = vst [vmem:[#allocation213_spill] sm:$0xff] %v8246_v58 }
 0x2b9   : > { %v8240_v27 = vpop.permute.xlu0 %5719  ;;  %6059 = vrot.lane.b32.xlu1 %v11383_v44, %s6736_s11 }
 0x2ba   : > { %11379 = vst [vmem:[#allocation212_spill] sm:$0xff] %v8240_v27  ;;  %v11407_v27 = vld [vmem:[#allocation52_spill] sm:$0xff] }
 0x2bb   : > { %6094 = vrot.lane.b32.xlu0 %v7967_v35, %s6736_s11  ;;  %v8254_v53 = vpop.permute.xlu1 %5829  ;;  %v11492_v35 = vld [vmem:[#allocation18_spill] sm:$0xff] }
 0x2bc   : > { %11384 = vst [vmem:[#allocation116_spill] sm:$0xff] %v8254_v53 }
 0x2bd   : > { %v8248_v4 = vpop.permute.xlu0 %5724  ;;  %6069 = vrot.lane.b32.xlu1 %v7921_v34, %s6736_s11 }
 0x2be   : > { %11382 = vst [vmem:[#allocation214_spill] sm:$0xff] %v8248_v4 }
 0x2bf   : > { %6104 = vrot.lane.b32.xlu0 %v8045_v24, %s6736_s11  ;;  %v8262_v0 = vpop.permute.xlu1 %5834 }
 0x2c0   : > { %11386 = vst [vmem:[#allocation216_spill] sm:$0xff] %v8262_v0 }
 0x2c1   : > { %v8256_v17 = vpop.permute.xlu0 %5749  ;;  %6079 = vrot.lane.b32.xlu1 %v7956_v39, %s6736_s11 }
 0x2c2   : > { %11385 = vst [vmem:[#allocation215_spill] sm:$0xff] %v8256_v17  ;;  %v11396_v17 = vld [vmem:[#allocation20_spill] sm:$0xff] }
 0x2c3   : > { %6114 = vrot.lane.b32.xlu0 %v8061_v12, %s6736_s11  ;;  %v8270_v4 = vpop.permute.xlu1 %5849  ;;  %v11390_v12 = vld [vmem:[#allocation12_spill] sm:$0xff] }
 0x2c4   : > { %11388 = vst [vmem:[#allocation218_spill] sm:$0xff] %v8270_v4 }
 0x2c5   : > { %v8264_v58 = vpop.permute.xlu0 %5754  ;;  %6089 = vrot.lane.b32.xlu1 %v7976_v10, %s6736_s11 }
 0x2c6   : > { %11387 = vst [vmem:[#allocation217_spill] sm:$0xff] %v8264_v58 }
 0x2c7   : > { %6124 = vrot.lane.b32.xlu0 %v8136_v5, %s6736_s11  ;;  %v8278_v0 = vpop.permute.xlu1 %5854  ;;  %v11393_v5 = vld [vmem:[#allocation16_spill] sm:$0xff] }
 0x2c8   : > { %11391 = vst [vmem:[#allocation12_spill] sm:$0xff] %v8278_v0 }
 0x2c9   : > { %v8272_v53 = vpop.permute.xlu0 %5759  ;;  %6099 = vrot.lane.b32.xlu1 %v7995_v52, %s6736_s11  ;;  %v11459_v52 = vld [vmem:[#allocation13_spill] sm:$0xff] }
 0x2ca   : > { %11389 = vst [vmem:[#allocation219_spill] sm:$0xff] %v8272_v53 }
 0x2cb   : > { %6134 = vrot.lane.b32.xlu0 %v11390_v12, %s6737_s13  ;;  %v8286_v4 = vpop.permute.xlu1 %5859 }
 0x2cc   : > { %11394 = vst [vmem:[#allocation16_spill] sm:$0xff] %v8286_v4 }
 0x2cd   : > { %v8280_v58 = vpop.permute.xlu0 %5764  ;;  %6109 = vrot.lane.b32.xlu1 %v7986_v32, %s6736_s11 }
 0x2ce   : > { %11392 = vst [vmem:[#allocation220_spill] sm:$0xff] %v8280_v58  ;;  %v11399_v58 = vld [vmem:[#allocation25_spill] sm:$0xff] }
 0x2cf   : > { %6144 = vrot.lane.b32.xlu0 %v11393_v5, %s6737_s13  ;;  %v8294_v12 = vpop.permute.xlu1 %5864 }
 0x2d0   : > { %11397 = vst [vmem:[#allocation20_spill] sm:$0xff] %v8294_v12 }
 0x2d1   : > { %v8288_v53 = vpop.permute.xlu0 %5789  ;;  %6119 = vrot.lane.b32.xlu1 %v7997_v59, %s6736_s11  ;;  %v11406_v59 = vld [vmem:[#allocation42_spill] sm:$0xff] }
 0x2d2   : > { %11395 = vst [vmem:[#allocation221_spill] sm:$0xff] %v8288_v53  ;;  %v11402_v53 = vld [vmem:[#allocation39_spill] sm:$0xff] }
 0x2d3   : > { %6154 = vrot.lane.b32.xlu0 %v11396_v17, %s6737_s13  ;;  %v8302_v5 = vpop.permute.xlu1 %5889 }
 0x2d4   : > { %11400 = vst [vmem:[#allocation25_spill] sm:$0xff] %v8302_v5  ;;  %v5332_v5 = vunpack.i.h.bf16 %v7335_v20 }
 0x2d5   : > { %v8296_v0 = vpop.permute.xlu0 %5794  ;;  %6129 = vrot.lane.b32.xlu1 %v8142_v63, %s6736_s11 }
 0x2d6   : > { %11398 = vst [vmem:[#allocation222_spill] sm:$0xff] %v8296_v0  ;;  %v11405_v0 = vld [vmem:[#allocation34_spill] sm:$0xff]  ;;  %v8331_v29 = vrot.slane %v5332_v5, 7  ;;  %v5322_v5 = vunpack.i.h.bf16 %v11418_v6  ;;  %v11423_v6 = vld [vmem:[#allocation88_spill] sm:$0xff] }
 0x2d7   : > { %6164 = vrot.lane.b32.xlu0 %v11399_v58, %s6737_s13  ;;  %v8310_v17 = vpop.permute.xlu1 %5894  ;;  %v6183_v58 = vpack.i.bf16 %v11407_v27, %v11406_v59  ;;  %v5377_v32 = vunpack.i.h.bf16 %v11423_v6  ;;  %v5376_v54 = vunpack.i.l.bf16 %v11423_v6  ;;  %v11434_v6 = vld [vmem:[#allocation7_spill] sm:$0xff]  ;;  %v11506_v59 = vld [vmem:[#allocation73_spill] sm:$0xff] }
 0x2d8   : > { %11403 = vst [vmem:[#allocation39_spill] sm:$0xff] %v8310_v17  ;;  %v11411_v17 = vld [vmem:[#allocation86_spill] sm:$0xff]  ;;  %v8367_v24 = vrot.slane %v5322_v5, 7  ;;  %v11431_v5 = vld [vmem:[#allocation3_spill] sm:$0xff] }
 0x2d9   : > { %v8304_v4 = vpop.permute.xlu0 %5839  ;;  %6139 = vrot.lane.b32.xlu1 %v11405_v0, %s6737_s13  ;;  %v11412_v0 = vld [vmem:[#allocation70_spill] sm:$0xff] }
 0x2da   : > { %11401 = vst [vmem:[#allocation223_spill] sm:$0xff] %v8304_v4  ;;  %v6193_v18 = vpack.i.bf16 %v11412_v0, %v11411_v17  ;;  %v11451_v17 = vld [vmem:[#allocation112_spill] sm:$0xff] }
 0x2db   : > { %6174 = vrot.lane.b32.xlu0 %v11402_v53, %s6737_s13  ;;  %v8320_v4 = vpop.permute.xlu1 %5899  ;;  %v6613_v53 = vld [vmem:[%s10757_s2] sm:$0xff]  }
 0x2dc   : > { %11408 = vst [vmem:[#allocation34_spill] sm:$0xff] %v8320_v4  ;;  %5073 = vmatprep.subr.bf16.mxu1 %v6613_v53  ;;  %4995 = vmatprep.subr.bf16.mxu0 %v6613_v53  ;;  %v11417_v4 = vld [vmem:[#allocation63_spill] sm:$0xff] }
 0x2dd   : > { %v8312_v12 = vpop.permute.xlu0 %5844  ;;  %5078 = vmatpush3.bf16.msra.mxu1 %v6613_v53  ;;  %4996 = vmatpush3.bf16.msra.mxu0 %v6613_v53  ;;  %v5317_v0 = vunpack.i.h.bf16 %v11417_v4  ;;  %v11420_v53 = vld [vmem:[#allocation101_spill] sm:$0xff] }
 0x2de   : > { %11404 = vst [vmem:[#allocation224_spill] sm:$0xff] %v8312_v12  ;;  %v11410_v12 = vld [vmem:[#allocation40_spill] sm:$0xff] }
 0x2df   : > { %6184 = vrot.lane.b32.xlu0 %v6183_v58, %s6737_s13  ;;  %6149 = vrot.lane.b32.xlu1 %v11410_v12, %s6737_s13  ;;  %11413 = vst [vmem:[#allocation40_spill] sm:$0xff] %v8331_v29  ;;  %v8334_v20 = vpop.permute.xlu1 %5904  ;;  %v6614_v58 = vld [vmem:[%s10757_s2 + $0x8] sm:$0xff]   ;;  %v11416_v12 = vld [vmem:[#allocation46_spill] sm:$0xff] }
 0x2e0   : > { %11414 = vst [vmem:[#allocation226_spill] sm:$0xff] %v8334_v20  ;;  %5074 = vmatprep.subr.bf16.mxu1 %v6614_v58  ;;  %4997 = vmatprep.subr.bf16.mxu0 %v6614_v58 }
 0x2e1   : > { %v8325_v63 = vpop.permute.xlu0 %5869  ;;  %5079 = vmatpush3.bf16.msra.mxu1 %v6614_v58  ;;  %4998 = vmatpush3.bf16.msra.mxu0 %v6614_v58 }
 0x2e2   : > { %11409 = vst [vmem:[#allocation225_spill] sm:$0xff] %v8325_v63  ;;  %5075 = vmatprep.subr.bf16.mxu1 %v6615_v15  ;;  %4999 = vmatprep.subr.bf16.mxu0 %v6615_v15 }
 0x2e3   : > { %6194 = vrot.lane.b32.xlu0 %v6193_v18, %s6737_s13  ;;  %6159 = vrot.lane.b32.xlu1 %v11416_v12, %s6737_s13  ;;  %v8348_v18 = vsel %vm1120_vm3, %v8331_v29, 0.0  ;;  %v11422_v12 = vld [vmem:[#allocation84_spill] sm:$0xff]  ;;  %v6616_v29 = vld [vmem:[%s10757_s2 + $0x18] sm:$0xff]  }
 0x2e4   : > { %11419 = vst [vmem:[#allocation46_spill] sm:$0xff] %v8348_v18  ;;  %v5362_v20 = vunpack.i.h.bf16 %v11422_v12  ;;  %v5361_v4 = vunpack.i.l.bf16 %v11422_v12  ;;  %11427 = vst [vmem:[#allocation84_spill] sm:$0xff] %v8367_v24  ;;  %v8369_v12 = vrot.slane %v5327_v49, 7 }
 0x2e5   : > { %v8339_v63 = vpop.permute.xlu0 %5874  ;;  %5080 = vmatpush3.bf16.msra.mxu1 %v6615_v15  ;;  %5000 = vmatpush3.bf16.msra.mxu0 %v6615_v15  ;;  %v11441_v15 = vld [vmem:[#allocation95_spill] sm:$0xff] }
 0x2e6   : > { %11415 = vst [vmem:[#allocation227_spill] sm:$0xff] %v8339_v63  ;;  %v8352_v63 = vpop.permute.xlu1 %5909  ;;  %11428 = vst [vmem:[#allocation88_spill] sm:$0xff] %v8369_v12  ;;  %v3271_v49 = vsel %vm3265_vm6, %v11431_v5, %v5362_v20  ;;  %v5342_v26 = vunpack.i.h.bf16 %v11441_v15  ;;  %5076 = vmatprep.subr.bf16.mxu1 %v6616_v29  ;;  %5001 = vmatprep.subr.bf16.mxu0 %v6616_v29  ;;  %v11450_v5 = vld [vmem:[#allocation108_spill] sm:$0xff] }
 0x2e7   : > { %6204 = vrot.lane.b32.xlu0 %v11420_v53, %s6738_s25  ;;  %11421 = vst [vmem:[#allocation63_spill] sm:$0xff] %v8352_v63  ;;  %v11425_v53 = vld [vmem:[#allocation54_spill] sm:$0xff]  ;;  %v8365_v63 = vrot.slane %v5317_v0, 7 }
 0x2e8   : > { %6169 = vrot.lane.b32.xlu1 %v11425_v53, %s6737_s13  ;;  %v11432_v53 = vld [vmem:[#allocation4_spill] sm:$0xff] }
 0x2e9   : > { %v8361_v38 = vpop.permute.xlu0 %5879  ;;  %11426 = vst [vmem:[#allocation101_spill] sm:$0xff] %v8365_v63  ;;  %v3270_v62 = vsel %vm3265_vm6, %v11432_v53, %v5361_v4  ;;  %v11438_v4 = vld [vmem:[#allocation75_spill] sm:$0xff]  ;;  %v11440_v53 = vld [vmem:[#allocation74_spill] sm:$0xff]  ;;  %5081 = vmatpush3.bf16.msra.mxu1 %v6616_v29  ;;  %v11448_v63 = vld [vmem:[#allocation5_spill] sm:$0xff]  ;;  %5002 = vmatpush3.bf16.msra.mxu0 %v6616_v29 }
 0x2ea   : > { %11424 = vst [vmem:[#allocation67_spill] sm:$0xff] %v8361_v38  ;;  %v8377_v0 = vpop.permute.xlu1 %5914  ;;  %v11433_v38 = vld [vmem:[#allocation99_spill] sm:$0xff] }
 0x2eb   : > { %6214 = vrot.lane.b32.xlu0 %v11383_v44, %s6739_s27  ;;  %11430 = vst [vmem:[#allocation54_spill] sm:$0xff] %v8377_v0  ;;  %v5412_v12 = vunpack.i.h.bf16 %v11433_v38  ;;  %v5411_v58 = vunpack.i.l.bf16 %v11433_v38  ;;  %v8390_v44 = vsel %vm3265_vm6, %v11434_v6, %v5377_v32  ;;  %v11435_v0 = vld [vmem:[#allocation8_spill] sm:$0xff]  ;;  %v11439_v38 = vld [vmem:[#allocation123_spill] sm:$0xff]  ;;  %v5417_v32 = vunpack.i.h.bf16 %v11442_v36  ;;  %v11443_v6 = vld [vmem:[#allocation98_spill] sm:$0xff] }
 0x2ec   : > { %v3266_v18 = vsel %vm3265_vm6, %v11435_v0, %v5376_v54  ;;  %6179 = vrot.lane.b32.xlu1 %v11438_v4, %s6737_s13  ;;  %v6223_v3 = vpack.i.bf16 %v11440_v53, %v11439_v38  ;;  %v5341_v54 = vunpack.i.l.bf16 %v11441_v15  ;;  %v11446_v38 = vld [vmem:[#allocation87_spill] sm:$0xff]  ;;  %v11447_v53 = vld [vmem:[#allocation9_spill] sm:$0xff]  ;;  %v5416_v15 = vunpack.i.l.bf16 %v11442_v36  ;;  %v11457_v36 = vld [vmem:[#allocation106_spill] sm:$0xff] }
 0x2ed   : > { %v8395_v51 = vpop.permute.xlu0 %5884  ;;  %v3273_v20 = vsel %vm3265_vm6, %v11447_v53, %v5412_v12  ;;  %v3272_v24 = vsel %vm3265_vm6, %v11448_v63, %v5411_v58  ;;  %v11453_v12 = vld [vmem:[#allocation10_spill] sm:$0xff]  ;;  %v5421_v58 = vunpack.i.l.bf16 %v11450_v5  ;;  %v5367_v53 = vunpack.i.h.bf16 %v11451_v17  ;;  %v11454_v29 = vld [vmem:[#allocation111_spill] sm:$0xff] }
 0x2ee   : > { %11437 = vst [vmem:[#allocation90_spill] sm:$0xff] %v8395_v51  ;;  %v8408_v4 = vpop.permute.xlu1 %5919  ;;  %v11445_v51 = vld [vmem:[#allocation51_spill] sm:$0xff]  ;;  %v8428_v63 = vsel %vm3265_vm6, %v11453_v12, %v5417_v32  ;;  %v5437_v0 = vunpack.i.h.bf16 %v11454_v29  ;;  %v5436_v27 = vunpack.i.l.bf16 %v11454_v29 }
 0x2ef   : > { %6224 = vrot.lane.b32.xlu0 %v6223_v3, %s6737_s13  ;;  %11444 = vst [vmem:[#allocation3_spill] sm:$0xff] %v8408_v4  ;;  %v6188_v57 = vpack.i.bf16 %v11446_v38, %v11445_v51  ;;  %v6617_v3 = vld [vmem:[%s10757_s2 + $0x20] ss:$0 sps:$4 sm:$0xff]   ;;  %v5422_v4 = vunpack.i.h.bf16 %v11450_v5  ;;  %v5366_v38 = vunpack.i.l.bf16 %v11451_v17  ;;  %v11456_v32 = vld [vmem:[#allocation11_spill] sm:$0xff] }
 0x2f0   : > { %5084 = vmatprep.subr.msk.bf16.mxu1 %vm3949_vm8, %v6617_v3  ;;  %5083 = vmatprep.subr.msk.bf16.mxu0 %vm3949_vm8, %v6617_v3  ;;  %v8441_v12 = vsel %vm3265_vm6, %v11456_v32, %v5416_v15  ;;  %v11458_v51 = vld [vmem:[#allocation31_spill] sm:$0xff]  ;;  %v11461_v15 = vld [vmem:[#allocation100_spill] sm:$0xff]  ;;  %v11462_v32 = vld [vmem:[#allocation14_spill] sm:$0xff] }
 0x2f1   : > { %v8423_v22 = vpop.permute.xlu0 %5944  ;;  %6189 = vrot.lane.b32.xlu1 %v6188_v57, %s6737_s13  ;;  %v5382_v17 = vunpack.i.h.bf16 %v11458_v51  ;;  %v5381_v14 = vunpack.i.l.bf16 %v11458_v51  ;;  %v8448_v29 = vsel %vm3265_vm6, %v11459_v52, %v5422_v4  ;;  %v8458_v5 = vsel %vm3265_vm6, %v11462_v32, %v5421_v58  ;;  %v11472_v58 = vld [vmem:[#allocation32_spill] sm:$0xff] }
 0x2f2   : > { %11452 = vst [vmem:[#allocation4_spill] sm:$0xff] %v8423_v22  ;;  %v8437_v57 = vpop.permute.xlu1 %5924  ;;  %v3951_v22 = vsel %vm3949_vm8, %v6617_v3, 0  ;;  %v3334_v3 = vsel %vm258_vm0, %v3270_v62, %v5366_v38  ;;  %v3335_v51 = vsel %vm258_vm0, %v3271_v49, %v5367_v53  ;;  %v3336_v4 = vsel %vm258_vm0, %v3272_v24, %v5436_v27  ;;  %v11466_v27 = vld [vmem:[#allocation115_spill] sm:$0xff] }
 0x2f3   : > { %6234 = vrot.lane.b32.xlu0 %v7823_v21, %s6738_s25  ;;  %11455 = vst [vmem:[#allocation99_spill] sm:$0xff] %v8437_v57  ;;  %5082 = vmatpush3.bf16.msra.mxu1 %v3951_v22  ;;  %v3337_v21 = vsel %vm258_vm0, %v3273_v20, %v5437_v0  ;;  %v3330_v32 = vsel %vm258_vm0, %v3266_v18, %v5381_v14  ;;  %v11468_v14 = vld [vmem:[#allocation79_spill] sm:$0xff] }
 0x2f4   : > { %5004 = vmatpush3.bf16.msra.mxu0 %v3951_v22  ;;  %v11463_v22 = vld [vmem:[#allocation118_spill] sm:$0xff]  ;;  %v3331_v49 = vsel %vm258_vm0, %v8390_v44, %v5382_v17  ;;  %v8475_v53 = vsel %vm3394_vm7, %v3334_v3, %v5341_v54  ;;  %v8480_v0 = vsel %vm3394_vm7, %v3335_v51, %v5342_v26  ;;  %v6253_v18 = vpack.i.bf16 %v11468_v14, %v7718_v16  ;;  %v11476_v44 = vld [vmem:[#allocation24_spill] sm:$0xff]  ;;  %v11483_v14 = vld [vmem:[#allocation127_spill] sm:$0xff] }
 0x2f5   : > { %v8452_v57 = vpop.permute.xlu0 %5954  ;;  %6199 = vrot.lane.b32.xlu1 %v11461_v15, %s6738_s25  ;;  %v5497_v42 = vunpack.i.h.bf16 %v11463_v22  ;;  %v5496_v52 = vunpack.i.l.bf16 %v11463_v22  ;;  %v11469_v22 = vld [vmem:[#allocation117_spill] sm:$0xff]  ;;  %v11470_v26 = vunpack.i.l.bf16 %v11429_v37 }
 0x2f6   : > { %11460 = vst [vmem:[#allocation7_spill] sm:$0xff] %v8452_v57  ;;  %v8468_v15 = vpop.permute.xlu1 %5929 }
 0x2f7   : > { %6244 = vrot.lane.b32.xlu0 %v7921_v34, %s6739_s27  ;;  %11465 = vst [vmem:[#allocation8_spill] sm:$0xff] %v8468_v15  ;;  %v8491_v17 = vsel %vm3394_vm7, %v3336_v4, %v5496_v52  ;;  %v8494_v3 = vsel %vm3394_vm7, %v3337_v21, %v5497_v42  ;;  %v8499_v51 = vsel %vm3394_vm7, %v3330_v32, %v11470_v26  ;;  %v11474_v52 = vld [vmem:[#allocation69_spill] sm:$0xff]  ;;  %v11475_v4 = vld [vmem:[#allocation122_spill] sm:$0xff] }
 0x2f8   : > { %v6218_v42 = vpack.i.bf16 %v11475_v4, %v11474_v52  ;;  %v11481_v15 = vld [vmem:[#allocation133_spill] sm:$0xff]  ;;  %v11486_v52 = vld [vmem:[#allocation140_spill] sm:$0xff] }
 0x2f9   : > { %v8482_v34 = vpop.permute.xlu0 %5964  ;;  %6209 = vrot.lane.b32.xlu1 %v7627_v46, %s6739_s27  ;;  %v11471_v46 = vunpack.i.h.bf16 %v11429_v37  ;;  %v5427_v54 = vunpack.i.h.bf16 %v11481_v15  ;;  %v5426_v32 = vunpack.i.l.bf16 %v11481_v15  ;;  %v5441_v62 = vunpack.i.l.bf16 %v11486_v52  ;;  %v11493_v37 = vld [vmem:[#allocation137_spill] sm:$0xff] }
 0x2fa   : > { %11467 = vst [vmem:[#allocation75_spill] sm:$0xff] %v8482_v34  ;;  %v8508_v20 = vpop.permute.xlu1 %5934  ;;  %v5432_v15 = vunpack.i.h.bf16 %v11493_v37 }
 0x2fb   : > { %v8504_v38 = vsel %vm3394_vm7, %v3331_v49, %v11471_v46  ;;  %6254 = vrot.lane.b32.xlu0 %v6253_v18, %s6737_s13  ;;  %11473 = vst [vmem:[#allocation95_spill] sm:$0xff] %v8508_v20  ;;  %v11478_v46 = vld [vmem:[#allocation120_spill] sm:$0xff]  ;;  %v11480_v20 = vld [vmem:[#allocation131_spill] sm:$0xff]  ;;  %v5442_v49 = vunpack.i.h.bf16 %v11486_v52  ;;  %v3282_v26 = vsel %vm3265_vm6, %v11492_v35, %v5426_v32  ;;  %v5431_v52 = vunpack.i.l.bf16 %v11493_v37  ;;  %v11498_v37 = vld [vmem:[#allocation142_spill] sm:$0xff] }
 0x2fc   : > { %v5537_v57 = vunpack.i.h.bf16 %v11480_v20  ;;  %v5536_v21 = vunpack.i.l.bf16 %v11480_v20  ;;  %v3338_v35 = vsel %vm258_vm0, %v8441_v12, %v5441_v62  ;;  %v11502_v62 = vld [vmem:[#allocation22_spill] sm:$0xff] }
 0x2fd   : > { %v8519_v18 = vpop.permute.xlu0 %5974  ;;  %6219 = vrot.lane.b32.xlu1 %v6218_v42, %s6737_s13  ;;  %v3339_v32 = vsel %vm258_vm0, %v8428_v63, %v5442_v49  ;;  %v3287_v63 = vsel %vm3265_vm6, %v11502_v62, %v5432_v15  ;;  %v11503_v49 = vld [vmem:[#allocation23_spill] sm:$0xff]  ;;  %v5551_v15 = vunpack.i.l.bf16 %v11509_v60 }
 0x2fe   : > { %11479 = vst [vmem:[#allocation104_spill] sm:$0xff] %v8519_v18  ;;  %v8531_v24 = vpop.permute.xlu1 %5939  ;;  %v11485_v18 = vld [vmem:[#allocation135_spill] sm:$0xff] }
 0x2ff   : > { %6264 = vrot.lane.b32.xlu0 %v7812_v11, %s6738_s25  ;;  %11484 = vst [vmem:[#allocation98_spill] sm:$0xff] %v8531_v24  ;;  %v5542_v4 = vunpack.i.h.bf16 %v11485_v18  ;;  %v5541_v20 = vunpack.i.l.bf16 %v11485_v18  ;;  %v11489_v11 = vld [vmem:[#allocation33_spill] sm:$0xff]  ;;  %v11490_v24 = vld [vmem:[#allocation15_spill] sm:$0xff] }
 0x300   : > { %v3277_v42 = vsel %vm3265_vm6, %v11489_v11, %v5537_v57  ;;  %v3276_v16 = vsel %vm3265_vm6, %v11490_v24, %v5536_v21  ;;  %v11491_v18 = vld [vmem:[#allocation17_spill] sm:$0xff]  ;;  %v11496_v57 = vld [vmem:[#allocation38_spill] sm:$0xff]  ;;  %v11497_v21 = vld [vmem:[#allocation19_spill] sm:$0xff] }
 0x301   : > { %v8540_v34 = vpop.permute.xlu0 %5984  ;;  %6229 = vrot.lane.b32.xlu1 %v7786_v1, %s6738_s25  ;;  %v3283_v43 = vsel %vm3265_vm6, %v11491_v18, %v5427_v54  ;;  %v3281_v24 = vsel %vm3265_vm6, %v11496_v57, %v5542_v4  ;;  %v3280_v54 = vsel %vm3265_vm6, %v11497_v21, %v5541_v20  ;;  %v5447_v18 = vunpack.i.h.bf16 %v11498_v37  ;;  %v11500_v4 = vld [vmem:[#allocation143_spill] sm:$0xff] }
 0x302   : > { %11488 = vst [vmem:[#allocation9_spill] sm:$0xff] %v8540_v34  ;;  %v11494_v34 = vld [vmem:[#allocation139_spill] sm:$0xff]  ;;  %v8557_v1 = vpop.permute.xlu1 %5949  ;;  %v5577_v57 = vunpack.i.h.bf16 %v11500_v4  ;;  %v5576_v20 = vunpack.i.l.bf16 %v11500_v4  ;;  %v11507_v4 = vld [vmem:[#allocation130_spill] sm:$0xff] }
 0x303   : > { %v5547_v30 = vunpack.i.h.bf16 %v11494_v34  ;;  %6274 = vrot.lane.b32.xlu0 %v7847_v2, %s6738_s25  ;;  %11495 = vst [vmem:[#allocation5_spill] sm:$0xff] %v8557_v1  ;;  %v5546_v11 = vunpack.i.l.bf16 %v11494_v34  ;;  %v5446_v2 = vunpack.i.l.bf16 %v11498_v37  ;;  %v11501_v34 = vld [vmem:[#allocation144_spill] sm:$0xff]  ;;  %v3286_v1 = vsel %vm3265_vm6, %v11503_v49, %v5431_v52  ;;  %v11504_v37 = vld [vmem:[#allocation43_spill] sm:$0xff] }
 0x304   : > { %v5452_v21 = vunpack.i.h.bf16 %v11501_v34  ;;  %v5451_v12 = vunpack.i.l.bf16 %v11501_v34  ;;  %v6248_v41 = vpack.i.bf16 %v11507_v4, %v11506_v59  ;;  %v11510_v52 = vunpack.i.l.bf16 %v11443_v6 }
 0x305   : > { %v8570_v9 = vpop.permute.xlu0 %5994  ;;  %6239 = vrot.lane.b32.xlu1 %v7882_v47, %s6739_s27  ;;  %v3284_v34 = vsel %vm3265_vm6, %v11508_v19, %v5546_v11  ;;  %v11511_v49 = vunpack.i.h.bf16 %v11443_v6  ;;  %v3340_v60 = vsel %vm258_vm0, %v3276_v16, %v5576_v20  ;;  %v3341_v11 = vsel %vm258_vm0, %v3277_v42, %v5577_v57  ;;  %v11517_v57 = vld [vmem:[#allocation53_spill] sm:$0xff] }
 0x306   : > { %11499 = vst [vmem:[#allocation102_spill] sm:$0xff] %v8570_v9  ;;  %v3285_v9 = vsel %vm3265_vm6, %v11504_v37, %v5547_v30  ;;  %v8586_v47 = vpop.permute.xlu1 %5959  ;;  %v8597_v62 = vsel %vm3394_vm7, %v3338_v35, %v11510_v52  ;;  %v3343_v30 = vsel %vm258_vm0, %v8448_v29, %v5447_v18  ;;  %v3346_v35 = vsel %vm258_vm0, %v3282_v26, %v5451_v12  ;;  %v11514_v18 = vld [vmem:[#allocation44_spill] sm:$0xff] }
 0x307   : > { %6284 = vrot.lane.b32.xlu0 %v7903_v45, %s6739_s27  ;;  %11505 = vst [vmem:[#allocation108_spill] sm:$0xff] %v8586_v47  ;;  %v3342_v45 = vsel %vm258_vm0, %v8458_v5, %v5446_v2  ;;  %v3404_v37 = vsel %vm3394_vm7, %v3339_v32, %v11511_v49  ;;  %v3347_v52 = vsel %vm258_vm0, %v3283_v43, %v5452_v21  ;;  %v11513_v5 = vld [vmem:[#allocation35_spill] sm:$0xff]  ;;  %v5456_v6 = vunpack.i.l.bf16 %v11514_v18 }
 0x308   : > { %v5582_v2 = vunpack.i.h.bf16 %v11513_v5  ;;  %v5581_v29 = vunpack.i.l.bf16 %v11513_v5  ;;  %v5457_v42 = vunpack.i.h.bf16 %v11514_v18  ;;  %v5587_v26 = vunpack.i.h.bf16 %v7892_v40 }
 0x309   : > { %v8606_v19 = vpop.permute.xlu0 %6004  ;;  %6249 = vrot.lane.b32.xlu1 %v6248_v41, %s6737_s13  ;;  %v11516_v41 = vld [vmem:[#allocation50_spill] sm:$0xff]  ;;  %v5586_v43 = vunpack.i.l.bf16 %v7892_v40  ;;  %v3288_v20 = vsel %vm3265_vm6, %v11517_v57, %v5551_v15  ;;  %v11518_v21 = vunpack.i.l.bf16 %v11449_v23  ;;  %v6303_v18 = vpack.i.bf16 %v7433_v55, %v7754_v61 }
 0x30a   : > { %11512 = vst [vmem:[#allocation112_spill] sm:$0xff] %v8606_v19  ;;  %v8618_v32 = vpop.permute.xlu1 %5969  ;;  %v3289_v16 = vsel %vm3265_vm6, %v11516_v41, %v5552_v33  ;;  %v11521_v33 = vld [vmem:[#allocation21_spill] sm:$0xff]  ;;  %v11522_v40 = vunpack.i.l.bf16 %v11476_v44  ;;  %v11523_v41 = vunpack.i.h.bf16 %v11476_v44  ;;  %v11525_v57 = vunpack.i.h.bf16 %v11457_v36  ;;  %v11610_v19 = vld [vmem:[#allocation180_spill] sm:$0xff] }
 0x30b   : > { %6294 = vrot.lane.b32.xlu0 %v7956_v39, %s6739_s27  ;;  %11515 = vst [vmem:[#allocation10_spill] sm:$0xff] %v8618_v32  ;;  %v3407_v12 = vsel %vm3394_vm7, %v3342_v45, %v11518_v21  ;;  %v11519_v39 = vunpack.i.h.bf16 %v11449_v23  ;;  %v11524_v23 = vunpack.i.l.bf16 %v11457_v36  ;;  %v5466_v36 = vunpack.i.l.bf16 %v7899_v56 }
 0x30c   : > { %v8642_v15 = vsel %vm3394_vm7, %v3340_v60, %v11522_v40  ;;  %v8647_v45 = vsel %vm3394_vm7, %v3341_v11, %v11523_v41  ;;  %v8657_v21 = vsel %vm3394_vm7, %v3347_v52, %v11525_v57  ;;  %v3345_v60 = vsel %vm258_vm0, %v3281_v24, %v5582_v2  ;;  %v11527_v41 = vld [vmem:[#allocation148_spill] sm:$0xff] }
 0x30d   : > { %v3408_v49 = vsel %vm3394_vm7, %v3343_v30, %v11519_v39  ;;  %v8633_v5 = vpop.permute.xlu0 %6014  ;;  %6259 = vrot.lane.b32.xlu1 %v11521_v33, %s6738_s25  ;;  %v8652_v30 = vsel %vm3394_vm7, %v3346_v35, %v11524_v23  ;;  %v3344_v39 = vsel %vm258_vm0, %v3280_v54, %v5581_v29  ;;  %v3350_v33 = vsel %vm258_vm0, %v3286_v1, %v5456_v6  ;;  %v11529_v1 = vld [vmem:[#allocation55_spill] sm:$0xff]  ;;  %v11530_v29 = vld [vmem:[#allocation152_spill] sm:$0xff] }
 0x30e   : > { %11520 = vst [vmem:[#allocation111_spill] sm:$0xff] %v8633_v5  ;;  %v8663_v44 = vpop.permute.xlu1 %5979  ;;  %v3351_v11 = vsel %vm258_vm0, %v3287_v63, %v5457_v42  ;;  %v3348_v35 = vsel %vm258_vm0, %v3284_v34, %v5586_v43  ;;  %v3349_v40 = vsel %vm258_vm0, %v3285_v9, %v5587_v26  ;;  %v5467_v52 = vunpack.i.h.bf16 %v7899_v56  ;;  %v11533_v26 = vld [vmem:[#allocation153_spill] sm:$0xff] }
 0x30f   : > { %6304 = vrot.lane.b32.xlu0 %v6303_v18, %s6737_s13  ;;  %11526 = vst [vmem:[#allocation11_spill] sm:$0xff] %v8663_v44  ;;  %v5592_v54 = vunpack.i.h.bf16 %v11527_v41  ;;  %v5591_v24 = vunpack.i.l.bf16 %v11527_v41  ;;  %v5472_v6 = vunpack.i.h.bf16 %v11530_v29  ;;  %v5471_v63 = vunpack.i.l.bf16 %v11530_v29  ;;  %v11601_v5 = vld [vmem:[#allocation177_spill] sm:$0xff] }
 0x310   : > { %v11531_v34 = vunpack.i.l.bf16 %v11478_v46  ;;  %v11532_v42 = vunpack.i.h.bf16 %v11478_v46  ;;  %v5616_v43 = vunpack.i.l.bf16 %v11533_v26  ;;  %v11534_v18 = vunpack.i.l.bf16 %v11472_v58 }
 0x311   : > { %v8672_v2 = vpop.permute.xlu0 %6024  ;;  %6269 = vrot.lane.b32.xlu1 %v11529_v1, %s6738_s25  ;;  %v11535_v57 = vunpack.i.h.bf16 %v11472_v58  ;;  %v8701_v46 = vsel %vm3459_vm9, %v8475_v53, %v5466_v36  ;;  %v11538_v1 = vunpack.i.l.bf16 %v11483_v14  ;;  %v11539_v58 = vunpack.i.h.bf16 %v11483_v14 }
 0x312   : > { %11528 = vst [vmem:[#allocation106_spill] sm:$0xff] %v8672_v2  ;;  %v3409_v9 = vsel %vm3394_vm7, %v3344_v39, %v11531_v34  ;;  %v3410_v56 = vsel %vm3394_vm7, %v3345_v60, %v11532_v42  ;;  %v8688_v23 = vsel %vm3394_vm7, %v3350_v33, %v11534_v18  ;;  %v8697_v39 = vpop.permute.xlu1 %5989  ;;  %11537 = vst [vmem:[#allocation13_spill] sm:$0xff] %v8701_v46  ;;  %v5617_v60 = vunpack.i.h.bf16 %v11533_v26  ;;  %v11551_v26 = vld [vmem:[#allocation159_spill] sm:$0xff]  ;;  %v11623_v46 = vld [vmem:[#allocation182_spill] sm:$0xff] }
 0x313   : > { %v8693_v41 = vsel %vm3394_vm7, %v3351_v11, %v11535_v57  ;;  %6314 = vrot.lane.b32.xlu0 %v7836_v13, %s6738_s25  ;;  %11536 = vst [vmem:[#allocation31_spill] sm:$0xff] %v8697_v39  ;;  %v3413_v33 = vsel %vm3394_vm7, %v3348_v35, %v11538_v1  ;;  %v3414_v11 = vsel %vm3394_vm7, %v3349_v40, %v11539_v58  ;;  %v11544_v40 = vld [vmem:[#allocation154_spill] sm:$0xff]  ;;  %v5626_v18 = vunpack.i.l.bf16 %v11551_v26 }
 0x314   : > { %v8712_v29 = vsel %vm3459_vm9, %v8480_v0, %v5467_v52  ;;  %v3352_v13 = vsel %vm258_vm0, %v3288_v20, %v5591_v24  ;;  %v3353_v34 = vsel %vm258_vm0, %v3289_v16, %v5592_v54  ;;  %v8722_v35 = vsel %vm3459_vm9, %v8597_v62, %v5471_v63  ;;  %v11546_v16 = vld [vmem:[#allocation162_spill] sm:$0xff]  ;;  %v11550_v63 = vld [vmem:[#allocation157_spill] sm:$0xff] }
 0x315   : > { %11540 = vst [vmem:[#allocation100_spill] sm:$0xff] %v8712_v29  ;;  %v8716_v53 = vpop.permute.xlu0 %6034  ;;  %6279 = vrot.lane.b32.xlu1 %v7251_v50, %s6739_s27  ;;  %11542 = vst [vmem:[#allocation118_spill] sm:$0xff] %v8722_v35  ;;  %v8725_v14 = vsel %vm3459_vm9, %v3404_v37, %v5472_v6  ;;  %v5477_v36 = vunpack.i.h.bf16 %v11544_v40  ;;  %v5476_v0 = vunpack.i.l.bf16 %v11544_v40  ;;  %v8731_v20 = vsel %vm3459_vm9, %v8491_v17, %v5616_v43  ;;  %v11549_v37 = vld [vmem:[#allocation156_spill] sm:$0xff]  ;;  %v11556_v40 = vld [vmem:[#allocation30_spill] sm:$0xff] }
 0x316   : > { %11541 = vst [vmem:[#allocation14_spill] sm:$0xff] %v8716_v53  ;;  %11543 = vst [vmem:[#allocation115_spill] sm:$0xff] %v8725_v14  ;;  %v5487_v52 = vunpack.i.h.bf16 %v11546_v16  ;;  %v5486_v54 = vunpack.i.l.bf16 %v11546_v16  ;;  %v8737_v50 = vpop.permute.xlu1 %5999  ;;  %v8741_v62 = vsel %vm3459_vm9, %v8494_v3, %v5617_v60  ;;  %v5622_v24 = vunpack.i.h.bf16 %v11549_v37  ;;  %v11555_v60 = vld [vmem:[#allocation163_spill] sm:$0xff]  ;;  %v11592_v53 = vld [vmem:[#allocation150_spill] sm:$0xff] }
 0x317   : > { %11545 = vst [vmem:[#allocation117_spill] sm:$0xff] %v8731_v20  ;;  %6324 = vrot.lane.b32.xlu0 %v7870_v28, %s6738_s25  ;;  %11547 = vst [vmem:[#allocation32_spill] sm:$0xff] %v8737_v50  ;;  %v5621_v6 = vunpack.i.l.bf16 %v11549_v37  ;;  %v5481_v17 = vunpack.i.l.bf16 %v11550_v63  ;;  %v5482_v42 = vunpack.i.h.bf16 %v11550_v63  ;;  %v5627_v43 = vunpack.i.h.bf16 %v11551_v26  ;;  %v11557_v37 = vld [vmem:[#allocation6_spill] sm:$0xff]  ;;  %v11616_v35 = vld [vmem:[#allocation181_spill] sm:$0xff] }
 0x318   : > { %11548 = vst [vmem:[#allocation24_spill] sm:$0xff] %v8741_v62  ;;  %v8754_v28 = vsel %vm3459_vm9, %v3407_v12, %v5476_v0  ;;  %v8757_v3 = vsel %vm3459_vm9, %v3408_v49, %v5477_v36  ;;  %v5632_v1 = vunpack.i.h.bf16 %v11555_v60  ;;  %v5631_v58 = vunpack.i.l.bf16 %v11555_v60  ;;  %v11559_v12 = vld [vmem:[#allocation77_spill] sm:$0xff]  ;;  %v11560_v49 = vld [vmem:[#allocation132_spill] sm:$0xff]  ;;  %v11618_v20 = vld [vmem:[#allocation78_spill] sm:$0xff] }
 0x319   : > { %v8749_v57 = vpop.permute.xlu0 %6044  ;;  %6289 = vrot.lane.b32.xlu1 %v7281_v8, %s6739_s27  ;;  %11553 = vst [vmem:[#allocation131_spill] sm:$0xff] %v8754_v28  ;;  %11554 = vst [vmem:[#allocation133_spill] sm:$0xff] %v8757_v3  ;;  %v3269_v16 = vsel %vm3265_vm6, %v11556_v40, %v5487_v52  ;;  %v3268_v63 = vsel %vm3265_vm6, %v11557_v37, %v5486_v54  ;;  %v5656_v26 = vunpack.i.l.bf16 %v8024_v25  ;;  %v5657_v60 = vunpack.i.h.bf16 %v8024_v25  ;;  %v11575_v37 = vld [vmem:[#allocation168_spill] sm:$0xff]  ;;  %v11606_v28 = vld [vmem:[#allocation71_spill] sm:$0xff] }
 0x31a   : > { %11552 = vst [vmem:[#allocation120_spill] sm:$0xff] %v8749_v57  ;;  %v8768_v8 = vpop.permute.xlu1 %6009  ;;  %v6298_v36 = vpack.i.bf16 %v11560_v49, %v11559_v12  ;;  %v8774_v0 = vsel %vm3459_vm9, %v8642_v15, %v5621_v6  ;;  %v8778_v52 = vsel %vm3459_vm9, %v8647_v45, %v5622_v24  ;;  %v8782_v54 = vsel %vm3459_vm9, %v8652_v30, %v5481_v17  ;;  %v11572_v24 = vld [vmem:[#allocation164_spill] sm:$0xff] }
 0x31b   : > { %6334 = vrot.lane.b32.xlu0 %v7944_v48, %s6739_s27  ;;  %11558 = vst [vmem:[#allocation127_spill] sm:$0xff] %v8768_v8  ;;  %11561 = vst [vmem:[#allocation135_spill] sm:$0xff] %v8774_v0  ;;  %v8787_v48 = vsel %vm3459_vm9, %v8657_v21, %v5482_v42  ;;  %v8790_v40 = vsel %vm3459_vm9, %v3409_v9, %v5626_v18  ;;  %v8793_v15 = vsel %vm3459_vm9, %v3410_v56, %v5627_v43  ;;  %v11591_v17 = vld [vmem:[#allocation136_spill] sm:$0xff] }
 0x31c   : > { %11562 = vst [vmem:[#allocation140_spill] sm:$0xff] %v8778_v52  ;;  %11563 = vst [vmem:[#allocation33_spill] sm:$0xff] %v8782_v54  ;;  %v11568_v45 = vunpack.i.l.bf16 %v11469_v22  ;;  %v11569_v25 = vunpack.i.h.bf16 %v11469_v22  ;;  %v8809_v9 = vsel %vm3459_vm9, %v3413_v33, %v5631_v58  ;;  %v8812_v56 = vsel %vm3459_vm9, %v3414_v11, %v5632_v1  ;;  %v11574_v33 = vld [vmem:[#allocation166_spill] sm:$0xff]  ;;  %v11598_v54 = vld [vmem:[#allocation147_spill] sm:$0xff] }
 0x31d   : > { %11564 = vst [vmem:[#allocation15_spill] sm:$0xff] %v8787_v48  ;;  %11565 = vst [vmem:[#allocation17_spill] sm:$0xff] %v8790_v40  ;;  %v8795_v6 = vpop.permute.xlu0 %6054  ;;  %6299 = vrot.lane.b32.xlu1 %v6298_v36, %s6737_s13  ;;  %v8817_v43 = vsel %vm3394_vm7, %v3352_v13, %v5656_v26  ;;  %v8824_v18 = vsel %vm3394_vm7, %v3353_v34, %v5657_v60  ;;  %v11578_v36 = vld [vmem:[#allocation138_spill] sm:$0xff]  ;;  %v11579_v34 = vld [vmem:[#allocation27_spill] sm:$0xff]  ;;  %v11580_v58 = vunpack.i.l.bf16 %v11466_v27  ;;  %v5566_v0 = vunpack.i.l.bf16 %v11610_v19 }
 0x31e   : > { %11566 = vst [vmem:[#allocation18_spill] sm:$0xff] %v8793_v15  ;;  %11567 = vst [vmem:[#allocation137_spill] sm:$0xff] %v8795_v6  ;;  %v8801_v30 = vsel %vm258_vm0, %v3268_v63, %v11568_v45  ;;  %v8806_v21 = vsel %vm258_vm0, %v3269_v16, %v11569_v25  ;;  %v8821_v22 = vpop.permute.xlu1 %6019  ;;  %v6353_v60 = vpack.i.bf16 %v11579_v34, %v11578_v36  ;;  %v11582_v63 = vunpack.i.h.bf16 %v11466_v27  ;;  %v11586_v25 = vld [vmem:[#allocation172_spill] sm:$0xff]  ;;  %v11595_v16 = vld [vmem:[#allocation145_spill] sm:$0xff] }
 0x31f   : > { %11570 = vst [vmem:[#allocation139_spill] sm:$0xff] %v8809_v9  ;;  %11571 = vst [vmem:[#allocation38_spill] sm:$0xff] %v8812_v56  ;;  %6344 = vrot.lane.b32.xlu0 %v7976_v10, %s6739_s27  ;;  %v11577_v10 = vld [vmem:[#allocation26_spill] sm:$0xff]  ;;  %v8844_v11 = vsel %vm3459_vm9, %v8499_v51, %v11580_v58  ;;  %v11587_v51 = vld [vmem:[#allocation173_spill] sm:$0xff]  ;;  %v5702_v14 = vunpack.i.h.bf16 %v11616_v35  ;;  %v5701_v50 = vunpack.i.l.bf16 %v11616_v35  ;;  %v5572_v29 = vunpack.i.h.bf16 %v11623_v46 }
 0x320   : > { %11573 = vst [vmem:[#allocation19_spill] sm:$0xff] %v8821_v22  ;;  %11581 = vst [vmem:[#allocation143_spill] sm:$0xff] %v8844_v11  ;;  %v8850_v13 = vsel %vm3459_vm9, %v8504_v38, %v11582_v63  ;;  %v5557_v58 = vunpack.i.h.bf16 %v11587_v51  ;;  %v5556_v27 = vunpack.i.l.bf16 %v11587_v51  ;;  %v11589_v38 = vld [vmem:[#allocation57_spill] sm:$0xff]  ;;  %v11590_v63 = vld [vmem:[#allocation82_spill] sm:$0xff]  ;;  %v5571_v35 = vunpack.i.l.bf16 %v11623_v46 }
 0x321   : > { %v8832_v26 = vpop.permute.xlu0 %6064  ;;  %6309 = vrot.lane.b32.xlu1 %v11577_v10, %s6738_s25  ;;  %11583 = vst [vmem:[#allocation144_spill] sm:$0xff] %v8850_v13  ;;  %v6348_v42 = vpack.i.bf16 %v11591_v17, %v11590_v63  ;;  %v11597_v51 = vld [vmem:[#allocation121_spill] sm:$0xff]  ;;  %v11599_v34 = vld [vmem:[#allocation36_spill] sm:$0xff]  ;;  %v11632_v13 = vld [vmem:[#allocation51_spill] sm:$0xff] }
 0x322   : > { %11576 = vst [vmem:[#allocation142_spill] sm:$0xff] %v8832_v26  ;;  %v8855_v45 = vpop.permute.xlu1 %6029  ;;  %v11600_v22 = vld [vmem:[#allocation37_spill] sm:$0xff]  ;;  %v11607_v3 = vld [vmem:[#allocation72_spill] sm:$0xff]  ;;  %v11637_v6 = vld [vmem:[#allocation86_spill] sm:$0xff] }
 0x323   : > { %6354 = vrot.lane.b32.xlu0 %v6353_v60, %s6737_s13  ;;  %11585 = vst [vmem:[#allocation22_spill] sm:$0xff] %v8855_v45  ;;  %v11593_v60 = vld [vmem:[#allocation125_spill] sm:$0xff]  ;;  %v11594_v45 = vld [vmem:[#allocation175_spill] sm:$0xff]  ;;  %v3290_v2 = vsel %vm3265_vm6, %v11600_v22, %v5556_v27  ;;  %v11622_v62 = vld [vmem:[#allocation48_spill] sm:$0xff] }
 0x324   : > { %v6403_v47 = vpack.i.bf16 %v11593_v60, %v11592_v53  ;;  %v5692_v9 = vunpack.i.h.bf16 %v11594_v45  ;;  %v5691_v1 = vunpack.i.l.bf16 %v11594_v45  ;;  %v5562_v60 = vunpack.i.h.bf16 %v11601_v5  ;;  %v11603_v45 = vld [vmem:[#allocation61_spill] sm:$0xff]  ;;  %v11649_v57 = vld [vmem:[#allocation192_spill] sm:$0xff] }
 0x325   : > { %v8861_v32 = vpop.permute.xlu0 %6074  ;;  %6319 = vrot.lane.b32.xlu1 %v11589_v38, %s6738_s25  ;;  %v3291_v38 = vsel %vm3265_vm6, %v11599_v34, %v5557_v58  ;;  %v5561_v53 = vunpack.i.l.bf16 %v11601_v5  ;;  %v11608_v58 = vld [vmem:[#allocation178_spill] sm:$0xff]  ;;  %v11615_v52 = vld [vmem:[#allocation149_spill] sm:$0xff] }
 0x326   : > { %11588 = vst [vmem:[#allocation23_spill] sm:$0xff] %v8861_v32  ;;  %v8873_v56 = vpop.permute.xlu1 %6039  ;;  %v3293_v48 = vsel %vm3265_vm6, %v11606_v28, %v5692_v9  ;;  %v3292_v34 = vsel %vm3265_vm6, %v11607_v3, %v5691_v1  ;;  %v5697_v22 = vunpack.i.h.bf16 %v11608_v58  ;;  %v5696_v27 = vunpack.i.l.bf16 %v11608_v58  ;;  %v11609_v5 = vld [vmem:[#allocation146_spill] sm:$0xff]  ;;  %v11613_v1 = vld [vmem:[#allocation64_spill] sm:$0xff] }
 0x327   : > { %6364 = vrot.lane.b32.xlu0 %v11595_v16, %s6738_s25  ;;  %11596 = vst [vmem:[#allocation43_spill] sm:$0xff] %v8873_v56  ;;  %v11604_v16 = vld [vmem:[#allocation151_spill] sm:$0xff]  ;;  %v11605_v56 = vld [vmem:[#allocation41_spill] sm:$0xff]  ;;  %v11611_v28 = vld [vmem:[#allocation42_spill] sm:$0xff] }
 0x328   : > { %v3295_v15 = vsel %vm3265_vm6, %v11605_v56, %v5562_v60  ;;  %v3294_v9 = vsel %vm3265_vm6, %v11611_v28, %v5561_v53  ;;  %v11614_v58 = vld [vmem:[#allocation126_spill] sm:$0xff]  ;;  %v3296_v60 = vsel %vm3265_vm6, %v11618_v20, %v5696_v27  ;;  %v11619_v53 = vld [vmem:[#allocation155_spill] sm:$0xff]  ;;  %v11625_v20 = vld [vmem:[#allocation81_spill] sm:$0xff] }
 0x329   : > { %v8883_v40 = vpop.permute.xlu0 %6084  ;;  %6329 = vrot.lane.b32.xlu1 %v11603_v45, %s6739_s27  ;;  %v5567_v45 = vunpack.i.h.bf16 %v11610_v19 }
 0x32a   : > { %11602 = vst [vmem:[#allocation73_spill] sm:$0xff] %v8883_v40  ;;  %v8897_v8 = vpop.permute.xlu1 %6049  ;;  %v11617_v40 = vld [vmem:[#allocation76_spill] sm:$0xff] }
 0x32b   : > { %6374 = vrot.lane.b32.xlu0 %v11609_v5, %s6738_s25  ;;  %v3297_v19 = vsel %vm3265_vm6, %v11617_v40, %v5697_v22  ;;  %v3298_v5 = vsel %vm3265_vm6, %v11622_v62, %v5566_v0  ;;  %v3301_v40 = vsel %vm3265_vm6, %v11625_v20, %v5702_v14  ;;  %v11626_v22 = vld [vmem:[#allocation83_spill] sm:$0xff]  ;;  %v11629_v0 = vld [vmem:[#allocation160_spill] sm:$0xff]  ;;  %v8945_v14 = vsel %vm3265_vm6, %v11632_v13, %v5572_v29 }
 0x32c   : > { %v3300_v27 = vsel %vm3265_vm6, %v11626_v22, %v5701_v50  ;;  %v11633_v50 = vld [vmem:[#allocation52_spill] sm:$0xff]  ;;  %v11638_v13 = vld [vmem:[#allocation87_spill] sm:$0xff] }
 0x32d   : > { %v8905_v3 = vpop.permute.xlu0 %6094  ;;  %6339 = vrot.lane.b32.xlu1 %v11613_v1, %s6739_s27  ;;  %v3302_v20 = vsel %vm3265_vm6, %v11633_v50, %v5571_v35 }
 0x32e   : > { %11612 = vst [vmem:[#allocation130_spill] sm:$0xff] %v8905_v3  ;;  %v8919_v28 = vpop.permute.xlu1 %6059  ;;  %v11621_v3 = vld [vmem:[#allocation47_spill] sm:$0xff] }
 0x32f   : > { %6384 = vrot.lane.b32.xlu0 %v11619_v53, %s6739_s27  ;;  %11620 = vst [vmem:[#allocation45_spill] sm:$0xff] %v8919_v28  ;;  %v3299_v1 = vsel %vm3265_vm6, %v11621_v3, %v5567_v45  ;;  %v11627_v53 = vld [vmem:[#allocation184_spill] sm:$0xff]  ;;  %v11628_v45 = vld [vmem:[#allocation183_spill] sm:$0xff] }
 0x330   : > { %v5596_v32 = vunpack.i.l.bf16 %v11627_v53  ;;  %v5707_v3 = vunpack.i.h.bf16 %v11628_v45  ;;  %v5706_v62 = vunpack.i.l.bf16 %v11628_v45  ;;  %v11635_v45 = vld [vmem:[#allocation56_spill] sm:$0xff] }
 0x331   : > { %v8927_v39 = vpop.permute.xlu0 %6104  ;;  %6349 = vrot.lane.b32.xlu1 %v6348_v42, %s6737_s13  ;;  %v11631_v42 = vld [vmem:[#allocation188_spill] sm:$0xff] }
 0x332   : > { %11624 = vst [vmem:[#allocation141_spill] sm:$0xff] %v8927_v39  ;;  %v8939_v46 = vpop.permute.xlu1 %6069  ;;  %v5597_v39 = vunpack.i.h.bf16 %v11627_v53  ;;  %v5731_v11 = vunpack.i.l.bf16 %v11631_v42  ;;  %v5732_v22 = vunpack.i.h.bf16 %v11631_v42  ;;  %v8959_v29 = vsel %vm3265_vm6, %v11637_v6, %v5707_v3 }
 0x333   : > { %6394 = vrot.lane.b32.xlu0 %v11629_v0, %s6739_s27  ;;  %11630 = vst [vmem:[#allocation35_spill] sm:$0xff] %v8939_v46  ;;  %v3354_v0 = vsel %vm258_vm0, %v3290_v2, %v5596_v32  ;;  %v11636_v46 = vld [vmem:[#allocation190_spill] sm:$0xff]  ;;  %v8963_v35 = vsel %vm3265_vm6, %v11638_v13, %v5706_v62  ;;  %v11640_v2 = vld [vmem:[#allocation29_spill] sm:$0xff]  ;;  %v11644_v62 = vld [vmem:[#allocation119_spill] sm:$0xff] }
 0x334   : > { %v5602_v53 = vunpack.i.h.bf16 %v11636_v46  ;;  %v5601_v26 = vunpack.i.l.bf16 %v11636_v46  ;;  %v3355_v50 = vsel %vm258_vm0, %v3291_v38, %v5597_v39  ;;  %v3356_v32 = vsel %vm258_vm0, %v3292_v34, %v5731_v11  ;;  %v11642_v46 = vld [vmem:[#allocation101_spill] sm:$0xff]  ;;  %v11647_v39 = vld [vmem:[#allocation59_spill] sm:$0xff] }
 0x335   : > { %v8950_v44 = vpop.permute.xlu0 %6114  ;;  %6359 = vrot.lane.b32.xlu1 %v11635_v45, %s6738_s25  ;;  %v5736_v45 = vunpack.i.l.bf16 %v11640_v2  ;;  %v3357_v6 = vsel %vm258_vm0, %v3293_v48, %v5732_v22  ;;  %v5737_v3 = vunpack.i.h.bf16 %v11640_v2  ;;  %v11645_v13 = vunpack.i.l.bf16 %v11644_v62  ;;  %v11648_v34 = vld [vmem:[#allocation191_spill] sm:$0xff] }
 0x336   : > { %11634 = vst [vmem:[#allocation44_spill] sm:$0xff] %v8950_v44  ;;  %v8966_v42 = vpop.permute.xlu1 %6079  ;;  %v11641_v44 = vld [vmem:[#allocation84_spill] sm:$0xff]  ;;  %v8989_v11 = vsel %vm1120_vm3, 0.0, %v11642_v46  ;;  %v3358_v38 = vsel %vm258_vm0, %v3294_v9, %v5601_v26  ;;  %v3359_v48 = vsel %vm258_vm0, %v3295_v15, %v5602_v53  ;;  %v5607_v22 = vunpack.i.h.bf16 %v11648_v34  ;;  %v11652_v26 = vld [vmem:[#allocation165_spill] sm:$0xff] }
 0x337   : > { %6404 = vrot.lane.b32.xlu0 %v6403_v47, %s6737_s13  ;;  %11639 = vst [vmem:[#allocation50_spill] sm:$0xff] %v8966_v42  ;;  %v8974_v28 = vsel %vm1120_vm3, %v11642_v46, %v11641_v44  ;;  %v8981_v47 = vsel %vm3394_vm7, %v3354_v0, %v11645_v13  ;;  %v5606_v2 = vunpack.i.l.bf16 %v11648_v34  ;;  %v5741_v0 = vunpack.i.l.bf16 %v11649_v57 }
 0x338   : > { %11643 = vst [vmem:[#allocation53_spill] sm:$0xff] %v8974_v28  ;;  %v11650_v13 = vunpack.i.h.bf16 %v11644_v62  ;;  %v2864_v9 = vrot.slane %v8974_v28, 1  ;;  %v3360_v53 = vsel %vm258_vm0, %v3296_v60, %v5736_v45  ;;  %v5742_v34 = vunpack.i.h.bf16 %v11649_v57 }
 0x339   : > { %v8983_v42 = vpop.permute.xlu0 %6124  ;;  %6369 = vrot.lane.b32.xlu1 %v11647_v39, %s6738_s25  ;;  %v11651_v39 = vunpack.i.l.bf16 %v8038_v31  ;;  %v11654_v62 = vunpack.i.h.bf16 %v8038_v31  ;;  %v11659_v31 = vld [vmem:[#allocation62_spill] sm:$0xff] }
 0x33a   : > { %11646 = vst [vmem:[#allocation21_spill] sm:$0xff] %v8983_v42  ;;  %v8999_v42 = vsel %vm3394_vm7, %v3355_v50, %v11650_v13  ;;  %v9008_v15 = vpop.permute.xlu1 %6089  ;;  %v2863_v13 = vrot.slane %v8989_v11, 1 }
 0x33b   : > { %v9004_v46 = vsel %vm3394_vm7, %v3356_v32, %v11651_v39  ;;  %6414 = vrot.lane.b32.xlu0 %v11652_v26, %s6738_s25  ;;  %11653 = vst [vmem:[#allocation148_spill] sm:$0xff] %v9008_v15  ;;  %v9016_v50 = vsel %vm3394_vm7, %v3357_v6, %v11654_v62  ;;  %v3361_v32 = vsel %vm258_vm0, %v3297_v19, %v5737_v3  ;;  %v11655_v39 = vld [vmem:[#allocation124_spill] sm:$0xff]  ;;  %v11660_v3 = vld [vmem:[#allocation193_spill] sm:$0xff] }
 0x33c   : > { %v11656_v10 = vunpack.i.l.bf16 %v11655_v39  ;;  %v11657_v15 = vunpack.i.h.bf16 %v11655_v39  ;;  %v3362_v6 = vsel %vm258_vm0, %v3298_v5, %v5606_v2  ;;  %v3363_v19 = vsel %vm258_vm0, %v3299_v1, %v5607_v22 }
 0x33d   : > { %v9030_v57 = vpop.permute.xlu0 %6134  ;;  %6379 = vrot.lane.b32.xlu1 %v11659_v31, %s6739_s27  ;;  %v5611_v62 = vunpack.i.l.bf16 %v11660_v3  ;;  %v11662_v31 = vld [vmem:[#allocation174_spill] sm:$0xff]  ;;  %v3065_v1 = vrot.slane %v8974_v28, 2  ;;  %v3365_v22 = vsel %vm258_vm0, %v3301_v40, %v5742_v34  ;;  %v11664_v2 = vunpack.i.h.bf16 %v8053_v7  ;;  %v11670_v34 = vld [vmem:[#allocation93_spill] sm:$0xff] }
 0x33e   : > { %v9023_v26 = vsel %vm3394_vm7, %v3358_v38, %v11656_v10  ;;  %v9028_v60 = vsel %vm3394_vm7, %v3359_v48, %v11657_v15  ;;  %11658 = vst [vmem:[#allocation55_spill] sm:$0xff] %v9030_v57  ;;  %v3364_v38 = vsel %vm258_vm0, %v3300_v27, %v5741_v0  ;;  %v5612_v48 = vunpack.i.h.bf16 %v11660_v3  ;;  %v9049_v5 = vpop.permute.xlu1 %6099  ;;  %v11665_v0 = vld [vmem:[#allocation88_spill] sm:$0xff] }
 0x33f   : > { %v11661_v15 = vunpack.i.l.bf16 %v8053_v7  ;;  %6424 = vrot.lane.b32.xlu0 %v11662_v31, %s6738_s25  ;;  %11663 = vst [vmem:[#allocation152_spill] sm:$0xff] %v9049_v5  ;;  %v9056_v27 = vsel %vm3394_vm7, %v3361_v32, %v11664_v2  ;;  %v9061_v3 = vsel %vm1120_vm3, %v11641_v44, %v11665_v0  ;;  %v11667_v31 = vld [vmem:[#allocation129_spill] sm:$0xff]  ;;  %v11671_v32 = vunpack.i.l.bf16 %v11670_v34  ;;  %v11674_v5 = vld [vmem:[#allocation194_spill] sm:$0xff] }
 0x340   : > { %v11668_v10 = vunpack.i.l.bf16 %v11667_v31  ;;  %v11669_v7 = vunpack.i.h.bf16 %v11667_v31 }
 0x341   : > { %v9045_v39 = vsel %vm3394_vm7, %v3360_v53, %v11661_v15  ;;  %v11666_v53 = vld [vmem:[#allocation40_spill] sm:$0xff]  ;;  %v3397_v44 = vsel %vm3394_vm7, %v8801_v30, %v11671_v32  ;;  %v9082_v2 = vpop.permute.xlu0 %6144  ;;  %v3367_v30 = vsel %vm258_vm0, %v8945_v14, %v5612_v48  ;;  %v11677_v32 = vunpack.i.h.bf16 %v11586_v25  ;;  %v11681_v48 = vld [vmem:[#allocation114_spill] sm:$0xff] }
 0x342   : > { %v9066_v15 = vsel %vm1120_vm3, %v11665_v0, %v11666_v53  ;;  %v9071_v45 = vsel %vm3394_vm7, %v3362_v6, %v11668_v10  ;;  %v9076_v40 = vsel %vm3394_vm7, %v3363_v19, %v11669_v7  ;;  %11672 = vst [vmem:[#allocation153_spill] sm:$0xff] %v9082_v2  ;;  %v11673_v0 = vld [vmem:[#allocation66_spill] sm:$0xff]  ;;  %v3366_v53 = vsel %vm258_vm0, %v3302_v20, %v5611_v62  ;;  %v11678_v20 = vld [vmem:[#allocation169_spill] sm:$0xff]  ;;  %v9106_v62 = vpop.permute.xlu1 %6109 }
 0x343   : > { %6389 = vrot.lane.b32.xlu1 %v11673_v0, %s6739_s27  ;;  %v5746_v6 = vunpack.i.l.bf16 %v11674_v5  ;;  %v11675_v10 = vunpack.i.l.bf16 %v11586_v25  ;;  %v11676_v19 = vunpack.i.h.bf16 %v11670_v34  ;;  %v9102_v0 = vsel %vm3394_vm7, %v3365_v22, %v11677_v32  ;;  %6434 = vrot.lane.b32.xlu0 %v11678_v20, %s6739_s27  ;;  %11679 = vst [vmem:[#allocation154_spill] sm:$0xff] %v9106_v62  ;;  %v11683_v32 = vld [vmem:[#allocation196_spill] sm:$0xff] }
 0x344   : > { %v2866_v34 = vrot.slane %v9061_v3, 1  ;;  %v11682_v25 = vunpack.i.l.bf16 %v11681_v48  ;;  %v5772_v2 = vunpack.i.h.bf16 %v11683_v32  ;;  %v5771_v20 = vunpack.i.l.bf16 %v11683_v32 }
 0x345   : > { %v9091_v31 = vsel %vm3394_vm7, %v3364_v38, %v11675_v10  ;;  %v3398_v7 = vsel %vm3394_vm7, %v8806_v21, %v11676_v19  ;;  %v2868_v38 = vrot.slane %v9066_v15, 1  ;;  %v5747_v10 = vunpack.i.h.bf16 %v11674_v5  ;;  %v11680_v21 = vld [vmem:[#allocation195_spill] sm:$0xff] }
 0x346   : > { %v5637_v19 = vunpack.i.h.bf16 %v11680_v21  ;;  %v5636_v14 = vunpack.i.l.bf16 %v11680_v21  ;;  %v9116_v22 = vsel %vm3459_vm9, %v3397_v44, %v11682_v25  ;;  %v11684_v62 = vunpack.i.l.bf16 %v11572_v24  ;;  %v9130_v21 = vpop.permute.xlu0 %6154 }
 0x347   : > { %v11685_v5 = vunpack.i.h.bf16 %v11681_v48  ;;  %11686 = vst [vmem:[#allocation162_spill] sm:$0xff] %v9130_v21  ;;  %v11687_v44 = vpack.i.bf16 %v11598_v54, %v11597_v51  ;;  %v9138_v25 = vsel %vm258_vm0, %v8963_v35, %v5746_v6  ;;  %v11688_v32 = vunpack.i.h.bf16 %v11572_v24  ;;  %v11689_v48 = vld [vmem:[#allocation158_spill] sm:$0xff] }
 0x348   : > { %v9123_v28 = vsel %vm3394_vm7, %v3366_v53, %v11684_v62  ;;  %v3069_v62 = vrot.slane %v9066_v15, 2  ;;  %6444 = vrot.lane.b32.xlu0 %v11689_v48, %s6739_s27  ;;  %v9155_v35 = vsel %vm1399_vm4, %v2864_v9, %v2866_v34  ;;  %v9158_v24 = vsel %vm1399_vm4, %v2866_v34, %v2868_v38  ;;  %v11694_v6 = vld [vmem:[#allocation46_spill] sm:$0xff] }
 0x349   : > { %v9128_v57 = vsel %vm3459_vm9, %v3398_v7, %v11685_v5  ;;  %6399 = vrot.lane.b32.xlu1 %v11687_v44, %s6737_s13  ;;  %v9143_v53 = vsel %vm3394_vm7, %v3367_v30, %v11688_v32  ;;  %v3067_v7 = vrot.slane %v9061_v3, 2  ;;  %v9149_v5 = vpop.permute.xlu1 %6119  ;;  %v9152_v44 = vsel %vm1399_vm4, %v2863_v13, %v2864_v9  ;;  %11692 = vst [vmem:[#allocation159_spill] sm:$0xff] %v9155_v35  ;;  %v11740_v21 = vld [vmem:[#allocation70_spill] sm:$0xff] }
 0x34a   : > { %11690 = vst [vmem:[#allocation156_spill] sm:$0xff] %v9149_v5  ;;  %11691 = vst [vmem:[#allocation157_spill] sm:$0xff] %v9152_v44  ;;  %v11695_v30 = vrot.slane %v11694_v6, 1  ;;  %v3369_v54 = vsel %vm258_vm0, %v8959_v29, %v5747_v10  ;;  %v9169_v48 = vsel %vm3459_vm9, %v8688_v23, %v5636_v14  ;;  %v9173_v13 = vsel %vm3459_vm9, %v8693_v41, %v5637_v19  ;;  %v11701_v29 = vld [vmem:[#allocation197_spill] sm:$0xff]  ;;  %v9187_v14 = vpop.permute.xlu0 %6164  ;;  %v11703_v41 = vld [vmem:[#allocation58_spill] sm:$0xff] }
 0x34b   : > { %11693 = vst [vmem:[#allocation163_spill] sm:$0xff] %v9158_v24  ;;  %11697 = vst [vmem:[#allocation6_spill] sm:$0xff] %v9169_v48  ;;  %v9179_v34 = vsel %vm3459_vm9, %v8817_v43, %v5771_v20  ;;  %v5642_v10 = vunpack.i.h.bf16 %v11701_v29  ;;  %v5641_v23 = vunpack.i.l.bf16 %v11701_v29  ;;  %v11704_v20 = vrot.slane %v8989_v11, 2  ;;  %v11748_v24 = vld [vmem:[#allocation79_spill] sm:$0xff] }
 0x34c   : > { %v9163_v32 = vsel %vm1399_vm4, %v2868_v38, %v11695_v30  ;;  %11698 = vst [vmem:[#allocation77_spill] sm:$0xff] %v9173_v13  ;;  %11699 = vst [vmem:[#allocation132_spill] sm:$0xff] %v9179_v34  ;;  %v9183_v38 = vsel %vm3459_vm9, %v8824_v18, %v5772_v2  ;;  %v9201_v2 = vsel %vm1736_vm5, %v3065_v1, %v3067_v7  ;;  %v11707_v30 = vld [vmem:[#allocation198_spill] sm:$0xff]  ;;  %v11761_v35 = vunpack.i.l.bf16 %v11574_v33 }
 0x34d   : > { %11696 = vst [vmem:[#allocation30_spill] sm:$0xff] %v9163_v32  ;;  %11700 = vst [vmem:[#allocation164_spill] sm:$0xff] %v9183_v38  ;;  %6409 = vrot.lane.b32.xlu1 %v11703_v41, %s6738_s25  ;;  %v9198_v18 = vsel %vm1736_vm5, %v11704_v20, %v3065_v1  ;;  %v5777_v29 = vunpack.i.h.bf16 %v11707_v30  ;;  %v5776_v9 = vunpack.i.l.bf16 %v11707_v30  ;;  %v11708_v41 = vpack.i.bf16 %v11605_v56, %v11604_v16  ;;  %v9209_v19 = vpop.permute.xlu1 %6129  ;;  %v11713_v1 = vld [vmem:[#allocation199_spill] sm:$0xff]  ;;  %v11714_v30 = vld [vmem:[#allocation28_spill] sm:$0xff] }
 0x34e   : > { %11702 = vst [vmem:[#allocation166_spill] sm:$0xff] %v9187_v14  ;;  %11705 = vst [vmem:[#allocation168_spill] sm:$0xff] %v9198_v18  ;;  %v9212_v43 = vsel %vm1736_vm5, %v3067_v7, %v3069_v62  ;;  %v11711_v20 = vrot.slane %v11694_v6, 2  ;;  %v5647_v51 = vunpack.i.h.bf16 %v11713_v1  ;;  %v5646_v34 = vunpack.i.l.bf16 %v11713_v1  ;;  %v11715_v56 = vld [vmem:[#allocation200_spill] sm:$0xff]  ;;  %v11716_v16 = vld [vmem:[#allocation201_spill] sm:$0xff]  ;;  %v9227_v6 = vpop.permute.xlu0 %6174 }
 0x34f   : > { %11706 = vst [vmem:[#allocation26_spill] sm:$0xff] %v9201_v2  ;;  %6454 = vrot.lane.b32.xlu0 %v11708_v41, %s6737_s13  ;;  %11709 = vst [vmem:[#allocation138_spill] sm:$0xff] %v9209_v19  ;;  %v5782_v38 = vunpack.i.h.bf16 %v11714_v30  ;;  %v5781_v48 = vunpack.i.l.bf16 %v11714_v30  ;;  %v5652_v41 = vunpack.i.h.bf16 %v11715_v56  ;;  %v5651_v19 = vunpack.i.l.bf16 %v11715_v56  ;;  %v11721_v30 = vld [vmem:[#allocation203_spill] sm:$0xff]  ;;  %v11749_v32 = vld [vmem:[#allocation214_spill] sm:$0xff] }
 0x350   : > { %11710 = vst [vmem:[#allocation172_spill] sm:$0xff] %v9212_v43  ;;  %v9217_v5 = vsel %vm1736_vm5, %v3069_v62, %v11711_v20  ;;  %v5787_v7 = vunpack.i.h.bf16 %v11716_v16  ;;  %v5786_v13 = vunpack.i.l.bf16 %v11716_v16  ;;  %11717 = vst [vmem:[#allocation57_spill] sm:$0xff] %v9227_v6  ;;  %v11718_v62 = vld [vmem:[#allocation60_spill] sm:$0xff]  ;;  %v9233_v20 = vsel %vm3459_vm9, %v8981_v47, %v5641_v23  ;;  %v11724_v23 = vld [vmem:[#allocation167_spill] sm:$0xff] }
 0x351   : > { %11712 = vst [vmem:[#allocation173_spill] sm:$0xff] %v9217_v5  ;;  %6419 = vrot.lane.b32.xlu1 %v11718_v62, %s6738_s25  ;;  %11719 = vst [vmem:[#allocation82_spill] sm:$0xff] %v9233_v20  ;;  %v9237_v1 = vsel %vm3459_vm9, %v8999_v42, %v5642_v10  ;;  %v5801_v14 = vunpack.i.l.bf16 %v11721_v30  ;;  %v9244_v16 = vsel %vm3459_vm9, %v9004_v46, %v5776_v9  ;;  %v5802_v47 = vunpack.i.h.bf16 %v11721_v30  ;;  %v9253_v42 = vpop.permute.xlu1 %6139  ;;  %v11733_v10 = vld [vmem:[#allocation210_spill] sm:$0xff]  ;;  %v11739_v6 = vld [vmem:[#allocation213_spill] sm:$0xff] }
 0x352   : > { %11720 = vst [vmem:[#allocation136_spill] sm:$0xff] %v9237_v1  ;;  %11722 = vst [vmem:[#allocation175_spill] sm:$0xff] %v9244_v16  ;;  %v9248_v62 = vsel %vm3459_vm9, %v9016_v50, %v5777_v29  ;;  %v9259_v56 = vsel %vm3459_vm9, %v9023_v26, %v5646_v34  ;;  %v9263_v46 = vsel %vm3459_vm9, %v9028_v60, %v5647_v51  ;;  %v11746_v2 = vld [vmem:[#allocation123_spill] sm:$0xff]  ;;  %v5726_v44 = vunpack.i.l.bf16 %v11749_v32 }
 0x353   : > { %11723 = vst [vmem:[#allocation145_spill] sm:$0xff] %v9248_v62  ;;  %6464 = vrot.lane.b32.xlu0 %v11724_v23, %s6738_s25  ;;  %v9267_v50 = vsel %vm3459_vm9, %v9045_v39, %v5781_v48  ;;  %v9271_v9 = vsel %vm3459_vm9, %v9056_v27, %v5782_v38  ;;  %v9275_v29 = vsel %vm3459_vm9, %v9071_v45, %v5651_v19  ;;  %v9289_v39 = vpop.permute.xlu0 %6184  ;;  %v11726_v27 = vld [vmem:[#allocation65_spill] sm:$0xff]  ;;  %v11727_v48 = vld [vmem:[#allocation202_spill] sm:$0xff]  ;;  %v11728_v38 = vld [vmem:[#allocation208_spill] sm:$0xff]  ;;  %v5717_v45 = vunpack.i.h.bf16 %v11733_v10 }
 0x354   : > { %v9279_v26 = vsel %vm3459_vm9, %v9076_v40, %v5652_v41  ;;  %v9283_v51 = vsel %vm3459_vm9, %v9091_v31, %v5786_v13  ;;  %v9287_v60 = vsel %vm3459_vm9, %v9102_v0, %v5787_v7  ;;  %11725 = vst [vmem:[#allocation36_spill] sm:$0xff] %v9289_v39  ;;  %v9297_v40 = vsel %vm3394_vm7, %v9138_v25, %v5801_v14  ;;  %v11730_v41 = vld [vmem:[#allocation205_spill] sm:$0xff]  ;;  %v11731_v23 = vld [vmem:[#allocation179_spill] sm:$0xff]  ;;  %v11736_v7 = vld [vmem:[#allocation212_spill] sm:$0xff] }
 0x355   : > { %6429 = vrot.lane.b32.xlu1 %v11726_v27, %s6739_s27  ;;  %v5712_v31 = vunpack.i.h.bf16 %v11728_v38  ;;  %v9301_v13 = vsel %vm3394_vm7, %v3369_v54, %v5802_v47  ;;  %v5711_v30 = vunpack.i.l.bf16 %v11728_v38  ;;  %v9308_v27 = vpop.permute.xlu1 %6149  ;;  %v5716_v25 = vunpack.i.l.bf16 %v11733_v10  ;;  %v11734_v14 = vld [vmem:[#allocation211_spill] sm:$0xff]  ;;  %v11738_v10 = vld [vmem:[#allocation69_spill] sm:$0xff] }
 0x356   : > { %11732 = vst [vmem:[#allocation37_spill] sm:$0xff] %v9308_v27  ;;  %v5822_v34 = vunpack.i.h.bf16 %v11734_v14  ;;  %v5821_v54 = vunpack.i.l.bf16 %v11734_v14  ;;  %v11735_v19 = vld [vmem:[#allocation207_spill] sm:$0xff]  ;;  %v5722_v62 = vunpack.i.h.bf16 %v11736_v7  ;;  %v5721_v38 = vunpack.i.l.bf16 %v11736_v7  ;;  %v11741_v27 = vld [vmem:[#allocation209_spill] sm:$0xff] }
 0x357   : > { %6474 = vrot.lane.b32.xlu0 %v11731_v23, %s6738_s25  ;;  %v9318_v20 = vpop.permute.xlu0 %6194  ;;  %v11737_v23 = vld [vmem:[#allocation68_spill] sm:$0xff]  ;;  %v3307_v0 = vsel %vm3265_vm6, %v11738_v10, %v5712_v31  ;;  %v5827_v14 = vunpack.i.h.bf16 %v11739_v6  ;;  %v5826_v47 = vunpack.i.l.bf16 %v11739_v6  ;;  %v3306_v16 = vsel %vm3265_vm6, %v11740_v21, %v5711_v30  ;;  %v11742_v7 = vld [vmem:[#allocation215_spill] sm:$0xff]  ;;  %v11745_v10 = vld [vmem:[#allocation74_spill] sm:$0xff] }
 0x358   : > { %v5752_v5 = vunpack.i.h.bf16 %v11742_v7  ;;  %v5751_v18 = vunpack.i.l.bf16 %v11742_v7  ;;  %v3311_v31 = vsel %vm3265_vm6, %v11506_v59, %v5717_v45  ;;  %v3310_v6 = vsel %vm3265_vm6, %v11745_v10, %v5716_v25  ;;  %v11747_v30 = vld [vmem:[#allocation122_spill] sm:$0xff] }
 0x359   : > { %6439 = vrot.lane.b32.xlu1 %v11737_v23, %s6739_s27  ;;  %v11743_v23 = vld [vmem:[#allocation171_spill] sm:$0xff]  ;;  %v9334_v1 = vpop.permute.xlu1 %6159  ;;  %v3309_v21 = vsel %vm3265_vm6, %v11746_v2, %v5822_v34  ;;  %v3308_v43 = vsel %vm3265_vm6, %v11747_v30, %v5821_v54  ;;  %v3315_v7 = vsel %vm3265_vm6, %v11559_v12, %v5722_v62  ;;  %v11750_v45 = vpack.i.bf16 %v11615_v52, %v11614_v58  ;;  %v11751_v2 = vld [vmem:[#allocation128_spill] sm:$0xff] }
 0x35a   : > { %11744 = vst [vmem:[#allocation177_spill] sm:$0xff] %v9334_v1  ;;  %v5727_v1 = vunpack.i.h.bf16 %v11749_v32  ;;  %v3313_v34 = vsel %vm3265_vm6, %v11751_v2, %v5827_v14  ;;  %v3312_v12 = vsel %vm3265_vm6, %v11507_v4, %v5826_v47  ;;  %v11752_v62 = vld [vmem:[#allocation116_spill] sm:$0xff]  ;;  %v3370_v54 = vsel %vm258_vm0, %v3306_v16, %v5751_v18  ;;  %v11756_v14 = vld [vmem:[#allocation218_spill] sm:$0xff]  ;;  %v11757_v47 = vld [vmem:[#allocation219_spill] sm:$0xff] }
 0x35b   : > { %6484 = vrot.lane.b32.xlu0 %v11743_v23, %s6739_s27  ;;  %v3314_v23 = vsel %vm3265_vm6, %v11748_v24, %v5721_v38  ;;  %v9350_v59 = vpop.permute.xlu0 %6204  ;;  %v5832_v25 = vunpack.i.h.bf16 %v11752_v62  ;;  %v5831_v24 = vunpack.i.l.bf16 %v11752_v62  ;;  %v3371_v32 = vsel %vm258_vm0, %v3307_v0, %v5752_v5  ;;  %v11753_v38 = vld [vmem:[#allocation217_spill] sm:$0xff]  ;;  %v11758_v16 = vld [vmem:[#allocation12_spill] sm:$0xff] }
 0x35c   : > { %v5757_v10 = vunpack.i.h.bf16 %v11753_v38  ;;  %v5756_v30 = vunpack.i.l.bf16 %v11753_v38  ;;  %v5852_v2 = vunpack.i.h.bf16 %v11756_v14  ;;  %v5851_v4 = vunpack.i.l.bf16 %v11756_v14 }
 0x35d   : > { %6449 = vrot.lane.b32.xlu1 %v11750_v45, %s6737_s13  ;;  %v11754_v45 = vld [vmem:[#allocation161_spill] sm:$0xff]  ;;  %v9368_v52 = vpop.permute.xlu1 %6169  ;;  %v5762_v58 = vunpack.i.h.bf16 %v11757_v47  ;;  %v5761_v62 = vunpack.i.l.bf16 %v11757_v47  ;;  %v3319_v5 = vsel %vm3265_vm6, %v11590_v63, %v5727_v1  ;;  %v3318_v18 = vsel %vm3265_vm6, %v7433_v55, %v5726_v44  ;;  %v11760_v1 = vld [vmem:[#allocation216_spill] sm:$0xff] }
 0x35e   : > { %11755 = vst [vmem:[#allocation61_spill] sm:$0xff] %v9368_v52  ;;  %v5857_v0 = vunpack.i.h.bf16 %v11758_v16  ;;  %v5856_v38 = vunpack.i.l.bf16 %v11758_v16  ;;  %v11759_v52 = vld [vmem:[#allocation89_spill] sm:$0xff]  ;;  %v9386_v14 = vsel %vm3265_vm6, %v7754_v61, %v5832_v25  ;;  %v9390_v63 = vsel %vm3265_vm6, %v11560_v49, %v5831_v24  ;;  %v11763_v49 = vld [vmem:[#allocation80_spill] sm:$0xff] }
 0x35f   : > { %6494 = vrot.lane.b32.xlu0 %v11754_v45, %s6739_s27  ;;  %v9380_v45 = vpop.permute.xlu0 %6214  ;;  %v5837_v55 = vunpack.i.h.bf16 %v11760_v1  ;;  %v5836_v44 = vunpack.i.l.bf16 %v11760_v1  ;;  %v3374_v47 = vsel %vm258_vm0, %v3310_v6, %v5756_v30  ;;  %v3375_v16 = vsel %vm258_vm0, %v3311_v31, %v5757_v10 }
 0x360   : > { %v11762_v61 = vunpack.i.h.bf16 %v11574_v33  ;;  %v3372_v1 = vsel %vm258_vm0, %v3308_v43, %v5851_v4  ;;  %v3373_v6 = vsel %vm258_vm0, %v3309_v21, %v5852_v2  ;;  %v3378_v31 = vsel %vm258_vm0, %v3314_v23, %v5761_v62  ;;  %v11771_v62 = vld [vmem:[#allocation170_spill] sm:$0xff] }
 0x361   : > { %6459 = vrot.lane.b32.xlu1 %v11759_v52, %s6738_s25  ;;  %v9399_v52 = vsel %vm3394_vm7, %v3370_v54, %v11761_v35  ;;  %v9408_v24 = vpop.permute.xlu1 %6179  ;;  %v3379_v10 = vsel %vm258_vm0, %v3315_v7, %v5762_v58  ;;  %v3376_v35 = vsel %vm258_vm0, %v3312_v12, %v5856_v38  ;;  %v3377_v33 = vsel %vm258_vm0, %v3313_v34, %v5857_v0  ;;  %v11765_v54 = vld [vmem:[#allocation220_spill] sm:$0xff] }
 0x362   : > { %v9404_v25 = vsel %vm3394_vm7, %v3371_v32, %v11762_v61  ;;  %11764 = vst [vmem:[#allocation41_spill] sm:$0xff] %v9408_v24  ;;  %v5767_v32 = vunpack.i.h.bf16 %v11765_v54  ;;  %v5766_v30 = vunpack.i.l.bf16 %v11765_v54  ;;  %v9424_v43 = vsel %vm3265_vm6, %v11578_v36, %v5837_v55  ;;  %v11774_v55 = vld [vmem:[#allocation92_spill] sm:$0xff] }
 0x363   : > { %6504 = vrot.lane.b32.xlu0 %v11763_v49, %s6737_s13  ;;  %v9418_v61 = vpop.permute.xlu0 %6224  ;;  %v11766_v49 = vld [vmem:[#allocation91_spill] sm:$0xff]  ;;  %v9428_v58 = vsel %vm3265_vm6, %v11591_v17, %v5836_v44  ;;  %v11767_v21 = vunpack.i.l.bf16 %v11575_v37  ;;  %v6051_v23 = vunpack.i.l.bf16 %v8897_v8  ;;  %v11768_v34 = vunpack.i.l.bf16 %v11730_v41 }
 0x364   : > { %v11769_v2 = vunpack.i.h.bf16 %v11730_v41  ;;  %v11770_v17 = vunpack.i.h.bf16 %v11575_v37  ;;  %v11772_v0 = vunpack.i.l.bf16 %v11771_v62  ;;  %v3382_v54 = vsel %vm258_vm0, %v3318_v18, %v5766_v30 }
 0x365   : > { %6469 = vrot.lane.b32.xlu1 %v11766_v49, %s6738_s25  ;;  %v9433_v7 = vsel %vm3394_vm7, %v3374_v47, %v11767_v21  ;;  %v9439_v12 = vsel %vm3394_vm7, %v3372_v1, %v11768_v34  ;;  %v6190_v44 = vpop.permute.xlu1 %6189  ;;  %v11775_v47 = vunpack.i.l.bf16 %v11735_v19  ;;  %v11776_v1 = vunpack.i.h.bf16 %v11735_v19  ;;  %v11779_v21 = vld [vmem:[#allocation16_spill] sm:$0xff]  ;;  %v11781_v19 = vld [vmem:[#allocation103_spill] sm:$0xff] }
 0x366   : > { %v9444_v36 = vsel %vm3394_vm7, %v3373_v6, %v11769_v2  ;;  %v9449_v4 = vsel %vm3394_vm7, %v3375_v16, %v11770_v17  ;;  %v9454_v38 = vsel %vm3394_vm7, %v3378_v31, %v11772_v0  ;;  %v11777_v16 = vunpack.i.h.bf16 %v11771_v62  ;;  %v11780_v2 = vld [vmem:[#allocation221_spill] sm:$0xff] }
 0x367   : > { %11773 = vst [vmem:[#allocation71_spill] sm:$0xff] %v9454_v38  ;;  %6514 = vrot.lane.b32.xlu0 %v11774_v55, %s6738_s25  ;;  %v9461_v41 = vsel %vm3394_vm7, %v3376_v35, %v11775_v47  ;;  %v9466_v37 = vsel %vm3394_vm7, %v3377_v33, %v11776_v1  ;;  %v6192_v31 = vunpack.i.h.bf16 %v6190_v44  ;;  %v3383_v49 = vsel %vm258_vm0, %v3319_v5, %v5767_v32  ;;  %v9477_v17 = vpop.permute.xlu0 %6234  ;;  %v11782_v62 = vld [vmem:[#allocation25_spill] sm:$0xff]  ;;  %v11784_v1 = vld [vmem:[#allocation94_spill] sm:$0xff] }
 0x368   : > { %v9471_v6 = vsel %vm3394_vm7, %v3379_v10, %v11777_v16  ;;  %v5792_v35 = vunpack.i.h.bf16 %v11780_v2  ;;  %v5791_v33 = vunpack.i.l.bf16 %v11780_v2  ;;  %v5892_v0 = vunpack.i.h.bf16 %v11782_v62  ;;  %v11783_v10 = vld [vmem:[#allocation120_spill] sm:$0xff] }
 0x369   : > { %11778 = vst [vmem:[#allocation72_spill] sm:$0xff] %v9471_v6  ;;  %6479 = vrot.lane.b32.xlu1 %v11781_v19, %s6739_s27  ;;  %v6047_v55 = vunpack.i.h.bf16 %v11783_v10  ;;  %v3555_v18 = vsel %vm3524_vm10, %v9267_v50, %v6051_v23  ;;  %v5891_v5 = vunpack.i.l.bf16 %v11782_v62  ;;  %v6046_v32 = vunpack.i.l.bf16 %v11783_v10  ;;  %v6200_v16 = vpop.permute.xlu1 %6199 }
 0x36a   : > { %v6052_v30 = vunpack.i.h.bf16 %v8897_v8  ;;  %v3620_v47 = vsel %vm3589_vm11, %v3555_v18, %v6192_v31  ;;  %v6187_v2 = vunpack.i.h.bf16 %v9289_v39  ;;  %v6206_v19 = vunpack.i.l.bf16 %v9350_v59  ;;  %v11785_v8 = vld [vmem:[#allocation105_spill] sm:$0xff] }
 0x36b   : > { %6524 = vrot.lane.b32.xlu0 %v11784_v1, %s6738_s25  ;;  %v6191_v34 = vunpack.i.l.bf16 %v6190_v44  ;;  %v6196_v50 = vunpack.i.l.bf16 %v9318_v20  ;;  %v6202_v23 = vunpack.i.h.bf16 %v6200_v16  ;;  %v6201_v62 = vunpack.i.l.bf16 %v6200_v16  ;;  %v9495_v10 = vpop.permute.xlu0 %6244 }
 0x36c   : > { %v3554_v31 = vsel %vm3524_vm10, %v9263_v46, %v6047_v55  ;;  %v6207_v18 = vunpack.i.h.bf16 %v9350_v59  ;;  %v3685_v1 = vsel %vm3654_vm12, %v3620_v47, %v6206_v19  ;;  %v3553_v44 = vsel %vm3524_vm10, %v9259_v56, %v6046_v32 }
 0x36d   : > { %6489 = vrot.lane.b32.xlu1 %v11785_v8, %s6739_s27  ;;  %v3556_v24 = vsel %vm3524_vm10, %v9271_v9, %v6052_v30  ;;  %v6217_v16 = vunpack.i.h.bf16 %v9380_v45  ;;  %v6216_v39 = vunpack.i.l.bf16 %v9380_v45  ;;  %v11786_v8 = vld [vmem:[#allocation107_spill] sm:$0xff]  ;;  %v6210_v38 = vpop.permute.xlu1 %6209  ;;  %v3618_v46 = vsel %vm3589_vm11, %v3553_v44, %v6187_v2  ;;  %v11787_v9 = vld [vmem:[#allocation134_spill] sm:$0xff] }
 0x36e   : > { %v3619_v59 = vsel %vm3589_vm11, %v3554_v31, %v6191_v34  ;;  %v6212_v55 = vunpack.i.h.bf16 %v6210_v38  ;;  %v6211_v47 = vunpack.i.l.bf16 %v6210_v38  ;;  %v3621_v19 = vsel %vm3589_vm11, %v3556_v24, %v6196_v50  ;;  %v11789_v50 = vld [vmem:[#allocation137_spill] sm:$0xff] }
 0x36f   : > { %6534 = vrot.lane.b32.xlu0 %v11786_v8, %s6739_s27  ;;  %v9514_v56 = vpop.permute.xlu0 %6254  ;;  %v3683_v32 = vsel %vm3654_vm12, %v3618_v46, %v6201_v62  ;;  %v3684_v45 = vsel %vm3654_vm12, %v3619_v59, %v6202_v23  ;;  %v3750_v30 = vsel %vm3719_vm13, %v3685_v1, %v6216_v39  ;;  %v11788_v8 = vld [vmem:[#allocation45_spill] sm:$0xff]  ;;  %v3686_v2 = vsel %vm3654_vm12, %v3621_v19, %v6207_v18 }
 0x370   : > { %v6061_v6 = vunpack.i.l.bf16 %v11788_v8  ;;  %v3748_v34 = vsel %vm3719_vm13, %v3683_v32, %v6211_v47  ;;  %v3749_v38 = vsel %vm3719_vm13, %v3684_v45, %v6212_v55  ;;  %v5861_v24 = vunpack.i.l.bf16 %v11779_v21  ;;  %v11790_v62 = vld [vmem:[#allocation109_spill] sm:$0xff]  ;;  %v11793_v32 = vld [vmem:[#allocation142_spill] sm:$0xff] }
 0x371   : > { %6499 = vrot.lane.b32.xlu1 %v11787_v9, %s6737_s13  ;;  %v6057_v31 = vunpack.i.h.bf16 %v11789_v50  ;;  %v3751_v44 = vsel %vm3719_vm13, %v3686_v2, %v6217_v16  ;;  %v6220_v23 = vpop.permute.xlu1 %6219  ;;  %v3798_v46 = vpack.c.bf16 %v3749_v38, %v3748_v34  ;;  %v11791_v39 = vunpack.i.l.bf16 %v11727_v48 }
 0x372   : > { %v6056_v18 = vunpack.i.l.bf16 %v11789_v50  ;;  %v6222_v59 = vunpack.i.h.bf16 %v6220_v23  ;;  %v3799_v55 = vpack.c.bf16 %v3751_v44, %v3750_v30  ;;  %v3497_v47 = vsel %vm3459_vm9, %v9143_v53, %v5792_v35  ;;  %v11795_v30 = vld [vmem:[#allocation35_spill] sm:$0xff] }
 0x373   : > { %6544 = vrot.lane.b32.xlu0 %v11790_v62, %s6739_s27  ;;  %v9533_v1 = vsel %vm3394_vm7, %v3382_v54, %v11791_v39  ;;  %v3496_v16 = vsel %vm3459_vm9, %v9123_v28, %v5791_v33  ;;  %v11792_v19 = vunpack.i.h.bf16 %v11727_v48  ;;  %v6067_v45 = vunpack.i.h.bf16 %v11793_v32  ;;  %v9546_v2 = vpop.permute.xlu0 %6264  ;;  %v11794_v54 = vld [vmem:[#allocation176_spill] sm:$0xff]  ;;  %5033 = vmatprep.mubr.msk.bf16.mxu1 %vm3852_vm14, %v3798_v46  ;;  %v11797_v62 = vld [vmem:[#allocation185_spill] sm:$0xff] }
 0x374   : > { %v3498_v53 = vsel %vm3459_vm9, %v9297_v40, %v5891_v5  ;;  %v3499_v28 = vsel %vm3459_vm9, %v9301_v13, %v5892_v0  ;;  %v6066_v48 = vunpack.i.l.bf16 %v11793_v32  ;;  %5034 = vmatmul.mubr.msk.bf16.vlgmr.msra.gmra.mrb[0].mxu1 %vm3852_vm14, %v3799_v55  ;;  %v3558_v35 = vsel %vm3524_vm10, %v9279_v26, %v6057_v31  ;;  %v11796_v40 = vld [vmem:[#allocation49_spill] sm:$0xff] }
 0x375   : > { %v9543_v9 = vsel %vm3394_vm7, %v3383_v49, %v11792_v19  ;;  %6509 = vrot.lane.b32.xlu1 %v11794_v54, %s6737_s13  ;;  %v3559_v49 = vsel %vm3524_vm10, %v9283_v51, %v6061_v6  ;;  %v6062_v33 = vunpack.i.h.bf16 %v11788_v8  ;;  %v6072_v34 = vunpack.i.h.bf16 %v11795_v30  ;;  %v6230_v13 = vpop.permute.xlu1 %6229 }
 0x376   : > { %v3624_v38 = vsel %vm3589_vm11, %v3559_v49, %v6222_v59  ;;  %v3557_v0 = vsel %vm3524_vm10, %v9275_v29, %v6056_v18  ;;  %v6197_v51 = vunpack.i.h.bf16 %v9318_v20  ;;  %v6236_v6 = vunpack.i.l.bf16 %v9477_v17  ;;  %v11799_v49 = vld [vmem:[#allocation186_spill] sm:$0xff] }
 0x377   : > { %6554 = vrot.lane.b32.xlu0 %v11796_v40, %s6737_s13  ;;  %v6221_v5 = vunpack.i.l.bf16 %v6220_v23  ;;  %v3562_v26 = vsel %vm3524_vm10, %v3497_v47, %v6067_v45  ;;  %v6226_v8 = vunpack.i.l.bf16 %v9418_v61  ;;  %v6232_v50 = vunpack.i.h.bf16 %v6230_v13  ;;  %v6275_v44 = vpop.permute.xlu0 %6274  ;;  %v11798_v47 = vld [vmem:[#allocation85_spill] sm:$0xff] }
 0x378   : > { %v6231_v31 = vunpack.i.l.bf16 %v6230_v13  ;;  %v3561_v46 = vsel %vm3524_vm10, %v3496_v16, %v6066_v48  ;;  %v6071_v39 = vunpack.i.l.bf16 %v11795_v30  ;;  %v6237_v29 = vunpack.i.h.bf16 %v9477_v17 }
 0x379   : > { %6519 = vrot.lane.b32.xlu1 %v11797_v62, %s6738_s25  ;;  %v3689_v20 = vsel %vm3654_vm12, %v3624_v38, %v6236_v6  ;;  %v3560_v23 = vsel %vm3524_vm10, %v9287_v60, %v6062_v33  ;;  %v3564_v18 = vsel %vm3524_vm10, %v3499_v28, %v6072_v34  ;;  %v6247_v59 = vunpack.i.h.bf16 %v9495_v10  ;;  %v6240_v19 = vpop.permute.xlu1 %6239 }
 0x37a   : > { %v6246_v55 = vunpack.i.l.bf16 %v9495_v10  ;;  %v3622_v16 = vsel %vm3589_vm11, %v3557_v0, %v6197_v51  ;;  %v3623_v32 = vsel %vm3589_vm11, %v3558_v35, %v6221_v5  ;;  %v6242_v17 = vunpack.i.h.bf16 %v6240_v19  ;;  %v11800_v51 = vld [vmem:[#allocation96_spill] sm:$0xff] }
 0x37b   : > { %6564 = vrot.lane.b32.xlu0 %v11798_v47, %s6737_s13  ;;  %v6241_v45 = vunpack.i.l.bf16 %v6240_v19  ;;  %v3625_v54 = vsel %vm3589_vm11, %v3560_v23, %v6226_v8  ;;  %v3687_v60 = vsel %vm3654_vm12, %v3622_v16, %v6231_v31  ;;  %v3688_v28 = vsel %vm3654_vm12, %v3623_v32, %v6232_v50  ;;  %v6285_v48 = vpop.permute.xlu0 %6284  ;;  %v11802_v32 = vld [vmem:[#allocation97_spill] sm:$0xff] }
 0x37c   : > { %v3754_v10 = vsel %vm3719_vm13, %v3689_v20, %v6246_v55  ;;  %v3563_v33 = vsel %vm3524_vm10, %v3498_v53, %v6071_v39  ;;  %v3690_v30 = vsel %vm3654_vm12, %v3625_v54, %v6237_v29  ;;  %v3753_v34 = vsel %vm3719_vm13, %v3688_v28, %v6242_v17  ;;  %v11801_v20 = vld [vmem:[#allocation187_spill] sm:$0xff] }
 0x37d   : > { %6529 = vrot.lane.b32.xlu1 %v11799_v49, %s6738_s25  ;;  %v3752_v35 = vsel %vm3719_vm13, %v3687_v60, %v6241_v45  ;;  %v6227_v38 = vunpack.i.h.bf16 %v9418_v61  ;;  %v3755_v40 = vsel %vm3719_vm13, %v3690_v30, %v6247_v59  ;;  %v6256_v13 = vunpack.i.l.bf16 %v9514_v56  ;;  %v6250_v6 = vpop.permute.xlu1 %6249  ;;  %v11803_v45 = vld [vmem:[#allocation222_spill] sm:$0xff] }
 0x37e   : > { %v3800_v0 = vpack.c.bf16 %v3753_v34, %v3752_v35  ;;  %v6277_v5 = vunpack.i.h.bf16 %v6275_v44  ;;  %v6252_v8 = vunpack.i.h.bf16 %v6250_v6  ;;  %v6251_v53 = vunpack.i.l.bf16 %v6250_v6  ;;  %v11805_v35 = vld [vmem:[#allocation39_spill] sm:$0xff] }
 0x37f   : > { %6574 = vrot.lane.b32.xlu0 %v11800_v51, %s6738_s25  ;;  %v3801_v50 = vpack.c.bf16 %v3755_v40, %v3754_v10  ;;  %v6267_v31 = vunpack.i.h.bf16 %v9546_v2  ;;  %v6266_v62 = vunpack.i.l.bf16 %v9546_v2  ;;  %v6276_v39 = vunpack.i.l.bf16 %v6275_v44  ;;  %v6295_v61 = vpop.permute.xlu0 %6294  ;;  %v11806_v40 = vld [vmem:[#allocation104_spill] sm:$0xff] }
 0x380   : > { %v6286_v29 = vunpack.i.l.bf16 %v6285_v48  ;;  %5037 = vmatprep.mubr.msk.bf16.mxu1 %vm3852_vm14, %v3800_v0  ;;  %v3627_v23 = vsel %vm3589_vm11, %v3562_v26, %v6251_v53  ;;  %v3628_v59 = vsel %vm3589_vm11, %v3563_v33, %v6252_v8  ;;  %v6297_v55 = vunpack.i.h.bf16 %v6295_v61  ;;  %v11804_v33 = vld [vmem:[#allocation189_spill] sm:$0xff]  ;;  %v11807_v0 = vld [vmem:[#allocation11_spill] sm:$0xff]  ;;  %v11809_v53 = vld [vmem:[#allocation110_spill] sm:$0xff] }
 0x381   : > { %6539 = vrot.lane.b32.xlu1 %v11801_v20, %s6739_s27  ;;  %v6296_v47 = vunpack.i.l.bf16 %v6295_v61  ;;  %5038 = vmatmul.mubr.msk.bf16.gmra.mrb[4].mxu1 %vm3852_vm14, %v3801_v50  ;;  %v3629_v19 = vsel %vm3589_vm11, %v3564_v18, %v6256_v13  ;;  %v6287_v16 = vunpack.i.h.bf16 %v6285_v48  ;;  %v3692_v2 = vsel %vm3654_vm12, %v3627_v23, %v6267_v31  ;;  %v6260_v17 = vpop.permute.xlu1 %6259 }
 0x382   : > { %v3693_v44 = vsel %vm3654_vm12, %v3628_v59, %v6276_v39  ;;  %v5797_v54 = vunpack.i.h.bf16 %v11803_v45  ;;  %v5796_v26 = vunpack.i.l.bf16 %v11803_v45  ;;  %v3626_v60 = vsel %vm3589_vm11, %v3561_v46, %v6227_v38 }
 0x383   : > { %6584 = vrot.lane.b32.xlu0 %v11802_v32, %s6738_s25  ;;  %v3694_v28 = vsel %vm3654_vm12, %v3629_v19, %v6277_v5  ;;  %v3691_v49 = vsel %vm3654_vm12, %v3626_v60, %v6266_v62  ;;  %v3758_v18 = vsel %vm3719_vm13, %v3693_v44, %v6296_v47  ;;  %v9622_v10 = vpop.permute.xlu0 %6304  ;;  %v3757_v30 = vsel %vm3719_vm13, %v3692_v2, %v6287_v16  ;;  %v11808_v5 = vld [vmem:[#allocation55_spill] sm:$0xff] }
 0x384   : > { %v3759_v48 = vsel %vm3719_vm13, %v3694_v28, %v6297_v55  ;;  %v5896_v34 = vunpack.i.l.bf16 %v11805_v35  ;;  %v5977_v13 = vunpack.i.h.bf16 %v11806_v40  ;;  %v5976_v46 = vunpack.i.l.bf16 %v11806_v40 }
 0x385   : > { %6549 = vrot.lane.b32.xlu1 %v11804_v33, %s6739_s27  ;;  %v3756_v38 = vsel %vm3719_vm13, %v3691_v49, %v6286_v29  ;;  %v5982_v51 = vunpack.i.h.bf16 %v11807_v0  ;;  %v5981_v6 = vunpack.i.l.bf16 %v11807_v0  ;;  %v6136_v8 = vunpack.i.l.bf16 %v11808_v5  ;;  %v6270_v50 = vpop.permute.xlu1 %6269 }
 0x386   : > { %v3802_v31 = vpack.c.bf16 %v3757_v30, %v3756_v38  ;;  %v9640_v62 = vsel %vm258_vm0, %v9390_v63, %v5861_v24  ;;  %v11810_v39 = vunpack.i.h.bf16 %v11779_v21  ;;  %v6137_v61 = vunpack.i.h.bf16 %v11808_v5  ;;  %v11811_v21 = vld [vmem:[#allocation53_spill] sm:$0xff]  ;;  %v11817_v30 = vld [vmem:[#allocation23_spill] sm:$0xff] }
 0x387   : > { %6594 = vrot.lane.b32.xlu0 %v11809_v53, %s6739_s27  ;;  %v3803_v20 = vpack.c.bf16 %v3759_v48, %v3758_v18  ;;  %v3500_v23 = vsel %vm3459_vm9, %v9399_v52, %v5796_v26  ;;  %v3501_v59 = vsel %vm3459_vm9, %v9404_v25, %v5797_v54  ;;  %v6262_v55 = vunpack.i.h.bf16 %v6260_v17  ;;  %v9654_v63 = vpop.permute.xlu0 %6314  ;;  %v11813_v52 = vld [vmem:[#allocation144_spill] sm:$0xff]  ;;  %v11814_v25 = vld [vmem:[#allocation143_spill] sm:$0xff] }
 0x388   : > { %v9646_v29 = vsel %vm258_vm0, %v9386_v14, %v11810_v39  ;;  %v6261_v47 = vunpack.i.l.bf16 %v6260_v17  ;;  %5041 = vmatprep.mubr.msk.bf16.mxu1 %vm3852_vm14, %v3802_v31  ;;  %v11812_v14 = vpack.i.bf16 %v11811_v21, %v8989_v11  ;;  %v5897_v24 = vunpack.i.h.bf16 %v11805_v35 }
 0x389   : > { %v3502_v19 = vsel %vm3459_vm9, %v9439_v12, %v5896_v34  ;;  %v3526_v16 = vsel %vm3524_vm10, %v11813_v52, %v5977_v13  ;;  %v3525_v2 = vsel %vm3524_vm10, %v11814_v25, %v5976_v46  ;;  %5042 = vmatmul.mubr.msk.bf16.gmra.mrb[8].mxu1 %vm3852_vm14, %v3803_v20  ;;  %v3528_v44 = vsel %vm3524_vm10, %v9128_v57, %v5982_v51  ;;  %v11815_v12 = vld [vmem:[#allocation113_spill] sm:$0xff]  ;;  %v6280_v45 = vpop.permute.xlu1 %6279  ;;  %v11818_v13 = vld [vmem:[#allocation50_spill] sm:$0xff]  ;;  %v11819_v20 = vld [vmem:[#allocation159_spill] sm:$0xff] }
 0x38a   : > { %6559 = vrot.lane.b32.xlu1 %v11812_v14, %s6737_s13  ;;  %v3527_v11 = vsel %vm3524_vm10, %v9116_v22, %v5981_v6  ;;  %v3590_v32 = vsel %vm3589_vm11, %v3525_v2, %v6136_v8  ;;  %v6141_v17 = vunpack.i.l.bf16 %v9253_v42  ;;  %v3591_v54 = vsel %vm3589_vm11, %v3526_v16, %v6137_v61 }
 0x38b   : > { %6604 = vrot.lane.b32.xlu0 %v11815_v12, %s6739_s27  ;;  %v6142_v26 = vunpack.i.h.bf16 %v9253_v42  ;;  %v6282_v60 = vunpack.i.h.bf16 %v6280_v45  ;;  %v6281_v28 = vunpack.i.l.bf16 %v6280_v45  ;;  %v3655_v49 = vsel %vm3654_vm12, %v3590_v32, %v6261_v47  ;;  %v6325_v48 = vpop.permute.xlu0 %6324 }
 0x38c   : > { %v3656_v57 = vsel %vm3654_vm12, %v3591_v54, %v6262_v55  ;;  %v6272_v18 = vunpack.i.h.bf16 %v6270_v50  ;;  %v6271_v22 = vunpack.i.l.bf16 %v6270_v50  ;;  %v11816_v33 = vpack.i.bf16 %v9066_v15, %v9061_v3  ;;  %v11820_v55 = vld [vmem:[#allocation157_spill] sm:$0xff] }
 0x38d   : > { %v6077_v35 = vunpack.i.h.bf16 %v11817_v30  ;;  %v6076_v34 = vunpack.i.l.bf16 %v11817_v30  ;;  %v3720_v42 = vsel %vm3719_vm13, %v3655_v49, %v6281_v28  ;;  %v3721_v40 = vsel %vm3719_vm13, %v3656_v57, %v6282_v60  ;;  %v6290_v6 = vpop.permute.xlu1 %6289  ;;  %v11822_v60 = vld [vmem:[#allocation30_spill] sm:$0xff]  ;;  %v11823_v28 = vld [vmem:[#allocation163_spill] sm:$0xff] }
 0x38e   : > { %6569 = vrot.lane.b32.xlu1 %v11816_v33, %s6737_s13  ;;  %v6082_v46 = vunpack.i.h.bf16 %v11818_v13  ;;  %v6081_v38 = vunpack.i.l.bf16 %v11818_v13  ;;  %v3592_v0 = vsel %vm3589_vm11, %v3527_v11, %v6141_v17  ;;  %v3784_v51 = vpack.c.bf16 %v3721_v40, %v3720_v42  ;;  %v11825_v13 = vld [vmem:[#allocation34_spill] sm:$0xff] }
 0x38f   : > { %v3593_v5 = vsel %vm3589_vm11, %v3528_v44, %v6142_v26  ;;  %v6306_v3 = vunpack.i.l.bf16 %v9622_v10  ;;  %v6292_v15 = vunpack.i.h.bf16 %v6290_v6  ;;  %v6291_v8 = vunpack.i.l.bf16 %v6290_v6  ;;  %v6335_v61 = vpop.permute.xlu0 %6334  ;;  %v11826_v6 = vld [vmem:[#allocation26_spill] sm:$0xff] }
 0x390   : > { %v5816_v53 = vunpack.i.l.bf16 %v11741_v27  ;;  %v3503_v50 = vsel %vm3459_vm9, %v9444_v36, %v5897_v24  ;;  %v3657_v31 = vsel %vm3654_vm12, %v3592_v0, %v6271_v22  ;;  %v3658_v39 = vsel %vm3654_vm12, %v3593_v5, %v6272_v18  ;;  %5005 = vmatprep.mubr.msk.bf16.mxu0 %vm3852_vm14, %v3784_v51  ;;  %v11827_v5 = vld [vmem:[#allocation168_spill] sm:$0xff] }
 0x391   : > { %v11821_v47 = vpack.i.bf16 %v11819_v20, %v11820_v55  ;;  %v3566_v21 = vsel %vm3524_vm10, %v3501_v59, %v6077_v35  ;;  %v3565_v14 = vsel %vm3524_vm10, %v3500_v23, %v6076_v34  ;;  %v3722_v52 = vsel %vm3719_vm13, %v3657_v31, %v6291_v8  ;;  %v6300_v44 = vpop.permute.xlu1 %6299  ;;  %v11831_v55 = vld [vmem:[#allocation153_spill] sm:$0xff] }
 0x392   : > { %v3723_v36 = vsel %vm3719_vm13, %v3658_v39, %v6292_v15  ;;  %v3568_v24 = vsel %vm3524_vm10, %v3503_v50, %v6082_v46  ;;  %v3567_v16 = vsel %vm3524_vm10, %v3502_v19, %v6081_v38  ;;  %v6327_v25 = vunpack.i.h.bf16 %v6325_v48  ;;  %v11829_v15 = vld [vmem:[#allocation9_spill] sm:$0xff]  ;;  %v11830_v39 = vld [vmem:[#allocation31_spill] sm:$0xff] }
 0x393   : > { %6579 = vrot.lane.b32.xlu1 %v11821_v47, %s6738_s25  ;;  %v3785_v2 = vpack.c.bf16 %v3723_v36, %v3722_v52  ;;  %v6257_v11 = vunpack.i.h.bf16 %v9514_v56  ;;  %v3633_v32 = vsel %vm3589_vm11, %v3568_v24, %v6306_v3  ;;  %v6302_v17 = vunpack.i.h.bf16 %v6300_v44  ;;  %v6345_v26 = vpop.permute.xlu0 %6344  ;;  %v11832_v52 = vld [vmem:[#allocation20_spill] sm:$0xff] }
 0x394   : > { %v6301_v12 = vunpack.i.l.bf16 %v6300_v44  ;;  %v6317_v59 = vunpack.i.h.bf16 %v9654_v63  ;;  %v6316_v23 = vunpack.i.l.bf16 %v9654_v63  ;;  %v6326_v45 = vunpack.i.l.bf16 %v6325_v48 }
 0x395   : > { %v6336_v54 = vunpack.i.l.bf16 %v6335_v61  ;;  %v11824_v19 = vpack.i.bf16 %v11822_v60, %v11823_v28  ;;  %5006 = vmatmul.mubr.msk.bf16.vlgmr.msra.gmra.mrb[12].mxu0 %vm3852_vm14, %v3785_v2  ;;  %v3632_v49 = vsel %vm3589_vm11, %v3567_v16, %v6302_v17  ;;  %v6347_v57 = vunpack.i.h.bf16 %v6345_v26  ;;  %v6310_v30 = vpop.permute.xlu1 %6309  ;;  %v11839_v60 = vld [vmem:[#allocation13_spill] sm:$0xff]  ;;  %v11840_v28 = vld [vmem:[#allocation24_spill] sm:$0xff] }
 0x396   : > { %v3631_v56 = vsel %vm3589_vm11, %v3566_v21, %v6301_v12  ;;  %v6346_v18 = vunpack.i.l.bf16 %v6345_v26  ;;  %v3698_v22 = vsel %vm3654_vm12, %v3633_v32, %v6327_v25  ;;  %v6337_v33 = vunpack.i.h.bf16 %v6335_v61  ;;  %v11838_v26 = vld [vmem:[#allocation100_spill] sm:$0xff] }
 0x397   : > { %6589 = vrot.lane.b32.xlu1 %v11824_v19, %s6738_s25  ;;  %v3696_v63 = vsel %vm3654_vm12, %v3631_v56, %v6317_v59  ;;  %v3697_v48 = vsel %vm3654_vm12, %v3632_v49, %v6326_v45  ;;  %v9725_v35 = vsel %vm3394_vm7, %v9640_v62, %v5816_v53  ;;  %v3630_v34 = vsel %vm3589_vm11, %v3565_v14, %v6257_v11  ;;  %v9733_v51 = vpop.permute.xlu0 %6354  ;;  %v11835_v59 = vld [vmem:[#allocation172_spill] sm:$0xff]  ;;  %v11841_v56 = vld [vmem:[#allocation117_spill] sm:$0xff] }
 0x398   : > { %v3762_v42 = vsel %vm3719_vm13, %v3697_v48, %v6346_v18  ;;  %v3763_v40 = vsel %vm3719_vm13, %v3698_v22, %v6347_v57  ;;  %v5902_v46 = vunpack.i.h.bf16 %v11825_v13  ;;  %v5901_v38 = vunpack.i.l.bf16 %v11825_v13  ;;  %v11842_v18 = vld [vmem:[#allocation37_spill] sm:$0xff] }
 0x399   : > { %v3695_v0 = vsel %vm3654_vm12, %v3630_v34, %v6316_v23  ;;  %v11828_v3 = vpack.i.bf16 %v11826_v6, %v11827_v5  ;;  %v3761_v62 = vsel %vm3719_vm13, %v3696_v63, %v6337_v33  ;;  %v5987_v8 = vunpack.i.h.bf16 %v11829_v15  ;;  %v6320_v21 = vpop.permute.xlu1 %6319 }
 0x39a   : > { %v5986_v53 = vunpack.i.l.bf16 %v11829_v15  ;;  %v3760_v50 = vsel %vm3719_vm13, %v3695_v0, %v6336_v54  ;;  %v3805_v31 = vpack.c.bf16 %v3763_v40, %v3762_v42  ;;  %v5992_v61 = vunpack.i.h.bf16 %v11830_v39  ;;  %v11843_v0 = vld [vmem:[#allocation73_spill] sm:$0xff]  ;;  %v11844_v15 = vld [vmem:[#allocation148_spill] sm:$0xff] }
 0x39b   : > { %6599 = vrot.lane.b32.xlu1 %v11828_v3, %s6739_s27  ;;  %v5991_v20 = vunpack.i.l.bf16 %v11830_v39  ;;  %v6146_v47 = vunpack.i.l.bf16 %v11831_v55  ;;  %v3804_v14 = vpack.c.bf16 %v3761_v62, %v3760_v50  ;;  %v5867_v36 = vunpack.i.h.bf16 %v11832_v52  ;;  %v9760_v12 = vpop.permute.xlu0 %6364 }
 0x39c   : > { %v5866_v24 = vunpack.i.l.bf16 %v11832_v52  ;;  %v11833_v16 = vunpack.i.h.bf16 %v11741_v27  ;;  %v6147_v2 = vunpack.i.h.bf16 %v11831_v55  ;;  %v3506_v44 = vsel %vm3459_vm9, %v9461_v41, %v5901_v38  ;;  %v11834_v27 = vld [vmem:[#allocation173_spill] sm:$0xff] }
 0x39d   : > { %v3507_v11 = vsel %vm3459_vm9, %v9466_v37, %v5902_v46  ;;  %v6312_v32 = vunpack.i.h.bf16 %v6310_v30  ;;  %v6311_v17 = vunpack.i.l.bf16 %v6310_v30  ;;  %5045 = vmatprep.mubr.msk.bf16.mxu1 %vm3852_vm14, %v3804_v14  ;;  %v11836_v23 = vpack.i.bf16 %v11834_v27, %v11835_v59  ;;  %v6330_v33 = vpop.permute.xlu1 %6329 }
 0x39e   : > { %v9752_v25 = vsel %vm3394_vm7, %v9646_v29, %v11833_v16  ;;  %v11837_v29 = vld [vmem:[#allocation67_spill] sm:$0xff]  ;;  %v3530_v41 = vsel %vm3524_vm10, %v11838_v26, %v5987_v8  ;;  %v3529_v37 = vsel %vm3524_vm10, %v11839_v60, %v5986_v53  ;;  %5046 = vmatmul.mubr.msk.bf16.gmra.mrb[12].mxu1 %vm3852_vm14, %v3805_v31  ;;  %v3532_v19 = vsel %vm3524_vm10, %v11840_v28, %v5992_v61 }
 0x39f   : > { %6609 = vrot.lane.b32.xlu1 %v11836_v23, %s6739_s27  ;;  %v5882_v45 = vunpack.i.h.bf16 %v11837_v29  ;;  %v5881_v54 = vunpack.i.l.bf16 %v11837_v29  ;;  %v3531_v49 = vsel %vm3524_vm10, %v11841_v56, %v5991_v20  ;;  %v3594_v57 = vsel %vm3589_vm11, %v3529_v37, %v6146_v47  ;;  %v6375_v38 = vpop.permute.xlu0 %6374 }
 0x3a0   : > { %v6151_v22 = vunpack.i.l.bf16 %v11842_v18  ;;  %v3595_v63 = vsel %vm3589_vm11, %v3530_v41, %v6147_v2  ;;  %v6152_v48 = vunpack.i.h.bf16 %v11842_v18  ;;  %v6332_v30 = vunpack.i.h.bf16 %v6330_v33 }
 0x3a1   : > { %v6331_v34 = vunpack.i.l.bf16 %v6330_v33  ;;  %v3659_v42 = vsel %vm3654_vm12, %v3594_v57, %v6311_v17  ;;  %v3660_v40 = vsel %vm3654_vm12, %v3595_v63, %v6312_v32  ;;  %v6322_v13 = vunpack.i.h.bf16 %v6320_v21  ;;  %v6340_v39 = vpop.permute.xlu1 %6339 }
 0x3a2   : > { %v6321_v46 = vunpack.i.l.bf16 %v6320_v21  ;;  %v6087_v6 = vunpack.i.h.bf16 %v11843_v0  ;;  %v6086_v5 = vunpack.i.l.bf16 %v11843_v0  ;;  %v3725_v62 = vsel %vm3719_vm13, %v3660_v40, %v6332_v30 }
 0x3a3   : > { %v3724_v3 = vsel %vm3719_vm13, %v3659_v42, %v6331_v34  ;;  %v6092_v8 = vunpack.i.h.bf16 %v11844_v15  ;;  %v6091_v53 = vunpack.i.l.bf16 %v11844_v15  ;;  %v3596_v50 = vsel %vm3589_vm11, %v3531_v49, %v6151_v22  ;;  %v6385_v32 = vpop.permute.xlu0 %6384 }
 0x3a4   : > { %v3786_v31 = vpack.c.bf16 %v3725_v62, %v3724_v3  ;;  %v3597_v61 = vsel %vm3589_vm11, %v3532_v19, %v6152_v48  ;;  %v6356_v20 = vunpack.i.l.bf16 %v9733_v51  ;;  %v6342_v55 = vunpack.i.h.bf16 %v6340_v39  ;;  %v11846_v3 = vld [vmem:[#allocation102_spill] sm:$0xff] }
 0x3a5   : > { %v6341_v47 = vunpack.i.l.bf16 %v6340_v39  ;;  %v3505_v21 = vsel %vm3459_vm9, %v9449_v4, %v5882_v45  ;;  %v3504_v14 = vsel %vm3459_vm9, %v9433_v7, %v5881_v54  ;;  %v3661_v16 = vsel %vm3654_vm12, %v3596_v50, %v6321_v46  ;;  %v6350_v54 = vpop.permute.xlu1 %6349 }
 0x3a6   : > { %v3662_v2 = vsel %vm3654_vm12, %v3597_v61, %v6322_v13  ;;  %5009 = vmatprep.mubr.msk.bf16.mxu0 %vm3852_vm14, %v3786_v31  ;;  %v3569_v17 = vsel %vm3524_vm10, %v3504_v14, %v6086_v5  ;;  %v3570_v27 = vsel %vm3524_vm10, %v3505_v21, %v6087_v6  ;;  %v3572_v4 = vsel %vm3524_vm10, %v3507_v11, %v6092_v8  ;;  %v11845_v13 = vld [vmem:[#allocation90_spill] sm:$0xff]  ;;  %v11847_v8 = vld [vmem:[#allocation32_spill] sm:$0xff] }
 0x3a7   : > { %v3726_v59 = vsel %vm3719_vm13, %v3661_v16, %v6341_v47  ;;  %v3727_v23 = vsel %vm3719_vm13, %v3662_v2, %v6342_v55  ;;  %v3571_v29 = vsel %vm3524_vm10, %v3506_v44, %v6091_v53  ;;  %v6377_v7 = vunpack.i.h.bf16 %v6375_v38  ;;  %v6395_v57 = vpop.permute.xlu0 %6394  ;;  %v11848_v31 = vld [vmem:[#allocation162_spill] sm:$0xff]  ;;  %v11850_v2 = vld [vmem:[#allocation72_spill] sm:$0xff] }
 0x3a8   : > { %v3787_v45 = vpack.c.bf16 %v3727_v23, %v3726_v59  ;;  %v6307_v26 = vunpack.i.h.bf16 %v9622_v10  ;;  %v3637_v41 = vsel %vm3589_vm11, %v3572_v4, %v6356_v20  ;;  %v6352_v60 = vunpack.i.h.bf16 %v6350_v54  ;;  %v11849_v47 = vld [vmem:[#allocation226_spill] sm:$0xff] }
 0x3a9   : > { %v6351_v37 = vunpack.i.l.bf16 %v6350_v54  ;;  %v6367_v28 = vunpack.i.h.bf16 %v9760_v12  ;;  %v6366_v19 = vunpack.i.l.bf16 %v9760_v12  ;;  %v6376_v56 = vunpack.i.l.bf16 %v6375_v38  ;;  %v6360_v30 = vpop.permute.xlu1 %6359 }
 0x3aa   : > { %v6386_v49 = vunpack.i.l.bf16 %v6385_v32  ;;  %5010 = vmatmul.mubr.msk.bf16.gmra.mrb[16].mxu0 %vm3852_vm14, %v3787_v45  ;;  %v3636_v11 = vsel %vm3589_vm11, %v3571_v29, %v6352_v60  ;;  %v6397_v18 = vunpack.i.h.bf16 %v6395_v57  ;;  %v6396_v22 = vunpack.i.l.bf16 %v6395_v57  ;;  %v11853_v29 = vld [vmem:[#allocation115_spill] sm:$0xff]  ;;  %v11854_v45 = vld [vmem:[#allocation118_spill] sm:$0xff] }
 0x3ab   : > { %v3635_v44 = vsel %vm3589_vm11, %v3570_v27, %v6351_v37  ;;  %v3702_v10 = vsel %vm3654_vm12, %v3637_v41, %v6377_v7  ;;  %v6387_v33 = vunpack.i.h.bf16 %v6385_v32  ;;  %v3701_v48 = vsel %vm3654_vm12, %v3636_v11, %v6376_v56  ;;  %v9827_v6 = vpop.permute.xlu0 %6404  ;;  %v11856_v60 = vld [vmem:[#allocation135_spill] sm:$0xff] }
 0x3ac   : > { %v3700_v63 = vsel %vm3654_vm12, %v3635_v44, %v6367_v28  ;;  %v9819_v12 = vsel %vm258_vm0, %v9428_v58, %v5866_v24  ;;  %v3634_v34 = vsel %vm3589_vm11, %v3569_v17, %v6307_v26  ;;  %v3766_v42 = vsel %vm3719_vm13, %v3701_v48, %v6396_v22  ;;  %v11851_v17 = vld [vmem:[#allocation71_spill] sm:$0xff]  ;;  %v11855_v26 = vld [vmem:[#allocation140_spill] sm:$0xff] }
 0x3ad   : > { %v3767_v40 = vsel %vm3719_vm13, %v3702_v10, %v6397_v18  ;;  %v5887_v46 = vunpack.i.h.bf16 %v11845_v13  ;;  %v5886_v38 = vunpack.i.l.bf16 %v11845_v13  ;;  %v3699_v0 = vsel %vm3654_vm12, %v3634_v34, %v6366_v19  ;;  %v6370_v61 = vpop.permute.xlu1 %6369  ;;  %v11857_v19 = vld [vmem:[#allocation177_spill] sm:$0xff] }
 0x3ae   : > { %v3765_v5 = vsel %vm3719_vm13, %v3700_v63, %v6387_v33  ;;  %v5997_v62 = vunpack.i.h.bf16 %v11846_v3  ;;  %v5996_v58 = vunpack.i.l.bf16 %v11846_v3  ;;  %v3764_v24 = vsel %vm3719_vm13, %v3699_v0, %v6386_v49 }
 0x3af   : > { %v3807_v15 = vpack.c.bf16 %v3767_v40, %v3766_v42  ;;  %v6002_v53 = vunpack.i.h.bf16 %v11847_v8  ;;  %v6001_v50 = vunpack.i.l.bf16 %v11847_v8  ;;  %v6156_v39 = vunpack.i.l.bf16 %v11848_v31  ;;  %v9850_v52 = vpop.permute.xlu0 %6414 }
 0x3b0   : > { %v3806_v20 = vpack.c.bf16 %v3765_v5, %v3764_v24  ;;  %v9840_v55 = vsel %vm258_vm0, %v9424_v43, %v5867_v36  ;;  %v5907_v21 = vunpack.i.h.bf16 %v11849_v47  ;;  %v5906_v14 = vunpack.i.l.bf16 %v11849_v47  ;;  %v11852_v43 = vld [vmem:[#allocation98_spill] sm:$0xff] }
 0x3b1   : > { %v6157_v16 = vunpack.i.h.bf16 %v11848_v31  ;;  %v3509_v32 = vsel %vm3459_vm9, %v11850_v2, %v5887_v46  ;;  %v3508_v27 = vsel %vm3459_vm9, %v11851_v17, %v5886_v38  ;;  %v6362_v59 = vunpack.i.h.bf16 %v6360_v30  ;;  %v6380_v49 = vpop.permute.xlu1 %6379  ;;  %v11859_v46 = vld [vmem:[#allocation152_spill] sm:$0xff] }
 0x3b2   : > { %v6361_v23 = vunpack.i.l.bf16 %v6360_v30  ;;  %5049 = vmatprep.mubr.msk.bf16.mxu1 %vm3852_vm14, %v3806_v20  ;;  %v5942_v36 = vunpack.i.h.bf16 %v11852_v43  ;;  %v5941_v4 = vunpack.i.l.bf16 %v11852_v43  ;;  %v3534_v7 = vsel %vm3524_vm10, %v11853_v29, %v5997_v62  ;;  %v11858_v30 = vld [vmem:[#allocation130_spill] sm:$0xff] }
 0x3b3   : > { %v3533_v54 = vsel %vm3524_vm10, %v11854_v45, %v5996_v58  ;;  %5050 = vmatmul.mubr.msk.bf16.gmra.mrb[16].mxu1 %vm3852_vm14, %v3807_v15  ;;  %v3536_v41 = vsel %vm3524_vm10, %v11855_v26, %v6002_v53  ;;  %v3535_v37 = vsel %vm3524_vm10, %v11856_v60, %v6001_v50  ;;  %v6161_v56 = vunpack.i.l.bf16 %v11857_v19  ;;  %v6425_v48 = vpop.permute.xlu0 %6424 }
 0x3b4   : > { %v3598_v28 = vsel %vm3589_vm11, %v3533_v54, %v6156_v39  ;;  %v3599_v57 = vsel %vm3589_vm11, %v3534_v7, %v6157_v16  ;;  %v6162_v44 = vunpack.i.h.bf16 %v11857_v19  ;;  %v6382_v11 = vunpack.i.h.bf16 %v6380_v49 }
 0x3b5   : > { %v6381_v18 = vunpack.i.l.bf16 %v6380_v49  ;;  %v3663_v22 = vsel %vm3654_vm12, %v3598_v28, %v6361_v23  ;;  %v3664_v10 = vsel %vm3654_vm12, %v3599_v57, %v6362_v59  ;;  %v6372_v33 = vunpack.i.h.bf16 %v6370_v61  ;;  %v6390_v62 = vpop.permute.xlu1 %6389 }
 0x3b6   : > { %v6371_v63 = vunpack.i.l.bf16 %v6370_v61  ;;  %v6097_v34 = vunpack.i.h.bf16 %v11858_v30  ;;  %v6096_v42 = vunpack.i.l.bf16 %v11858_v30  ;;  %v3729_v13 = vsel %vm3719_vm13, %v3664_v10, %v6382_v11 }
 0x3b7   : > { %v3728_v40 = vsel %vm3719_vm13, %v3663_v22, %v6381_v18  ;;  %v6102_v38 = vunpack.i.h.bf16 %v11859_v46  ;;  %v6101_v0 = vunpack.i.l.bf16 %v11859_v46  ;;  %v3600_v5 = vsel %vm3589_vm11, %v3535_v37, %v6161_v56  ;;  %v6435_v61 = vpop.permute.xlu0 %6434 }
 0x3b8   : > { %v3788_v3 = vpack.c.bf16 %v3729_v13, %v3728_v40  ;;  %v3601_v58 = vsel %vm3589_vm11, %v3536_v41, %v6162_v44  ;;  %v6406_v24 = vunpack.i.l.bf16 %v9827_v6  ;;  %v6392_v15 = vunpack.i.h.bf16 %v6390_v62 }
 0x3b9   : > { %v6391_v8 = vunpack.i.l.bf16 %v6390_v62  ;;  %v3511_v53 = vsel %vm3459_vm9, %v9752_v25, %v5942_v36  ;;  %v3510_v50 = vsel %vm3459_vm9, %v9725_v35, %v5941_v4  ;;  %v3665_v31 = vsel %vm3654_vm12, %v3600_v5, %v6371_v63  ;;  %v11864_v62 = vld [vmem:[#allocation166_spill] sm:$0xff] }
 0x3ba   : > { %v3666_v39 = vsel %vm3654_vm12, %v3601_v58, %v6372_v33  ;;  %5013 = vmatprep.mubr.msk.bf16.mxu0 %vm3852_vm14, %v3788_v3  ;;  %v3573_v20 = vsel %vm3524_vm10, %v3508_v27, %v6096_v42  ;;  %v3574_v16 = vsel %vm3524_vm10, %v3509_v32, %v6097_v34  ;;  %v3575_v25 = vsel %vm3524_vm10, %v3510_v50, %v6101_v0  ;;  %v11861_v33 = vld [vmem:[#allocation5_spill] sm:$0xff]  ;;  %v11862_v42 = vld [vmem:[#allocation112_spill] sm:$0xff]  ;;  %v11863_v0 = vld [vmem:[#allocation127_spill] sm:$0xff] }
 0x3bb   : > { %v3730_v2 = vsel %vm3719_vm13, %v3665_v31, %v6391_v8  ;;  %v3731_v17 = vsel %vm3719_vm13, %v3666_v39, %v6392_v15  ;;  %v3576_v59 = vsel %vm3524_vm10, %v3511_v53, %v6102_v38  ;;  %v6427_v35 = vunpack.i.h.bf16 %v6425_v48  ;;  %v6400_v43 = vpop.permute.xlu1 %6399  ;;  %v6445_v26 = vpop.permute.xlu0 %6444  ;;  %v11865_v8 = vld [vmem:[#allocation223_spill] sm:$0xff] }
 0x3bc   : > { %v3789_v23 = vpack.c.bf16 %v3731_v17, %v3730_v2  ;;  %v6357_v36 = vunpack.i.h.bf16 %v9733_v51  ;;  %v3641_v4 = vsel %vm3589_vm11, %v3576_v59, %v6406_v24  ;;  %v6402_v29 = vunpack.i.h.bf16 %v6400_v43  ;;  %v11869_v59 = vld [vmem:[#allocation17_spill] sm:$0xff] }
 0x3bd   : > { %v6401_v7 = vunpack.i.l.bf16 %v6400_v43  ;;  %v6417_v27 = vunpack.i.h.bf16 %v9850_v52  ;;  %v6416_v32 = vunpack.i.l.bf16 %v9850_v52  ;;  %v6426_v45 = vunpack.i.l.bf16 %v6425_v48  ;;  %v11860_v52 = vld [vmem:[#allocation4_spill] sm:$0xff]  ;;  %v11870_v43 = vld [vmem:[#allocation61_spill] sm:$0xff] }
 0x3be   : > { %v6436_v54 = vunpack.i.l.bf16 %v6435_v61  ;;  %5014 = vmatmul.mubr.msk.bf16.gmra.mrb[20].mxu0 %vm3852_vm14, %v3789_v23  ;;  %v3640_v41 = vsel %vm3589_vm11, %v3575_v25, %v6402_v29  ;;  %v6447_v37 = vunpack.i.h.bf16 %v6445_v26  ;;  %v6446_v28 = vunpack.i.l.bf16 %v6445_v26 }
 0x3bf   : > { %v3639_v60 = vsel %vm3589_vm11, %v3574_v16, %v6401_v7  ;;  %v3706_v51 = vsel %vm3654_vm12, %v3641_v4, %v6427_v35  ;;  %v6437_v19 = vunpack.i.h.bf16 %v6435_v61  ;;  %v3705_v49 = vsel %vm3654_vm12, %v3640_v41, %v6426_v45  ;;  %v6410_v57 = vpop.permute.xlu1 %6409 }
 0x3c0   : > { %v3704_v56 = vsel %vm3654_vm12, %v3639_v60, %v6417_v27  ;;  %v5947_v44 = vunpack.i.h.bf16 %v11860_v52  ;;  %v3638_v11 = vsel %vm3589_vm11, %v3573_v20, %v6357_v36  ;;  %v3770_v18 = vsel %vm3719_vm13, %v3705_v49, %v6446_v28  ;;  %v11872_v49 = vld [vmem:[#allocation154_spill] sm:$0xff] }
 0x3c1   : > { %v3771_v22 = vsel %vm3719_vm13, %v3706_v51, %v6447_v37  ;;  %v5946_v10 = vunpack.i.l.bf16 %v11860_v52  ;;  %v5952_v63 = vunpack.i.h.bf16 %v11861_v33  ;;  %v3703_v48 = vsel %vm3654_vm12, %v3638_v11, %v6416_v32  ;;  %v9908_v30 = vpop.permute.xlu0 %6454  ;;  %v11871_v37 = vld [vmem:[#allocation141_spill] sm:$0xff] }
 0x3c2   : > { %v3769_v34 = vsel %vm3719_vm13, %v3704_v56, %v6437_v19  ;;  %v6007_v40 = vunpack.i.h.bf16 %v11862_v42  ;;  %v6006_v13 = vunpack.i.l.bf16 %v11862_v42  ;;  %v3768_v46 = vsel %vm3719_vm13, %v3703_v48, %v6436_v54 }
 0x3c3   : > { %v3809_v38 = vpack.c.bf16 %v3771_v22, %v3770_v18  ;;  %v6012_v5 = vunpack.i.h.bf16 %v11863_v0  ;;  %v6011_v3 = vunpack.i.l.bf16 %v11863_v0  ;;  %v6166_v58 = vunpack.i.l.bf16 %v11864_v62  ;;  %v6420_v24 = vpop.permute.xlu1 %6419 }
 0x3c4   : > { %v3808_v15 = vpack.c.bf16 %v3769_v34, %v3768_v46  ;;  %v5841_v53 = vunpack.i.l.bf16 %v11865_v8  ;;  %v3450_v50 = vsel %vm3394_vm7, %v9840_v55, %v5907_v21  ;;  %v3449_v31 = vsel %vm3394_vm7, %v9819_v12, %v5906_v14  ;;  %v11866_v21 = vld [vmem:[#allocation133_spill] sm:$0xff]  ;;  %v11867_v14 = vld [vmem:[#allocation131_spill] sm:$0xff] }
 0x3c5   : > { %v6167_v39 = vunpack.i.h.bf16 %v11864_v62  ;;  %v3513_v61 = vsel %vm3459_vm9, %v9543_v9, %v5947_v44  ;;  %v3512_v20 = vsel %vm3459_vm9, %v9533_v1, %v5946_v10  ;;  %v6412_v16 = vunpack.i.h.bf16 %v6410_v57  ;;  %v9932_v17 = vpop.permute.xlu0 %6464  ;;  %v11868_v9 = vld [vmem:[#allocation18_spill] sm:$0xff]  ;;  %v11873_v34 = vld [vmem:[#allocation111_spill] sm:$0xff] }
 0x3c6   : > { %v6411_v2 = vunpack.i.l.bf16 %v6410_v57  ;;  %5053 = vmatprep.mubr.msk.bf16.mxu1 %vm3852_vm14, %v3808_v15  ;;  %v3515_v55 = vsel %vm3459_vm9, %v3450_v50, %v5952_v63  ;;  %v5951_v47 = vunpack.i.l.bf16 %v11861_v33  ;;  %v3538_v12 = vsel %vm3524_vm10, %v11866_v21, %v6007_v40 }
 0x3c7   : > { %v3537_v25 = vsel %vm3524_vm10, %v11867_v14, %v6006_v13  ;;  %5054 = vmatmul.mubr.msk.bf16.gmra.mrb[20].mxu1 %vm3852_vm14, %v3809_v38  ;;  %v3540_v1 = vsel %vm3524_vm10, %v11868_v9, %v6012_v5  ;;  %v3539_v35 = vsel %vm3524_vm10, %v11869_v59, %v6011_v3  ;;  %v6171_v36 = vunpack.i.l.bf16 %v11870_v43  ;;  %v6430_v4 = vpop.permute.xlu1 %6429 }
 0x3c8   : > { %v3602_v23 = vsel %vm3589_vm11, %v3537_v25, %v6166_v58  ;;  %v3603_v29 = vsel %vm3589_vm11, %v3538_v12, %v6167_v39  ;;  %v6172_v7 = vunpack.i.h.bf16 %v11870_v43  ;;  %v6432_v27 = vunpack.i.h.bf16 %v6430_v4 }
 0x3c9   : > { %v6431_v32 = vunpack.i.l.bf16 %v6430_v4  ;;  %v3667_v45 = vsel %vm3654_vm12, %v3602_v23, %v6411_v2  ;;  %v3668_v54 = vsel %vm3654_vm12, %v3603_v29, %v6412_v16  ;;  %v6422_v26 = vunpack.i.h.bf16 %v6420_v24  ;;  %v6475_v60 = vpop.permute.xlu0 %6474  ;;  %v11874_v29 = vld [vmem:[#allocation106_spill] sm:$0xff] }
 0x3ca   : > { %v6421_v41 = vunpack.i.l.bf16 %v6420_v24  ;;  %v6107_v28 = vunpack.i.h.bf16 %v11871_v37  ;;  %v6106_v51 = vunpack.i.l.bf16 %v11871_v37  ;;  %v3733_v56 = vsel %vm3719_vm13, %v3668_v54, %v6432_v27 }
 0x3cb   : > { %v3732_v19 = vsel %vm3719_vm13, %v3667_v45, %v6431_v32  ;;  %v6112_v57 = vunpack.i.h.bf16 %v11872_v49  ;;  %v6111_v52 = vunpack.i.l.bf16 %v11872_v49  ;;  %v3604_v44 = vsel %vm3589_vm11, %v3539_v35, %v6171_v36  ;;  %v6440_v18 = vpop.permute.xlu1 %6439 }
 0x3cc   : > { %v3790_v11 = vpack.c.bf16 %v3733_v56, %v3732_v19  ;;  %v3605_v22 = vsel %vm3589_vm11, %v3540_v1, %v6172_v7  ;;  %v6456_v10 = vunpack.i.l.bf16 %v9908_v30  ;;  %v6442_v33 = vunpack.i.h.bf16 %v6440_v18  ;;  %v11876_v19 = vld [vmem:[#allocation57_spill] sm:$0xff] }
 0x3cd   : > { %v6441_v63 = vunpack.i.l.bf16 %v6440_v18  ;;  %v3514_v48 = vsel %vm3459_vm9, %v3449_v31, %v5951_v47  ;;  %v6017_v42 = vunpack.i.h.bf16 %v11873_v34  ;;  %v3670_v40 = vsel %vm3654_vm12, %v3605_v22, %v6422_v26  ;;  %v6485_v46 = vpop.permute.xlu0 %6484  ;;  %v11875_v26 = vld [vmem:[#allocation19_spill] sm:$0xff]  ;;  %v11878_v18 = vld [vmem:[#allocation225_spill] sm:$0xff] }
 0x3ce   : > { %v3669_v13 = vsel %vm3654_vm12, %v3604_v44, %v6421_v41  ;;  %5017 = vmatprep.mubr.msk.bf16.mxu0 %vm3852_vm14, %v3790_v11  ;;  %v3577_v38 = vsel %vm3524_vm10, %v3512_v20, %v6106_v51  ;;  %v3578_v0 = vsel %vm3524_vm10, %v3513_v61, %v6107_v28  ;;  %v3735_v3 = vsel %vm3719_vm13, %v3670_v40, %v6442_v33  ;;  %v11877_v44 = vld [vmem:[#allocation27_spill] sm:$0xff]  ;;  %v11881_v40 = vld [vmem:[#allocation77_spill] sm:$0xff] }
 0x3cf   : > { %v3734_v5 = vsel %vm3719_vm13, %v3669_v13, %v6441_v63  ;;  %v3579_v62 = vsel %vm3524_vm10, %v3514_v48, %v6111_v52  ;;  %v3580_v58 = vsel %vm3524_vm10, %v3515_v55, %v6112_v57  ;;  %v6477_v24 = vunpack.i.h.bf16 %v6475_v60  ;;  %v6450_v50 = vpop.permute.xlu1 %6449  ;;  %v11880_v48 = vld [vmem:[#allocation33_spill] sm:$0xff] }
 0x3d0   : > { %v3791_v15 = vpack.c.bf16 %v3735_v3, %v3734_v5  ;;  %v6407_v31 = vunpack.i.h.bf16 %v9827_v6  ;;  %v3645_v39 = vsel %vm3589_vm11, %v3580_v58, %v6456_v10  ;;  %v6452_v16 = vunpack.i.h.bf16 %v6450_v50  ;;  %v11879_v10 = vld [vmem:[#allocation15_spill] sm:$0xff]  ;;  %v11885_v58 = vld [vmem:[#allocation22_spill] sm:$0xff] }
 0x3d1   : > { %v6451_v2 = vunpack.i.l.bf16 %v6450_v50  ;;  %v6467_v20 = vunpack.i.h.bf16 %v9932_v17  ;;  %v6466_v61 = vunpack.i.l.bf16 %v9932_v17  ;;  %v6476_v47 = vunpack.i.l.bf16 %v6475_v60  ;;  %v6495_v12 = vpop.permute.xlu0 %6494 }
 0x3d2   : > { %v6486_v21 = vunpack.i.l.bf16 %v6485_v46  ;;  %5018 = vmatmul.mubr.msk.bf16.gmra.mrb[24].mxu0 %vm3852_vm14, %v3791_v15  ;;  %v3644_v55 = vsel %vm3589_vm11, %v3579_v62, %v6452_v16  ;;  %v6497_v25 = vunpack.i.h.bf16 %v6495_v12  ;;  %v6496_v9 = vunpack.i.l.bf16 %v6495_v12  ;;  %v11884_v62 = vld [vmem:[#allocation139_spill] sm:$0xff]  ;;  %v11886_v15 = vld [vmem:[#allocation36_spill] sm:$0xff]  ;;  %v11887_v16 = vld [vmem:[#allocation41_spill] sm:$0xff] }
 0x3d3   : > { %v3643_v14 = vsel %vm3589_vm11, %v3578_v0, %v6451_v2  ;;  %v3710_v6 = vsel %vm3654_vm12, %v3645_v39, %v6477_v24  ;;  %v6487_v1 = vunpack.i.h.bf16 %v6485_v46  ;;  %v3709_v35 = vsel %vm3654_vm12, %v3644_v55, %v6476_v47  ;;  %v6460_v23 = vpop.permute.xlu1 %6459  ;;  %v11882_v46 = vld [vmem:[#allocation6_spill] sm:$0xff] }
 0x3d4   : > { %v3708_v59 = vsel %vm3654_vm12, %v3643_v14, %v6467_v20  ;;  %v6016_v17 = vunpack.i.l.bf16 %v11873_v34  ;;  %v3642_v43 = vsel %vm3589_vm11, %v3577_v38, %v6407_v31  ;;  %v3774_v36 = vsel %vm3719_vm13, %v3709_v35, %v6496_v9 }
 0x3d5   : > { %v3775_v4 = vsel %vm3719_vm13, %v3710_v6, %v6497_v25  ;;  %v6027_v7 = vunpack.i.h.bf16 %v11874_v29  ;;  %v6026_v27 = vunpack.i.l.bf16 %v11874_v29  ;;  %v3707_v32 = vsel %vm3654_vm12, %v3642_v43, %v6466_v61  ;;  %v9988_v45 = vpop.permute.xlu0 %6504 }
 0x3d6   : > { %v3773_v54 = vsel %vm3719_vm13, %v3708_v59, %v6487_v1  ;;  %v6022_v41 = vunpack.i.h.bf16 %v11875_v26  ;;  %v6021_v60 = vunpack.i.l.bf16 %v11875_v26  ;;  %v3772_v37 = vsel %vm3719_vm13, %v3707_v32, %v6486_v21 }
 0x3d7   : > { %v3811_v28 = vpack.c.bf16 %v3775_v4, %v3774_v36  ;;  %v5842_v51 = vunpack.i.h.bf16 %v11865_v8  ;;  %v6177_v56 = vunpack.i.h.bf16 %v11876_v19  ;;  %v6176_v49 = vunpack.i.l.bf16 %v11876_v19  ;;  %v6470_v57 = vpop.permute.xlu1 %6469  ;;  %v11896_v8 = vld [vmem:[#allocation63_spill] sm:$0xff] }
 0x3d8   : > { %v3810_v52 = vpack.c.bf16 %v3773_v54, %v3772_v37  ;;  %v3322_v11 = vsel %vm3265_vm6, %v11877_v44, %v5841_v53  ;;  %v5871_v22 = vunpack.i.l.bf16 %v11878_v18  ;;  %v3542_v33 = vsel %vm3524_vm10, %v11879_v10, %v6017_v42  ;;  %v11883_v53 = vld [vmem:[#allocation38_spill] sm:$0xff] }
 0x3d9   : > { %v6461_v63 = vunpack.i.l.bf16 %v6460_v23  ;;  %v3541_v34 = vsel %vm3524_vm10, %v11880_v48, %v6016_v17  ;;  %v3546_v13 = vsel %vm3524_vm10, %v11881_v40, %v6027_v7  ;;  %v3545_v38 = vsel %vm3524_vm10, %v11882_v46, %v6026_v27  ;;  %v6515_v5 = vpop.permute.xlu0 %6514 }
 0x3da   : > { %v6462_v0 = vunpack.i.h.bf16 %v6460_v23  ;;  %5057 = vmatprep.mubr.msk.bf16.mxu1 %vm3852_vm14, %v3810_v52  ;;  %v3544_v3 = vsel %vm3524_vm10, %v11883_v53, %v6022_v41  ;;  %v3543_v42 = vsel %vm3524_vm10, %v11884_v62, %v6021_v60  ;;  %v6032_v24 = vunpack.i.h.bf16 %v11885_v58 }
 0x3db   : > { %v6186_v50 = vunpack.i.l.bf16 %v11886_v15  ;;  %5058 = vmatmul.mubr.msk.bf16.gmra.mrb[24].mxu1 %vm3852_vm14, %v3811_v28  ;;  %v3606_v31 = vsel %vm3589_vm11, %v3541_v34, %v6176_v49  ;;  %v3607_v39 = vsel %vm3589_vm11, %v3542_v33, %v6177_v56  ;;  %v6182_v2 = vunpack.i.h.bf16 %v11887_v16  ;;  %v6480_v61 = vpop.permute.xlu1 %6479  ;;  %v11891_v15 = vld [vmem:[#allocation8_spill] sm:$0xff] }
 0x3dc   : > { %v6181_v20 = vunpack.i.l.bf16 %v11887_v16  ;;  %v6457_v47 = vunpack.i.h.bf16 %v9908_v30  ;;  %v3671_v21 = vsel %vm3654_vm12, %v3606_v31, %v6461_v63  ;;  %v6482_v12 = vunpack.i.h.bf16 %v6480_v61  ;;  %v11892_v16 = vld [vmem:[#allocation121_spill] sm:$0xff] }
 0x3dd   : > { %v6481_v55 = vunpack.i.l.bf16 %v6480_v61  ;;  %v3672_v14 = vsel %vm3654_vm12, %v3607_v39, %v6462_v0  ;;  %v6472_v25 = vunpack.i.h.bf16 %v6470_v57  ;;  %v6471_v9 = vunpack.i.l.bf16 %v6470_v57  ;;  %v6525_v1 = vpop.permute.xlu0 %6524 }
 0x3de   : > { %v6516_v6 = vunpack.i.l.bf16 %v6515_v5  ;;  %v6031_v59 = vunpack.i.l.bf16 %v11885_v58  ;;  %v3610_v35 = vsel %vm3589_vm11, %v3545_v38, %v6186_v50  ;;  %v3737_v17 = vsel %vm3719_vm13, %v3672_v14, %v6482_v12  ;;  %v11889_v38 = vld [vmem:[#allocation164_spill] sm:$0xff] }
 0x3df   : > { %v3736_v23 = vsel %vm3719_vm13, %v3671_v21, %v6481_v55  ;;  %v3608_v30 = vsel %vm3589_vm11, %v3543_v42, %v6181_v20  ;;  %v3609_v43 = vsel %vm3589_vm11, %v3544_v3, %v6182_v2  ;;  %v6517_v36 = vunpack.i.h.bf16 %v6515_v5  ;;  %v6490_v29 = vpop.permute.xlu1 %6489  ;;  %v11890_v5 = vld [vmem:[#allocation132_spill] sm:$0xff] }
 0x3e0   : > { %v3792_v4 = vpack.c.bf16 %v3737_v17, %v3736_v23  ;;  %v3611_v7 = vsel %vm3589_vm11, %v3546_v13, %v6457_v47  ;;  %v6507_v27 = vunpack.i.h.bf16 %v9988_v45  ;;  %v6492_v32 = vunpack.i.h.bf16 %v6490_v29  ;;  %v11888_v13 = vld [vmem:[#allocation3_spill] sm:$0xff]  ;;  %v11893_v21 = vld [vmem:[#allocation204_spill] sm:$0xff] }
 0x3e1   : > { %v6491_v54 = vunpack.i.l.bf16 %v6490_v29  ;;  %v6506_v26 = vunpack.i.l.bf16 %v9988_v45  ;;  %v3674_v41 = vsel %vm3654_vm12, %v3609_v43, %v6472_v25  ;;  %v3673_v60 = vsel %vm3654_vm12, %v3608_v30, %v6471_v9  ;;  %v6535_v28 = vpop.permute.xlu0 %6534  ;;  %v11894_v55 = vld [vmem:[#allocation224_spill] sm:$0xff]  ;;  %v11895_v9 = vld [vmem:[#allocation7_spill] sm:$0xff]  ;;  %v11899_v43 = vld [vmem:[#allocation150_spill] sm:$0xff] }
 0x3e2   : > { %v3675_v37 = vsel %vm3654_vm12, %v3610_v35, %v6516_v6  ;;  %5021 = vmatprep.mubr.msk.bf16.mxu0 %vm3852_vm14, %v3792_v4  ;;  %v3739_v56 = vsel %vm3719_vm13, %v3674_v41, %v6492_v32  ;;  %v6537_v49 = vunpack.i.h.bf16 %v6535_v28  ;;  %v6536_v57 = vunpack.i.l.bf16 %v6535_v28  ;;  %v11897_v35 = vld [vmem:[#allocation147_spill] sm:$0xff]  ;;  %v11900_v29 = vld [vmem:[#allocation108_spill] sm:$0xff]  ;;  %v11901_v41 = vld [vmem:[#allocation14_spill] sm:$0xff] }
 0x3e3   : > { %v3738_v19 = vsel %vm3719_vm13, %v3673_v60, %v6491_v54  ;;  %v3676_v52 = vsel %vm3654_vm12, %v3611_v7, %v6517_v36  ;;  %v6527_v44 = vunpack.i.h.bf16 %v6525_v1  ;;  %v6526_v10 = vunpack.i.l.bf16 %v6525_v1  ;;  %v10041_v33 = vpop.permute.xlu1 %6499 }
 0x3e4   : > { %v3793_v45 = vpack.c.bf16 %v3739_v56, %v3738_v19  ;;  %v5872_v63 = vunpack.i.h.bf16 %v11878_v18  ;;  %v3386_v48 = vsel %vm258_vm0, %v3322_v11, %v5871_v22  ;;  %v3740_v34 = vsel %vm3719_vm13, %v3675_v37, %v6536_v57 }
 0x3e5   : > { %v3741_v40 = vsel %vm3719_vm13, %v3676_v52, %v6537_v49  ;;  %v5921_v46 = vunpack.i.l.bf16 %v11888_v13  ;;  %v3548_v0 = vsel %vm3524_vm10, %v11889_v38, %v6032_v24  ;;  %v3547_v53 = vsel %vm3524_vm10, %v11890_v5, %v6031_v59  ;;  %v6545_v62 = vpop.permute.xlu0 %6544  ;;  %v11902_v49 = vld [vmem:[#allocation44_spill] sm:$0xff] }
 0x3e6   : > { %v3794_v3 = vpack.c.bf16 %v3741_v40, %v3740_v34  ;;  %5022 = vmatmul.mubr.msk.bf16.gmra.mrb[28].mxu0 %vm3852_vm14, %v3793_v45  ;;  %v3613_v18 = vsel %vm3589_vm11, %v3548_v0, %v6507_v27  ;;  %v3612_v11 = vsel %vm3589_vm11, %v3547_v53, %v6506_v26  ;;  %v6547_v22 = vunpack.i.h.bf16 %v6545_v62  ;;  %v11904_v5 = vld [vmem:[#allocation136_spill] sm:$0xff] }
 0x3e7   : > { %v6546_v42 = vunpack.i.l.bf16 %v6545_v62  ;;  %v5922_v58 = vunpack.i.h.bf16 %v11888_v13  ;;  %v5931_v50 = vunpack.i.l.bf16 %v11891_v15  ;;  %v3677_v31 = vsel %vm3654_vm12, %v3612_v11, %v6526_v10  ;;  %v10060_v39 = vpop.permute.xlu1 %6509  ;;  %v11906_v11 = vld [vmem:[#allocation43_spill] sm:$0xff] }
 0x3e8   : > { %v3678_v24 = vsel %vm3654_vm12, %v3613_v18, %v6527_v44  ;;  %5025 = vmatprep.mubr.msk.bf16.mxu0 %vm3852_vm14, %v3794_v3  ;;  %v3323_v2 = vsel %vm3265_vm6, %v11892_v16, %v5842_v51  ;;  %v5932_v20 = vunpack.i.h.bf16 %v11891_v15  ;;  %v5682_v12 = vunpack.i.h.bf16 %v11893_v21  ;;  %v11905_v3 = vld [vmem:[#allocation82_spill] sm:$0xff] }
 0x3e9   : > { %v3742_v61 = vsel %vm3719_vm13, %v3677_v31, %v6546_v42  ;;  %v3743_v47 = vsel %vm3719_vm13, %v3678_v24, %v6547_v22  ;;  %v5847_v14 = vunpack.i.h.bf16 %v11894_v55  ;;  %v3387_v25 = vsel %vm258_vm0, %v3323_v2, %v5872_v63  ;;  %v10073_v1 = vpop.permute.xlu0 %6554  ;;  %v11903_v63 = vld [vmem:[#allocation156_spill] sm:$0xff] }
 0x3ea   : > { %v5956_v6 = vunpack.i.l.bf16 %v11895_v9  ;;  %v5911_v59 = vunpack.i.l.bf16 %v11896_v8  ;;  %v3324_v51 = vsel %vm3265_vm6, %v11897_v35, %v5921_v46  ;;  %v5957_v23 = vunpack.i.h.bf16 %v11895_v9 }
 0x3eb   : > { %v11898_v17 = vunpack.i.l.bf16 %v11893_v21  ;;  %v3325_v36 = vsel %vm3265_vm6, %v11899_v43, %v5922_v58  ;;  %v3388_v4 = vsel %vm258_vm0, %v3324_v51, %v5931_v50  ;;  %v5961_v7 = vunpack.i.l.bf16 %v11900_v29  ;;  %v6520_v32 = vpop.permute.xlu1 %6519 }
 0x3ec   : > { %v3795_v27 = vpack.c.bf16 %v3743_v47, %v3742_v61  ;;  %v3389_v54 = vsel %vm258_vm0, %v3325_v36, %v5932_v20  ;;  %v5962_v26 = vunpack.i.h.bf16 %v11900_v29  ;;  %v6037_v60 = vunpack.i.h.bf16 %v11901_v41 }
 0x3ed   : > { %v3451_v30 = vsel %vm3394_vm7, %v3386_v48, %v11898_v17  ;;  %v6036_v37 = vunpack.i.l.bf16 %v11901_v41  ;;  %v5912_v28 = vunpack.i.h.bf16 %v11896_v8  ;;  %v3452_v19 = vsel %vm3394_vm7, %v3387_v25, %v5682_v12  ;;  %v10094_v52 = vpop.permute.xlu0 %6564 }
 0x3ee   : > { %v3516_v56 = vsel %vm3459_vm9, %v3451_v30, %v5956_v6  ;;  %v6116_v57 = vunpack.i.l.bf16 %v11902_v49  ;;  %5026 = vmatmul.mubr.msk.bf16.gmra.mrb[32].mxu0 %vm3852_vm14, %v3795_v27  ;;  %v3517_v44 = vsel %vm3459_vm9, %v3452_v19, %v5957_v23  ;;  %v3453_v10 = vsel %vm3394_vm7, %v3388_v4, %v5911_v59 }
 0x3ef   : > { %v6117_v45 = vunpack.i.h.bf16 %v11902_v49  ;;  %v6122_v48 = vunpack.i.h.bf16 %v11903_v63  ;;  %v3454_v34 = vsel %vm3394_vm7, %v3389_v54, %v5912_v28  ;;  %v3518_v40 = vsel %vm3459_vm9, %v3453_v10, %v5961_v7  ;;  %v6530_v38 = vpop.permute.xlu1 %6529 }
 0x3f0   : > { %v6502_v13 = vunpack.i.h.bf16 %v10041_v33  ;;  %v6501_v46 = vunpack.i.l.bf16 %v10041_v33  ;;  %v3519_v0 = vsel %vm3459_vm9, %v3454_v34, %v5962_v26  ;;  %v3550_v53 = vsel %vm3524_vm10, %v11904_v5, %v6037_v60  ;;  %v11908_v5 = vld [vmem:[#allocation145_spill] sm:$0xff] }
 0x3f1   : > { %v3549_v62 = vsel %vm3524_vm10, %v11905_v3, %v6036_v37  ;;  %v6521_v18 = vunpack.i.l.bf16 %v6520_v32  ;;  %v6042_v22 = vunpack.i.h.bf16 %v11906_v11  ;;  %v6041_v42 = vunpack.i.l.bf16 %v11906_v11  ;;  %v6575_v50 = vpop.permute.xlu0 %6574  ;;  %v11909_v3 = vld [vmem:[#allocation175_spill] sm:$0xff] }
 0x3f2   : > { %v3581_v58 = vsel %vm3524_vm10, %v3516_v56, %v6116_v57  ;;  %v6522_v15 = vunpack.i.h.bf16 %v6520_v32  ;;  %v3582_v33 = vsel %vm3524_vm10, %v3517_v44, %v6117_v45  ;;  %v6121_v31 = vunpack.i.l.bf16 %v11903_v63 }
 0x3f3   : > { %v3584_v24 = vsel %vm3524_vm10, %v3519_v0, %v6122_v48  ;;  %v6512_v16 = vunpack.i.h.bf16 %v10060_v39  ;;  %v3646_v2 = vsel %vm3589_vm11, %v3581_v58, %v6501_v46  ;;  %v3647_v20 = vsel %vm3589_vm11, %v3582_v33, %v6502_v13  ;;  %v6540_v21 = vpop.permute.xlu1 %6539 }
 0x3f4   : > { %v6511_v61 = vunpack.i.l.bf16 %v10060_v39  ;;  %v6556_v47 = vunpack.i.l.bf16 %v10073_v1  ;;  %v6557_v12 = vunpack.i.h.bf16 %v10073_v1  ;;  %v3711_v25 = vsel %vm3654_vm12, %v3646_v2, %v6521_v18 }
 0x3f5   : > { %v6542_v9 = vunpack.i.h.bf16 %v6540_v21  ;;  %v6541_v6 = vunpack.i.l.bf16 %v6540_v21  ;;  %v3712_v8 = vsel %vm3654_vm12, %v3647_v20, %v6522_v15  ;;  %v6532_v59 = vunpack.i.h.bf16 %v6530_v38  ;;  %v6585_v23 = vpop.permute.xlu0 %6584  ;;  %v11912_v21 = vld [vmem:[#allocation99_spill] sm:$0xff] }
 0x3f6   : > { %v6531_v35 = vunpack.i.l.bf16 %v6530_v38  ;;  %v6576_v51 = vunpack.i.l.bf16 %v6575_v50  ;;  %v3583_v17 = vsel %vm3524_vm10, %v3518_v40, %v6121_v31  ;;  %v3649_v30 = vsel %vm3589_vm11, %v3584_v24, %v6512_v16  ;;  %v11907_v40 = vld [vmem:[#allocation227_spill] sm:$0xff] }
 0x3f7   : > { %v3776_v39 = vsel %vm3719_vm13, %v3711_v25, %v6541_v6  ;;  %v3777_v43 = vsel %vm3719_vm13, %v3712_v8, %v6542_v9  ;;  %v3648_v1 = vsel %vm3589_vm11, %v3583_v17, %v6511_v61  ;;  %v3614_v36 = vsel %vm3589_vm11, %v3549_v62, %v6556_v47  ;;  %v6550_v7 = vpop.permute.xlu1 %6549  ;;  %v11911_v61 = vld [vmem:[#allocation125_spill] sm:$0xff] }
 0x3f8   : > { %v6577_v4 = vunpack.i.h.bf16 %v6575_v50  ;;  %v3812_v29 = vpack.c.bf16 %v3777_v43, %v3776_v39  ;;  %v3615_v27 = vsel %vm3589_vm11, %v3550_v53, %v6557_v12  ;;  %v6567_v32 = vunpack.i.h.bf16 %v10094_v52 }
 0x3f9   : > { %v6552_v54 = vunpack.i.h.bf16 %v6550_v7  ;;  %v6551_v26 = vunpack.i.l.bf16 %v6550_v7  ;;  %v6566_v41 = vunpack.i.l.bf16 %v10094_v52  ;;  %v3713_v60 = vsel %vm3654_vm12, %v3648_v1, %v6531_v35  ;;  %v6595_v19 = vpop.permute.xlu0 %6594  ;;  %v11914_v35 = vld [vmem:[#allocation206_spill] sm:$0xff]  ;;  %v11916_v1 = vld [vmem:[#allocation151_spill] sm:$0xff] }
 0x3fa   : > { %v3714_v37 = vsel %vm3654_vm12, %v3649_v30, %v6532_v59  ;;  %v3679_v28 = vsel %vm3654_vm12, %v3614_v36, %v6576_v51  ;;  %5061 = vmatprep.mubr.msk.bf16.mxu1 %vm3852_vm14, %v3812_v29  ;;  %v6597_v57 = vunpack.i.h.bf16 %v6595_v19  ;;  %v6596_v44 = vunpack.i.l.bf16 %v6595_v19  ;;  %v11915_v30 = vld [vmem:[#allocation75_spill] sm:$0xff] }
 0x3fb   : > { %v3778_v56 = vsel %vm3719_vm13, %v3713_v60, %v6551_v26  ;;  %v3779_v49 = vsel %vm3719_vm13, %v3714_v37, %v6552_v54  ;;  %v3680_v10 = vsel %vm3654_vm12, %v3615_v27, %v6577_v4  ;;  %v6587_v45 = vunpack.i.h.bf16 %v6585_v23  ;;  %v11917_v4 = vld [vmem:[#allocation149_spill] sm:$0xff]  ;;  %v11919_v37 = vld [vmem:[#allocation54_spill] sm:$0xff] }
 0x3fc   : > { %v6586_v63 = vunpack.i.l.bf16 %v6585_v23  ;;  %v3813_v52 = vpack.c.bf16 %v3779_v49, %v3778_v56  ;;  %v10140_v48 = vpop.permute.xlu1 %6559  ;;  %v5846_v34 = vunpack.i.l.bf16 %v11894_v55  ;;  %v5877_v13 = vunpack.i.h.bf16 %v11907_v40  ;;  %v11913_v55 = vld [vmem:[#allocation95_spill] sm:$0xff]  ;;  %v11918_v26 = vld [vmem:[#allocation21_spill] sm:$0xff] }
 0x3fd   : > { %v3744_v46 = vsel %vm3719_vm13, %v3679_v28, %v6596_v44  ;;  %v3745_v38 = vsel %vm3719_vm13, %v3680_v10, %v6597_v57  ;;  %v5876_v0 = vunpack.i.l.bf16 %v11907_v40  ;;  %v3552_v53 = vsel %vm3524_vm10, %v11908_v5, %v6042_v22  ;;  %v6605_v11 = vpop.permute.xlu0 %6604  ;;  %v11920_v40 = vld [vmem:[#allocation10_spill] sm:$0xff] }
 0x3fe   : > { %v3551_v62 = vsel %vm3524_vm10, %v11909_v3, %v6041_v42  ;;  %v3796_v18 = vpack.c.bf16 %v3745_v38, %v3744_v46  ;;  %5062 = vmatmul.mubr.msk.bf16.gmra.mrb[28].mxu1 %vm3852_vm14, %v3813_v52  ;;  %v3617_v58 = vsel %vm3589_vm11, %v3552_v53, %v6567_v32  ;;  %v6607_v50 = vunpack.i.h.bf16 %v6605_v11  ;;  %v11910_v42 = vld [vmem:[#allocation126_spill] sm:$0xff] }
 0x3ff   : > { %v3616_v15 = vsel %vm3589_vm11, %v3551_v62, %v6566_v41  ;;  %v6606_v33 = vunpack.i.l.bf16 %v6605_v11  ;;  %v3682_v24 = vsel %vm3654_vm12, %v3617_v58, %v6587_v45  ;;  %v3327_v16 = vsel %vm3265_vm6, %v11910_v42, %v5847_v14 }
 0x400   : > { %v3681_v31 = vsel %vm3654_vm12, %v3616_v15, %v6586_v63  ;;  %5029 = vmatprep.mubr.msk.bf16.mxu0 %vm3852_vm14, %v3796_v18  ;;  %v10157_v22 = vpop.permute.xlu1 %6569  ;;  %v3747_v20 = vsel %vm3719_vm13, %v3682_v24, %v6607_v50  ;;  %v3326_v47 = vsel %vm3265_vm6, %v11911_v61, %v5846_v34  ;;  %v5927_v12 = vunpack.i.h.bf16 %v11912_v21 }
 0x401   : > { %v3746_v2 = vsel %vm3719_vm13, %v3681_v31, %v6606_v33  ;;  %v5926_v25 = vunpack.i.l.bf16 %v11912_v21  ;;  %v3390_v6 = vsel %vm258_vm0, %v3326_v47, %v5876_v0  ;;  %v3391_v8 = vsel %vm258_vm0, %v3327_v16, %v5877_v13 }
 0x402   : > { %v3797_v9 = vpack.c.bf16 %v3747_v20, %v3746_v2  ;;  %v5937_v59 = vunpack.i.h.bf16 %v11913_v55  ;;  %v5936_v14 = vunpack.i.l.bf16 %v11913_v55  ;;  %v5687_v51 = vunpack.i.h.bf16 %v11914_v35 }
 0x403   : > { %v5686_v23 = vunpack.i.l.bf16 %v11914_v35  ;;  %v5967_v39 = vunpack.i.h.bf16 %v11915_v30  ;;  %v5966_v43 = vunpack.i.l.bf16 %v11915_v30  ;;  %v3329_v36 = vsel %vm3265_vm6, %v11916_v1, %v5927_v12 }
 0x404   : > { %5030 = vmatmul.mubr.msk.bf16.gmra.mrb[36].mxu0 %vm3852_vm14, %v3797_v9  ;;  %v3328_v29 = vsel %vm3265_vm6, %v11917_v4, %v5926_v25  ;;  %v3456_v27 = vsel %vm3394_vm7, %v3391_v8, %v5687_v51  ;;  %v3393_v54 = vsel %vm258_vm0, %v3329_v36, %v5937_v59  ;;  %v6127_v41 = vunpack.i.h.bf16 %v11918_v26 }
 0x405   : > { %v6580_v17 = vpop.permute.xlu1 %6579  ;;  %v3455_v7 = vsel %vm3394_vm7, %v3390_v6, %v5686_v23  ;;  %v3392_v32 = vsel %vm258_vm0, %v3328_v29, %v5936_v14  ;;  %v6126_v60 = vunpack.i.l.bf16 %v11918_v26  ;;  %v5917_v28 = vunpack.i.h.bf16 %v11919_v37 }
 0x406   : > { %v5916_v19 = vunpack.i.l.bf16 %v11919_v37  ;;  %v6562_v56 = vunpack.i.h.bf16 %v10140_v48  ;;  %v6561_v49 = vunpack.i.l.bf16 %v10140_v48  ;;  %v3520_v44 = vsel %vm3459_vm9, %v3455_v7, %v5966_v43  ;;  %v11921_v48 = vld [vmem:[#allocation138_spill] sm:$0xff] }
 0x407   : > { %v3521_v10 = vsel %vm3459_vm9, %v3456_v27, %v5967_v39  ;;  %v3458_v63 = vsel %vm3394_vm7, %v3393_v54, %v5917_v28  ;;  %v6582_v52 = vunpack.i.h.bf16 %v6580_v17  ;;  %v6581_v34 = vunpack.i.l.bf16 %v6580_v17 }
 0x408   : > { %v3457_v45 = vsel %vm3394_vm7, %v3392_v32, %v5916_v19  ;;  %v5972_v13 = vunpack.i.h.bf16 %v11920_v40  ;;  %v5971_v46 = vunpack.i.l.bf16 %v11920_v40  ;;  %v3585_v38 = vsel %vm3524_vm10, %v3520_v44, %v6126_v60 }
 0x409   : > { %v6590_v57 = vpop.permute.xlu1 %6589  ;;  %v3586_v0 = vsel %vm3524_vm10, %v3521_v10, %v6127_v41  ;;  %v6132_v5 = vunpack.i.h.bf16 %v11921_v48  ;;  %v6131_v53 = vunpack.i.l.bf16 %v11921_v48  ;;  %v3650_v3 = vsel %vm3589_vm11, %v3585_v38, %v6561_v49 }
 0x40a   : > { %v3651_v62 = vsel %vm3589_vm11, %v3586_v0, %v6562_v56  ;;  %v6572_v11 = vunpack.i.h.bf16 %v10157_v22  ;;  %v6571_v58 = vunpack.i.l.bf16 %v10157_v22  ;;  %v3715_v33 = vsel %vm3654_vm12, %v3650_v3, %v6581_v34 }
 0x40b   : > { %v3716_v31 = vsel %vm3654_vm12, %v3651_v62, %v6582_v52  ;;  %v6592_v24 = vunpack.i.h.bf16 %v6590_v57  ;;  %v6591_v42 = vunpack.i.l.bf16 %v6590_v57  ;;  %v3522_v16 = vsel %vm3459_vm9, %v3457_v45, %v5971_v46 }
 0x40c   : > { %v3523_v2 = vsel %vm3459_vm9, %v3458_v63, %v5972_v13  ;;  %v3587_v47 = vsel %vm3524_vm10, %v3522_v16, %v6131_v53 }
 0x40d   : > { %v6600_v18 = vpop.permute.xlu1 %6599  ;;  %v3588_v22 = vsel %vm3524_vm10, %v3523_v2, %v6132_v5  ;;  %v3652_v9 = vsel %vm3589_vm11, %v3587_v47, %v6571_v58 }
 0x40e   : > { %v6602_v15 = vunpack.i.h.bf16 %v6600_v18  ;;  %v6601_v50 = vunpack.i.l.bf16 %v6600_v18  ;;  %v3653_v25 = vsel %vm3589_vm11, %v3588_v22, %v6572_v11  ;;  %v3717_v55 = vsel %vm3654_vm12, %v3652_v9, %v6591_v42 }
 0x40f   : > { %v3718_v59 = vsel %vm3654_vm12, %v3653_v25, %v6592_v24 }
 0x410   : > { %v3780_v20 = vsel %vm3719_vm13, %v3715_v33, %v6601_v50  ;;  %v3781_v61 = vsel %vm3719_vm13, %v3716_v31, %v6602_v15 }
 0x411   : > { %v3814_v21 = vpack.c.bf16 %v3781_v61, %v3780_v20  ;;  %v6610_v12 = vpop.permute.xlu1 %6609 }
 0x412   : > { %v6612_v6 = vunpack.i.h.bf16 %v6610_v12  ;;  %v6611_v8 = vunpack.i.l.bf16 %v6610_v12 }
 0x413   : > { %5065 = vmatprep.mubr.msk.bf16.mxu1 %vm3852_vm14, %v3814_v21 }
 0x414   : > { %v3782_v14 = vsel %vm3719_vm13, %v3717_v55, %v6611_v8  ;;  %v3783_v35 = vsel %vm3719_vm13, %v3718_v59, %v6612_v6 }
 0x415   : > { %v3815_v51 = vpack.c.bf16 %v3783_v35, %v3782_v14 }
 0x417   : > { %5066 = vmatmul.mubr.msk.bf16.gmra.mrb[32].mxu1 %vm3852_vm14, %v3815_v51 }
 0x447   : > { %v10222_v23 = vpop.f32.mrb[0].mxu1 }
 0x448   : > { %11922 = vst [vmem:[#allocation178_spill] sm:$0xff] %v10222_v23  ;;  %v10224_v17 = vpop.f32.mrb[1].mxu1 }
 0x449   : > { %11923 = vst [vmem:[#allocation146_spill] sm:$0xff] %v10224_v17  ;;  %v10226_v30 = vpop.f32.mrb[2].mxu1 }
 0x44a   : > { %11924 = vst [vmem:[#allocation180_spill] sm:$0xff] %v10226_v30  ;;  %v10228_v39 = vpop.f32.mrb[3].mxu1 }
 0x44b   : > { %11925 = vst [vmem:[#allocation42_spill] sm:$0xff] %v10228_v39 }
 0x454   : > { %v10230_v43 = vpop.f32.mrb[4].mxu1 }
 0x455   : > { %v10232_v1 = vpop.f32.mrb[5].mxu1 }
 0x456   : > { %v10234_v36 = vpop.f32.mrb[6].mxu1 }
 0x457   : > { %v10236_v4 = vpop.f32.mrb[7].mxu1 }
 0x45c   : > { %v10238_v29 = vpop.f32.mrb[8].mxu1 }
 0x45d   : > { %v10240_v7 = vpop.f32.mrb[9].mxu1 }
 0x45e   : > { %v10242_v27 = vpop.f32.mrb[10].mxu1 }
 0x45f   : > { %v10244_v32 = vpop.f32.mrb[11].mxu1 }
 0x468   : > { %v10246_v54 = vpop.f32.mrb[12].mxu0 }
 0x469   : > { %11926 = vst [vmem:[#allocation64_spill] sm:$0xff] %v10246_v54  ;;  %v10248_v26 = vpop.f32.mrb[13].mxu0 }
 0x46a   : > { %11927 = vst [vmem:[#allocation181_spill] sm:$0xff] %v10248_v26  ;;  %v10250_v41 = vpop.f32.mrb[14].mxu0 }
 0x46b   : > { %11928 = vst [vmem:[#allocation76_spill] sm:$0xff] %v10250_v41  ;;  %v10252_v60 = vpop.f32.mrb[15].mxu0 }
 0x46c   : > { %11929 = vst [vmem:[#allocation78_spill] sm:$0xff] %v10252_v60 }
 0x471   : > { %v10254_v37 = vpop.f32.mrb[12].mxu1 }
 0x472   : > { %v10256_v28 = vpop.f32.mrb[13].mxu1 }
 0x473   : > { %v10258_v19 = vpop.f32.mrb[14].mxu1 }
 0x474   : > { %v10260_v56 = vpop.f32.mrb[15].mxu1 }
 0x47d   : > { %v10262_v49 = vpop.f32.mrb[16].mxu0 }
 0x47e   : > { %v10264_v57 = vpop.f32.mrb[17].mxu0 }
 0x47f   : > { %11930 = vst [vmem:[#allocation155_spill] sm:$0xff] %v10264_v57  ;;  %v10266_v44 = vpop.f32.mrb[18].mxu0 }
 0x480   : > { %v10268_v10 = vpop.f32.mrb[19].mxu0 }
 0x486   : > { %v10270_v45 = vpop.f32.mrb[16].mxu1 }
 0x487   : > { %11931 = vst [vmem:[#allocation47_spill] sm:$0xff] %v10270_v45  ;;  %v10272_v63 = vpop.f32.mrb[17].mxu1 }
 0x488   : > { %v10274_v52 = vpop.f32.mrb[18].mxu1 }
 0x489   : > { %11932 = vst [vmem:[#allocation48_spill] sm:$0xff] %v10274_v52  ;;  %v10276_v34 = vpop.f32.mrb[19].mxu1 }
 0x48a   : > { %11933 = vst [vmem:[#allocation182_spill] sm:$0xff] %v10276_v34 }
 0x491   : > { %v10278_v40 = vpop.f32.mrb[20].mxu0 }
 0x492   : > { %v10280_v13 = vpop.f32.mrb[21].mxu0 }
 0x493   : > { %v10282_v46 = vpop.f32.mrb[22].mxu0 }
 0x494   : > { %v10284_v38 = vpop.f32.mrb[23].mxu0 }
 0x49a   : > { %v10286_v0 = vpop.f32.mrb[20].mxu1 }
 0x49b   : > { %11934 = vst [vmem:[#allocation81_spill] sm:$0xff] %v10286_v0  ;;  %v10288_v48 = vpop.f32.mrb[21].mxu1 }
 0x49c   : > { %v10290_v5 = vpop.f32.mrb[22].mxu1 }
 0x49d   : > { %11935 = vst [vmem:[#allocation83_spill] sm:$0xff] %v10290_v5  ;;  %v10292_v53 = vpop.f32.mrb[23].mxu1 }
 0x4a5   : > { %v10294_v3 = vpop.f32.mrb[24].mxu0 }
 0x4a6   : > { %11936 = vst [vmem:[#allocation184_spill] sm:$0xff] %v10294_v3  ;;  %v10296_v62 = vpop.f32.mrb[25].mxu0 }
 0x4a7   : > { %v10298_v18 = vpop.f32.mrb[26].mxu0 }
 0x4a8   : > { %11937 = vst [vmem:[#allocation183_spill] sm:$0xff] %v10298_v18  ;;  %v10300_v11 = vpop.f32.mrb[27].mxu0 }
 0x4a9   : > { %11938 = vst [vmem:[#allocation160_spill] sm:$0xff] %v10300_v11 }
 0x4ae   : > { %v10302_v58 = vpop.f32.mrb[24].mxu1 }
 0x4af   : > { %11939 = vst [vmem:[#allocation188_spill] sm:$0xff] %v10302_v58  ;;  %v10304_v15 = vpop.f32.mrb[25].mxu1 }
 0x4b0   : > { %11940 = vst [vmem:[#allocation51_spill] sm:$0xff] %v10304_v15  ;;  %v10306_v50 = vpop.f32.mrb[26].mxu1 }
 0x4b1   : > { %11941 = vst [vmem:[#allocation52_spill] sm:$0xff] %v10306_v50  ;;  %v10308_v33 = vpop.f32.mrb[27].mxu1 }
 0x4b2   : > { %11942 = vst [vmem:[#allocation56_spill] sm:$0xff] %v10308_v33 }
 0x4b9   : > { %v10310_v31 = vpop.f32.mrb[28].mxu0 }
 0x4ba   : > { %v10312_v24 = vpop.f32.mrb[29].mxu0 }
 0x4bb   : > { %v10314_v42 = vpop.f32.mrb[30].mxu0 }
 0x4bc   : > { %v10316_v16 = vpop.f32.mrb[31].mxu0 }
 0x4c1   : > { %v10318_v2 = vpop.f32.mrb[32].mxu0 }
 0x4c2   : > { %v10320_v20 = vpop.f32.mrb[33].mxu0 }
 0x4c3   : > { %v10322_v61 = vpop.f32.mrb[34].mxu0 }
 0x4c4   : > { %v10324_v47 = vpop.f32.mrb[35].mxu0 }
 0x4d1   : > { %v10326_v22 = vpop.f32.mrb[28].mxu1 }
 0x4d2   : > { %11943 = vst [vmem:[#allocation190_spill] sm:$0xff] %v10326_v22  ;;  %v10328_v21 = vpop.f32.mrb[29].mxu1 }
 0x4d3   : > { %11944 = vst [vmem:[#allocation86_spill] sm:$0xff] %v10328_v21  ;;  %v10330_v12 = vpop.f32.mrb[30].mxu1 }
 0x4d4   : > { %11945 = vst [vmem:[#allocation87_spill] sm:$0xff] %v10330_v12  ;;  %v10332_v25 = vpop.f32.mrb[31].mxu1  ;;  %v6740_v12 = vmov (!%p4917_p11), 0.0  }
 0x4d5   : > { %11946 = vst [vmem:[#allocation29_spill] sm:$0xff] %v10332_v25  ;;  %4246 = vst.msk [vmem:[#allocation2] sm:$0x3] (!%p4917_p11), %vm4245_vm15, %v6740_v12 }
 0x4d7   : > { %v10334_v9 = vpop.f32.mrb[36].mxu0 }
 0x4d8   : > { %v10336_v6 = vpop.f32.mrb[37].mxu0 }
 0x4d9   : > { %v10338_v8 = vpop.f32.mrb[38].mxu0 }
 0x4da   : > { %v10340_v55 = vpop.f32.mrb[39].mxu0 }
 0x4e8   : > { %4244 = sbr.rel (%p4917_p11) target bundleno = 1263 (0x4ef), region = 36 }
 0x4ea   : > { %v10342_v59 = vpop.f32.mrb[32].mxu1 }
 0x4eb   : > { %11947 = vst [vmem:[#allocation84_spill] sm:$0xff] %v10342_v59  ;;  %v10344_v14 = vpop.f32.mrb[33].mxu1 }
 0x4ec   : > { %11948 = vst [vmem:[#allocation101_spill] sm:$0xff] %v10344_v14  ;;  %v10346_v35 = vpop.f32.mrb[34].mxu1 }
 0x4ed   : > { %11949 = vst [vmem:[#allocation119_spill] sm:$0xff] %v10346_v35  ;;  %v10348_v51 = vpop.f32.mrb[35].mxu1 }
 0x4ee   : > { %11950 = vst [vmem:[#allocation59_spill] sm:$0xff] %v10348_v51 }
 0x4ef PF: > { %v4247_v22 = vsel %vm3265_vm6, %v10248_v26, 0.0  ;;  %v4248_v25 = vsel %vm3265_vm6, %v10252_v60, 0.0  ;;  %v4250_v59 = vsel %vm3265_vm6, %v10246_v54, 0.0  ;;  %v4252_v35 = vsel %vm3265_vm6, %v10250_v41, 0.0  ;;  %p4918_p12 = scmp.ne.s32.totalorder %s6714_s15, 1 }
 0x4f0   : > { %v4249_v14 = vadd.f32 %v4248_v25, %v4247_v22  ;;  %v4254_v21 = vsel %vm3265_vm6, %v10264_v57, 0.0  ;;  %v4256_v12 = vsel %vm3265_vm6, %v10268_v10, 0.0  ;;  %v4258_v33 = vsel %vm3265_vm6, %v10262_v49, 0.0 }
 0x4f1   : > { %v4260_v5 = vsel %vm3265_vm6, %v10266_v44, 0.0  ;;  %v4262_v25 = vsel %vm3265_vm6, %v10280_v13, 0.0  ;;  %vm4580_vm0 = vcmask 58368  }
 0x4f2   : > { %v4251_v51 = vadd.f32 %v4250_v59, %v4249_v14  ;;  %v4264_v14 = vsel %vm3265_vm6, %v10284_v38, 0.0 }
 0x4f4   : > { %v4253_v50 = vadd.f32 %v4252_v35, %v4251_v51  ;;  %v4266_v51 = vsel %vm3265_vm6, %v10278_v40, 0.0 }
 0x4f6   : > { %v4255_v58 = vadd.f32 %v4254_v21, %v4253_v50  ;;  %v4268_v21 = vsel %vm3265_vm6, %v10282_v46, 0.0 }
 0x4f8   : > { %v4257_v15 = vadd.f32 %v4256_v12, %v4255_v58  ;;  %v4270_v12 = vsel %vm3265_vm6, %v10296_v62, 0.0 }
 0x4fa   : > { %v4259_v22 = vadd.f32 %v4258_v33, %v4257_v15  ;;  %v4272_v33 = vsel %vm3265_vm6, %v10300_v11, 0.0 }
 0x4fc   : > { %v4261_v59 = vadd.f32 %v4260_v5, %v4259_v22  ;;  %v4274_v22 = vsel %vm3265_vm6, %v10294_v3, 0.0 }
 0x4fe   : > { %v4263_v35 = vadd.f32 %v4262_v25, %v4261_v59  ;;  %v4276_v59 = vsel %vm3265_vm6, %v10298_v18, 0.0 }
 0x500   : > { %v4265_v50 = vadd.f32 %v4264_v14, %v4263_v35  ;;  %v4278_v35 = vsel %vm3265_vm6, %v10312_v24, 0.0 }
 0x502   : > { %v4267_v58 = vadd.f32 %v4266_v51, %v4265_v50  ;;  %v4280_v50 = vsel %vm3265_vm6, %v10316_v16, 0.0 }
 0x504   : > { %v4269_v15 = vadd.f32 %v4268_v21, %v4267_v58  ;;  %v4282_v58 = vsel %vm3265_vm6, %v10310_v31, 0.0 }
 0x506   : > { %v4271_v5 = vadd.f32 %v4270_v12, %v4269_v15  ;;  %v4380_v12 = vmul.f32 %v10248_v26, %v10248_v26  ;;  %v4381_v15 = vmul.f32 %v10252_v60, %v10252_v60  ;;  %v4288_v26 = vsel %vm3265_vm6, %v10324_v47, 0.0 }
 0x508   : > { %v4273_v25 = vadd.f32 %v4272_v33, %v4271_v5  ;;  %v4382_v5 = vmul.f32 %v10246_v54, %v10246_v54 }
 0x50a   : > { %v4275_v14 = vadd.f32 %v4274_v22, %v4273_v25  ;;  %v4284_v22 = vsel %vm3265_vm6, %v10314_v42, 0.0  ;;  %v4383_v25 = vmul.f32 %v10250_v41, %v10250_v41  ;;  %v4447_v54 = vsel %vm3265_vm6, %v4382_v5, 0.0 }
 0x50c   : > { %v4277_v51 = vadd.f32 %v4276_v59, %v4275_v14  ;;  %v4286_v14 = vsel %vm3265_vm6, %v10320_v20, 0.0 }
 0x50e   : > { %v4279_v21 = vadd.f32 %v4278_v35, %v4277_v51  ;;  %v4384_v35 = vmul.f32 %v10264_v57, %v10264_v57  ;;  %v4444_v51 = vsel %vm3265_vm6, %v4380_v12, 0.0  ;;  %v4290_v57 = vsel %vm3265_vm6, %v10318_v2, 0.0 }
 0x50f   : > { %v4386_v12 = vmul.f32 %v10262_v49, %v10262_v49 }
 0x510   : > { %v4281_v33 = vadd.f32 %v4280_v50, %v4279_v21  ;;  %v4445_v50 = vsel %vm3265_vm6, %v4381_v15, 0.0  ;;  %v4451_v15 = vsel %vm3265_vm6, %v4384_v35, 0.0 }
 0x511   : > { %v4446_v60 = vadd.f32 %v4445_v50, %v4444_v51  ;;  %v4387_v51 = vmul.f32 %v10266_v44, %v10266_v44  ;;  %v4388_v50 = vmul.f32 %v10280_v13, %v10280_v13  ;;  %v4455_v35 = vsel %vm3265_vm6, %v4386_v12, 0.0 }
 0x512   : > { %v4283_v59 = vadd.f32 %v4282_v58, %v4281_v33  ;;  %v4385_v58 = vmul.f32 %v10268_v10, %v10268_v10  ;;  %v4449_v33 = vsel %vm3265_vm6, %v4383_v25, 0.0 }
 0x513   : > { %v4448_v0 = vadd.f32 %v4447_v54, %v4446_v60  ;;  %v4294_v60 = vsel %vm3265_vm6, %v10336_v6, 0.0  ;;  %v4459_v12 = vsel %vm3265_vm6, %v4388_v50, 0.0 }
 0x514   : > { %v4285_v21 = vadd.f32 %v4284_v22, %v4283_v59  ;;  %v4292_v59 = vsel %vm3265_vm6, %v10322_v61, 0.0  ;;  %v4453_v25 = vsel %vm3265_vm6, %v4385_v58, 0.0  ;;  %v4457_v58 = vsel %vm3265_vm6, %v4387_v51, 0.0 }
 0x515   : > { %v4450_v5 = vadd.f32 %v4449_v33, %v4448_v0  ;;  %v4296_v0 = vsel %vm3265_vm6, %v10340_v55, 0.0 }
 0x516   : > { %v4287_v41 = vadd.f32 %v4286_v14, %v4285_v21  ;;  %v4389_v21 = vmul.f32 %v10284_v38, %v10284_v38 }
 0x517   : > { %v4452_v54 = vadd.f32 %v4451_v15, %v4450_v5  ;;  %v4298_v15 = vsel %vm3265_vm6, %v10334_v9, 0.0 }
 0x518   : > { %v4289_v22 = vadd.f32 %v4288_v26, %v4287_v41  ;;  %v4461_v51 = vsel %vm3265_vm6, %v4389_v21, 0.0 }
 0x519   : > { %v4454_v41 = vadd.f32 %v4453_v25, %v4452_v54  ;;  %v4300_v25 = vsel %vm3265_vm6, %v10338_v8, 0.0 }
 0x51a   : > { %v4291_v14 = vadd.f32 %v4290_v57, %v4289_v22  ;;  %v4390_v22 = vmul.f32 %v10278_v40, %v10278_v40 }
 0x51b   : > { %v4456_v33 = vadd.f32 %v4455_v35, %v4454_v41  ;;  %v4302_v35 = vsel %vm3265_vm6, %v10224_v17, 0.0 }
 0x51c   : > { %v4293_v26 = vadd.f32 %v4292_v59, %v4291_v14  ;;  %v4391_v14 = vmul.f32 %v10282_v46, %v10282_v46  ;;  %v4463_v50 = vsel %vm3265_vm6, %v4390_v22, 0.0 }
 0x51d   : > { %v4458_v59 = vadd.f32 %v4457_v58, %v4456_v33  ;;  %v4304_v58 = vsel %vm3265_vm6, %v10228_v39, 0.0 }
 0x51e   : > { %v4295_v57 = vadd.f32 %v4294_v60, %v4293_v26  ;;  %v4392_v26 = vmul.f32 %v10296_v62, %v10296_v62  ;;  %v4465_v21 = vsel %vm3265_vm6, %v4391_v14, 0.0 }
 0x51f   : > { %v4460_v60 = vadd.f32 %v4459_v12, %v4458_v59  ;;  %v4306_v12 = vsel %vm3265_vm6, %v10222_v23, 0.0 }
 0x520   : > { %v4297_v5 = vadd.f32 %v4296_v0, %v4295_v57  ;;  %v4393_v57 = vmul.f32 %v10300_v11, %v10300_v11  ;;  %v4467_v22 = vsel %vm3265_vm6, %v4392_v26, 0.0  ;;  %v11957_v11 = vld [vmem:[#allocation86_spill] sm:$0xff] }
 0x521   : > { %v4462_v0 = vadd.f32 %v4461_v51, %v4460_v60  ;;  %v4308_v51 = vsel %vm3265_vm6, %v10226_v30, 0.0 }
 0x522   : > { %v4299_v54 = vadd.f32 %v4298_v15, %v4297_v5  ;;  %v4394_v5 = vmul.f32 %v10294_v3, %v10294_v3  ;;  %v4469_v14 = vsel %vm3265_vm6, %v4393_v57, 0.0 }
 0x523   : > { %v4464_v15 = vadd.f32 %v4463_v50, %v4462_v0  ;;  %v4310_v50 = vsel %vm3265_vm6, %v10232_v1, 0.0 }
 0x524   : > { %v4301_v41 = vadd.f32 %v4300_v25, %v4299_v54  ;;  %v4395_v54 = vmul.f32 %v10298_v18, %v10298_v18  ;;  %v4471_v26 = vsel %vm3265_vm6, %v4394_v5, 0.0  ;;  %v4416_v18 = vmul.f32 %v10240_v7, %v10240_v7 }
 0x525   : > { %v4466_v25 = vadd.f32 %v4465_v21, %v4464_v15  ;;  %v4312_v21 = vsel %vm3265_vm6, %v10236_v4, 0.0 }
 0x526   : > { %v4303_v33 = vadd.f32 %v4302_v35, %v4301_v41  ;;  %v4396_v41 = vmul.f32 %v10312_v24, %v10312_v24  ;;  %v4473_v57 = vsel %vm3265_vm6, %v4395_v54, 0.0 }
 0x527   : > { %v4468_v35 = vadd.f32 %v4467_v22, %v4466_v25  ;;  %v4314_v22 = vsel %vm3265_vm6, %v10230_v43, 0.0 }
 0x528   : > { %v4305_v59 = vadd.f32 %v4304_v58, %v4303_v33  ;;  %v4397_v33 = vmul.f32 %v10316_v16, %v10316_v16  ;;  %v4475_v5 = vsel %vm3265_vm6, %v4396_v41, 0.0 }
 0x529   : > { %v4470_v58 = vadd.f32 %v4469_v14, %v4468_v35  ;;  %v4316_v14 = vsel %vm3265_vm6, %v10234_v36, 0.0 }
 0x52a   : > { %v4307_v60 = vadd.f32 %v4306_v12, %v4305_v59  ;;  %v4398_v59 = vmul.f32 %v10310_v31, %v10310_v31  ;;  %v4477_v54 = vsel %vm3265_vm6, %v4397_v33, 0.0 }
 0x52b   : > { %v4472_v12 = vadd.f32 %v4471_v26, %v4470_v58  ;;  %v4318_v26 = vsel %vm3265_vm6, %v10240_v7, 0.0 }
 0x52c   : > { %v4309_v0 = vadd.f32 %v4308_v51, %v4307_v60  ;;  %v4399_v60 = vmul.f32 %v10314_v42, %v10314_v42  ;;  %v4479_v41 = vsel %vm3265_vm6, %v4398_v59, 0.0 }
 0x52d   : > { %v4474_v51 = vadd.f32 %v4473_v57, %v4472_v12  ;;  %v4320_v57 = vsel %vm3265_vm6, %v10244_v32, 0.0 }
 0x52e   : > { %v4311_v15 = vadd.f32 %v4310_v50, %v4309_v0  ;;  %v4400_v0 = vmul.f32 %v10320_v20, %v10320_v20  ;;  %v4481_v33 = vsel %vm3265_vm6, %v4399_v60, 0.0 }
 0x52f   : > { %v4476_v50 = vadd.f32 %v4475_v5, %v4474_v51  ;;  %v4322_v5 = vsel %vm3265_vm6, %v10238_v29, 0.0 }
 0x530   : > { %v4313_v25 = vadd.f32 %v4312_v21, %v4311_v15  ;;  %v4401_v15 = vmul.f32 %v10324_v47, %v10324_v47  ;;  %v4483_v59 = vsel %vm3265_vm6, %v4400_v0, 0.0 }
 0x531   : > { %v4478_v21 = vadd.f32 %v4477_v54, %v4476_v50  ;;  %v4324_v54 = vsel %vm3265_vm6, %v10242_v27, 0.0 }
 0x532   : > { %v4315_v35 = vadd.f32 %v4314_v22, %v4313_v25  ;;  %v4402_v25 = vmul.f32 %v10318_v2, %v10318_v2  ;;  %v4485_v60 = vsel %vm3265_vm6, %v4401_v15, 0.0 }
 0x533   : > { %v4480_v22 = vadd.f32 %v4479_v41, %v4478_v21  ;;  %v4326_v41 = vsel %vm3265_vm6, %v10256_v28, 0.0 }
 0x534   : > { %v4317_v58 = vadd.f32 %v4316_v14, %v4315_v35  ;;  %v4403_v35 = vmul.f32 %v10322_v61, %v10322_v61  ;;  %v4487_v0 = vsel %vm3265_vm6, %v4402_v25, 0.0 }
 0x535   : > { %v4482_v14 = vadd.f32 %v4481_v33, %v4480_v22  ;;  %v4328_v33 = vsel %vm3265_vm6, %v10260_v56, 0.0 }
 0x536   : > { %v4319_v12 = vadd.f32 %v4318_v26, %v4317_v58  ;;  %v4404_v58 = vmul.f32 %v10336_v6, %v10336_v6  ;;  %v4489_v15 = vsel %vm3265_vm6, %v4403_v35, 0.0 }
 0x537   : > { %v4484_v26 = vadd.f32 %v4483_v59, %v4482_v14  ;;  %v4330_v59 = vsel %vm3265_vm6, %v10254_v37, 0.0 }
 0x538   : > { %v4321_v51 = vadd.f32 %v4320_v57, %v4319_v12  ;;  %v4405_v12 = vmul.f32 %v10340_v55, %v10340_v55  ;;  %v4491_v25 = vsel %vm3265_vm6, %v4404_v58, 0.0 }
 0x539   : > { %v4486_v57 = vadd.f32 %v4485_v60, %v4484_v26  ;;  %v4332_v60 = vsel %vm3265_vm6, %v10258_v19, 0.0 }
 0x53a   : > { %v4323_v50 = vadd.f32 %v4322_v5, %v4321_v51  ;;  %v4406_v51 = vmul.f32 %v10334_v9, %v10334_v9  ;;  %v4493_v35 = vsel %vm3265_vm6, %v4405_v12, 0.0 }
 0x53b   : > { %v4488_v5 = vadd.f32 %v4487_v0, %v4486_v57  ;;  %v4334_v0 = vsel %vm3265_vm6, %v10272_v63, 0.0 }
 0x53c   : > { %v4325_v21 = vadd.f32 %v4324_v54, %v4323_v50  ;;  %v4407_v50 = vmul.f32 %v10338_v8, %v10338_v8  ;;  %v4495_v58 = vsel %vm3265_vm6, %v4406_v51, 0.0 }
 0x53d   : > { %v4490_v54 = vadd.f32 %v4489_v15, %v4488_v5  ;;  %v4336_v15 = vsel %vm3265_vm6, %v10276_v34, 0.0 }
 0x53e   : > { %v4327_v22 = vadd.f32 %v4326_v41, %v4325_v21  ;;  %v4408_v21 = vmul.f32 %v10224_v17, %v10224_v17  ;;  %v4497_v12 = vsel %vm3265_vm6, %v4407_v50, 0.0  ;;  %v11958_v17 = vld [vmem:[#allocation29_spill] sm:$0xff] }
 0x53f   : > { %v4492_v41 = vadd.f32 %v4491_v25, %v4490_v54  ;;  %v4338_v25 = vsel %vm3265_vm6, %v10270_v45, 0.0 }
 0x540   : > { %v4329_v14 = vadd.f32 %v4328_v33, %v4327_v22  ;;  %v4409_v22 = vmul.f32 %v10228_v39, %v10228_v39  ;;  %v4499_v51 = vsel %vm3265_vm6, %v4408_v21, 0.0  ;;  %v11956_v39 = vld [vmem:[#allocation52_spill] sm:$0xff] }
 0x541   : > { %v4494_v33 = vadd.f32 %v4493_v35, %v4492_v41  ;;  %v4340_v35 = vsel %vm3265_vm6, %v10274_v52, 0.0 }
 0x542   : > { %v4331_v26 = vadd.f32 %v4330_v59, %v4329_v14  ;;  %v4410_v14 = vmul.f32 %v10222_v23, %v10222_v23  ;;  %v4501_v50 = vsel %vm3265_vm6, %v4409_v22, 0.0 }
 0x543   : > { %v4496_v59 = vadd.f32 %v4495_v58, %v4494_v33  ;;  %v4342_v58 = vsel %vm3265_vm6, %v10288_v48, 0.0 }
 0x544   : > { %v4333_v57 = vadd.f32 %v4332_v60, %v4331_v26  ;;  %v4411_v26 = vmul.f32 %v10226_v30, %v10226_v30  ;;  %v4503_v21 = vsel %vm3265_vm6, %v4410_v14, 0.0  ;;  %v4415_v30 = vmul.f32 %v10234_v36, %v10234_v36 }
 0x545   : > { %v4498_v60 = vadd.f32 %v4497_v12, %v4496_v59  ;;  %v4344_v12 = vsel %vm3265_vm6, %v10292_v53, 0.0 }
 0x546   : > { %v4335_v5 = vadd.f32 %v4334_v0, %v4333_v57  ;;  %v4412_v57 = vmul.f32 %v10232_v1, %v10232_v1  ;;  %v4505_v22 = vsel %vm3265_vm6, %v4411_v26, 0.0 }
 0x547   : > { %v4500_v0 = vadd.f32 %v4499_v51, %v4498_v60  ;;  %v11951_v51 = vld [vmem:[#allocation81_spill] sm:$0xff]  ;;  %v4414_v60 = vmul.f32 %v10230_v43, %v10230_v43 }
 0x548   : > { %v4337_v54 = vadd.f32 %v4336_v15, %v4335_v5  ;;  %v4413_v5 = vmul.f32 %v10236_v4, %v10236_v4  ;;  %v4507_v14 = vsel %vm3265_vm6, %v4412_v57, 0.0 }
 0x549   : > { %v4502_v15 = vadd.f32 %v4501_v50, %v4500_v0  ;;  %v4511_v57 = vsel %vm3265_vm6, %v4414_v60, 0.0  ;;  %v4419_v60 = vmul.f32 %v10242_v27, %v10242_v27 }
 0x54a   : > { %v4339_v41 = vadd.f32 %v4338_v25, %v4337_v54  ;;  %v4346_v54 = vsel %vm3265_vm6, %v11951_v51, 0.0  ;;  %v4509_v26 = vsel %vm3265_vm6, %v4413_v5, 0.0  ;;  %v11954_v5 = vld [vmem:[#allocation56_spill] sm:$0xff] }
 0x54b   : > { %v4504_v25 = vadd.f32 %v4503_v21, %v4502_v15 }
 0x54c   : > { %v4341_v33 = vadd.f32 %v4340_v35, %v4339_v41  ;;  %v11952_v41 = vld [vmem:[#allocation83_spill] sm:$0xff] }
 0x54d   : > { %v4506_v50 = vadd.f32 %v4505_v22, %v4504_v25  ;;  %v4348_v0 = vsel %vm3265_vm6, %v11952_v41, 0.0  ;;  %v4513_v25 = vsel %vm3265_vm6, %v4415_v30, 0.0 }
 0x54e   : > { %v4343_v59 = vadd.f32 %v4342_v58, %v4341_v33  ;;  %v11953_v33 = vld [vmem:[#allocation51_spill] sm:$0xff] }
 0x54f   : > { %v4508_v21 = vadd.f32 %v4507_v14, %v4506_v50  ;;  %v4350_v15 = vsel %vm3265_vm6, %v11953_v33, 0.0  ;;  %v4418_v14 = vmul.f32 %v10238_v29, %v10238_v29 }
 0x550   : > { %v4345_v35 = vadd.f32 %v4344_v12, %v4343_v59  ;;  %v4417_v59 = vmul.f32 %v10244_v32, %v10244_v32 }
 0x551   : > { %v4510_v22 = vadd.f32 %v4509_v26, %v4508_v21  ;;  %v11955_v21 = vld [vmem:[#allocation188_spill] sm:$0xff] }
 0x552   : > { %v4347_v58 = vadd.f32 %v4346_v54, %v4345_v35  ;;  %v4352_v54 = vsel %vm3265_vm6, %v11954_v5, 0.0  ;;  %v4515_v35 = vsel %vm3265_vm6, %v4416_v18, 0.0  ;;  %v4354_v30 = vsel %vm3265_vm6, %v11955_v21, 0.0 }
 0x553   : > { %v4512_v3 = vadd.f32 %v4511_v57, %v4510_v22  ;;  %v4519_v57 = vsel %vm3265_vm6, %v4418_v14, 0.0  ;;  %v4421_v18 = vmul.f32 %v10260_v56, %v10260_v56  ;;  %v4423_v14 = vmul.f32 %v10258_v19, %v10258_v19 }
 0x554   : > { %v4349_v12 = vadd.f32 %v4348_v0, %v4347_v58  ;;  %v4517_v0 = vsel %vm3265_vm6, %v4417_v59, 0.0  ;;  %v4422_v59 = vmul.f32 %v10254_v37, %v10254_v37 }
 0x555   : > { %v4514_v50 = vadd.f32 %v4513_v25, %v4512_v3  ;;  %v4521_v3 = vsel %vm3265_vm6, %v4419_v60, 0.0  ;;  %v4358_v60 = vsel %vm3265_vm6, %v11957_v11, 0.0 }
 0x556   : > { %v4351_v23 = vadd.f32 %v4350_v15, %v4349_v12  ;;  %v4420_v15 = vmul.f32 %v10256_v28, %v10256_v28 }
 0x557   : > { %v4516_v58 = vadd.f32 %v4515_v35, %v4514_v50  ;;  %v4525_v50 = vsel %vm3265_vm6, %v4421_v18, 0.0  ;;  %v4360_v18 = vsel %vm3265_vm6, %v11958_v17, 0.0 }
 0x558   : > { %v4353_v26 = vadd.f32 %v4352_v54, %v4351_v23  ;;  %v4356_v23 = vsel %vm3265_vm6, %v11956_v39, 0.0  ;;  %v4523_v54 = vsel %vm3265_vm6, %v4420_v15, 0.0  ;;  %v4425_v15 = vmul.f32 %v10276_v34, %v10276_v34  ;;  %v11959_v34 = vld [vmem:[#allocation190_spill] sm:$0xff] }
 0x559   : > { %v4518_v12 = vadd.f32 %v4517_v0, %v4516_v58 }
 0x55a   : > { %v4355_v22 = vadd.f32 %v4354_v30, %v4353_v26  ;;  %v4424_v26 = vmul.f32 %v10272_v63, %v10272_v63  ;;  %v4527_v30 = vsel %vm3265_vm6, %v4422_v59, 0.0  ;;  %v4427_v59 = vmul.f32 %v10274_v52, %v10274_v52  ;;  %v11960_v52 = vld [vmem:[#allocation87_spill] sm:$0xff] }
 0x55b   : > { %v4520_v25 = vadd.f32 %v4519_v57, %v4518_v12  ;;  %v4529_v12 = vsel %vm3265_vm6, %v4423_v14, 0.0  ;;  %v4362_v14 = vsel %vm3265_vm6, %v11959_v34, 0.0 }
 0x55c   : > { %v4357_v0 = vadd.f32 %v4356_v23, %v4355_v22  ;;  %v4426_v22 = vmul.f32 %v10270_v45, %v10270_v45  ;;  %v4531_v23 = vsel %vm3265_vm6, %v4424_v26, 0.0  ;;  %v4429_v26 = vmul.f32 %v10292_v53, %v10292_v53  ;;  %v11961_v45 = vld [vmem:[#allocation101_spill] sm:$0xff] }
 0x55d   : > { %v4522_v35 = vadd.f32 %v4521_v3, %v4520_v25 }
 0x55e   : > { %v4359_v3 = vadd.f32 %v4358_v60, %v4357_v0  ;;  %v4428_v0 = vmul.f32 %v10288_v48, %v10288_v48  ;;  %v4535_v60 = vsel %vm3265_vm6, %v4426_v22, 0.0  ;;  %v4431_v22 = vmul.f32 %v11952_v41, %v11952_v41 }
 0x55f   : > { %v4524_v58 = vadd.f32 %v4523_v54, %v4522_v35  ;;  %v4533_v35 = vsel %vm3265_vm6, %v4425_v15, 0.0  ;;  %v4364_v15 = vsel %vm3265_vm6, %v11960_v52, 0.0 }
 0x561   : > { %v4526_v57 = vadd.f32 %v4525_v50, %v4524_v58  ;;  %v4361_v50 = vadd.f32 %v4360_v18, %v4359_v3  ;;  %v4430_v3 = vmul.f32 %v11951_v51, %v11951_v51  ;;  %v4539_v18 = vsel %vm3265_vm6, %v4428_v0, 0.0 }
 0x562   : > { %v4433_v51 = vmul.f32 %v11954_v5, %v11954_v5  ;;  %v4545_v0 = vsel %vm3265_vm6, %v4431_v22, 0.0 }
 0x563   : > { %v4528_v25 = vadd.f32 %v4527_v30, %v4526_v57  ;;  %v4537_v57 = vsel %vm3265_vm6, %v4427_v59, 0.0  ;;  %v4366_v59 = vsel %vm3265_vm6, %v11961_v45, 0.0 }
 0x565   : > { %v4530_v54 = vadd.f32 %v4529_v12, %v4528_v25  ;;  %v4363_v12 = vadd.f32 %v4362_v14, %v4361_v50  ;;  %v4432_v50 = vmul.f32 %v11953_v33, %v11953_v33  ;;  %v4543_v14 = vsel %vm3265_vm6, %v4430_v3, 0.0 }
 0x566   : > { %v4435_v33 = vmul.f32 %v11956_v39, %v11956_v39  ;;  %v4549_v3 = vsel %vm3265_vm6, %v4433_v51, 0.0  ;;  %v4438_v51 = vmul.f32 %v11959_v34, %v11959_v34 }
 0x567   : > { %v4532_v58 = vadd.f32 %v4531_v23, %v4530_v54  ;;  %v4541_v54 = vsel %vm3265_vm6, %v4429_v26, 0.0 }
 0x569   : > { %v4534_v30 = vadd.f32 %v4533_v35, %v4532_v58  ;;  %v4365_v35 = vadd.f32 %v4364_v15, %v4363_v12  ;;  %v4434_v12 = vmul.f32 %v11955_v21, %v11955_v21  ;;  %v4437_v21 = vmul.f32 %v11958_v17, %v11958_v17 }
 0x56b   : > { %v4536_v25 = vadd.f32 %v4535_v60, %v4534_v30  ;;  %v4367_v30 = vadd.f32 %v4366_v59, %v4365_v35  ;;  %v4551_v35 = vsel %vm3265_vm6, %v4434_v12, 0.0  ;;  %v4553_v59 = vsel %vm3265_vm6, %v4435_v33, 0.0 }
 0x56c   : > { %v4440_v12 = vmul.f32 %v11961_v45, %v11961_v45 }
 0x56d   : > { %v4538_v23 = vadd.f32 %v4537_v57, %v4536_v25  ;;  %v11962_v57 = vld [vmem:[#allocation59_spill] sm:$0xff]  ;;  %v4547_v25 = vsel %vm3265_vm6, %v4432_v50, 0.0 }
 0x56e   : > { %v4368_v26 = vsel %vm3265_vm6, %v11962_v57, 0.0  ;;  %v4441_v33 = vmul.f32 %v11962_v57, %v11962_v57 }
 0x56f   : > { %v4540_v58 = vadd.f32 %v4539_v18, %v4538_v23  ;;  %v4369_v18 = vadd.f32 %v4368_v26, %v4367_v30  ;;  %v11963_v23 = vld [vmem:[#allocation84_spill] sm:$0xff] }
 0x570   : > { %v4370_v22 = vsel %vm3265_vm6, %v11963_v23, 0.0  ;;  %v4565_v45 = vsel %vm3265_vm6, %v4441_v33, 0.0 }
 0x571   : > { %v4542_v60 = vadd.f32 %v4541_v54, %v4540_v58  ;;  %v4436_v54 = vmul.f32 %v11957_v11, %v11957_v11  ;;  %v4371_v50 = vadd.f32 %v4370_v22, %v4369_v18  ;;  %v4439_v11 = vmul.f32 %v11960_v52, %v11960_v52 }
 0x572   : > { %v4442_v52 = vmul.f32 %v11963_v23, %v11963_v23 }
 0x573   : > { %v4544_v41 = vadd.f32 %v4543_v14, %v4542_v60  ;;  %v11964_v14 = vld [vmem:[#allocation119_spill] sm:$0xff]  ;;  %v4561_v34 = vsel %vm3265_vm6, %v4439_v11, 0.0 }
 0x574   : > { %v4372_v60 = vsel %vm3265_vm6, %v11964_v14, 0.0 }
 0x575   : > { %v4546_v15 = vadd.f32 %v4545_v0, %v4544_v41  ;;  %v4555_v0 = vsel %vm3265_vm6, %v4436_v54, 0.0  ;;  %v4557_v41 = vsel %vm3265_vm6, %v4437_v21, 0.0  ;;  %v4373_v26 = vadd.f32 %v4372_v60, %v4371_v50 }
 0x576   : > { %v4443_v54 = vmul.f32 %v11964_v14, %v11964_v14  ;;  %v4567_v21 = vsel %vm3265_vm6, %v4442_v52, 0.0 }
 0x577   : > { %v4548_v5 = vadd.f32 %v4547_v25, %v4546_v15  ;;  %v4559_v25 = vsel %vm3265_vm6, %v4438_v51, 0.0 }
 0x579   : > { %v4550_v58 = vadd.f32 %v4549_v3, %v4548_v5  ;;  %v4374_v3 = vrot.slane %v4373_v26, 4  ;;  %v4563_v5 = vsel %vm3265_vm6, %v4440_v12, 0.0 }
 0x57b   : > { %v4552_v39 = vadd.f32 %v4551_v35, %v4550_v58  ;;  %v4375_v35 = vadd.f32 %v4374_v3, %v4373_v26 }
 0x57d   : > { %v4554_v30 = vadd.f32 %v4553_v59, %v4552_v39  ;;  %v4569_v59 = vsel %vm3265_vm6, %v4443_v54, 0.0  ;;  %v4376_v50 = vrot.slane %v4375_v35, 2 }
 0x57f   : > { %v4556_v17 = vadd.f32 %v4555_v0, %v4554_v30  ;;  %v4377_v51 = vadd.f32 %v4376_v50, %v4375_v35 }
 0x581   : > { %v4558_v15 = vadd.f32 %v4557_v41, %v4556_v17  ;;  %v4378_v30 = vrot.slane %v4377_v51, 1 }
 0x583   : > { %v4560_v18 = vadd.f32 %v4559_v25, %v4558_v15  ;;  %v4379_v17 = vadd.f32 %v4378_v30, %v4377_v51  ;;  %v4577_v25 = vld [vmem:[#allocation2] sm:$0x3] }
 0x585   : > { %v4562_v22 = vadd.f32 %v4561_v34, %v4560_v18 }
 0x587   : > { %v4564_v58 = vadd.f32 %v4563_v5, %v4562_v22 }
 0x589   : > { %v4566_v57 = vadd.f32 %v4565_v45, %v4564_v58 }
 0x58b   : > { %v4568_v39 = vadd.f32 %v4567_v21, %v4566_v57 }
 0x58d   : > { %v4570_v60 = vadd.f32 %v4569_v59, %v4568_v39 }
 0x58f   : > { %v4571_v23 = vrot.slane %v4570_v60, 4 }
 0x591   : > { %v4572_v0 = vadd.f32 %v4571_v23, %v4570_v60 }
 0x593   : > { %v4573_v11 = vrot.slane %v4572_v0, 2 }
 0x595   : > { %v4574_v41 = vadd.f32 %v4573_v11, %v4572_v0 }
 0x597   : > { %v4575_v14 = vrot.slane %v4574_v41, 1 }
 0x598   : > { %4584 = sbr.rel (%p4918_p12) target bundleno = 1447 (0x5a7), region = 40 }
 0x599   : > { %v4576_v12 = vadd.f32 %v4575_v14, %v4574_v41 }
 0x59b   : > { %v4578_v26 = vsel %vm1120_vm3, %v4379_v17, %v4576_v12 }
 0x59c   : > { %v4579_v15 = vadd.f32 %v4578_v26, %v4577_v25 }
 0x59e   : > { %4581 = vst.msk [vmem:[#allocation2] sm:$0x3] %vm4580_vm0, %v4579_v15 }
 0x5a5   : > { %v4585_v33 = vld [vmem:[#allocation2] sm:$0x3] }
 0x5a6   : > { %4586 = vst.msk [vmem:[%s6814_s12] sm:$0x3] %vm4580_vm0, %v4585_v33 }
 0x5a7 PF: > { %v6655_v34 = vpack.i.bf16 %v10288_v48, %v10232_v1  ;;  %v11965_v3 = vld [vmem:[#allocation181_spill] sm:$0xff]  ;;  %v6657_v52 = vpack.i.bf16 %v10292_v53, %v10236_v4  ;;  %v11966_v5 = vld [vmem:[#allocation78_spill] sm:$0xff]  ;;  %v11968_v35 = vld [vmem:[#allocation64_spill] sm:$0xff]  ;;  %v6628_v59 = vpack.i.bf16 %v10324_v47, %v10268_v10  ;;  %v6630_v50 = vpack.i.bf16 %v10318_v2, %v10262_v49 }
 0x5a8   : > { %v6618_v18 = vpack.i.bf16 %v10312_v24, %v11965_v3  ;;  %v6620_v22 = vpack.i.bf16 %v10316_v16, %v11966_v5  ;;  %v11967_v54 = vld [vmem:[#allocation81_spill] sm:$0xff]  ;;  %v6622_v58 = vpack.i.bf16 %v10310_v31, %v11968_v35  ;;  %v11969_v1 = vld [vmem:[#allocation83_spill] sm:$0xff]  ;;  %v11970_v24 = vld [vmem:[#allocation76_spill] sm:$0xff]  ;;  %v6632_v39 = vpack.i.bf16 %v10322_v61, %v10266_v44 }
 0x5a9   : > { %6656 = vxpose.xlu1.b32.start [1/16] (narrow) %v6655_v34, 8  ;;  %v6659_v45 = vpack.i.bf16 %v11967_v54, %v10230_v43  ;;  %v6661_v48 = vpack.i.bf16 %v11969_v1, %v10234_v36  ;;  %v6624_v21 = vpack.i.bf16 %v10314_v42, %v11970_v24  ;;  %v11971_v4 = vld [vmem:[#allocation51_spill] sm:$0xff]  ;;  %v11973_v43 = vld [vmem:[#allocation56_spill] sm:$0xff]  ;;  %v6634_v47 = vpack.i.bf16 %v10336_v6, %v10280_v13  ;;  %v11985_v23 = vld [vmem:[#allocation42_spill] sm:$0xff] }
 0x5aa   : > { %6619 = vxpose.xlu0.b32.start [1/16] (narrow) %v6618_v18, 8  ;;  %v6663_v53 = vpack.i.bf16 %v11971_v4, %v10240_v7  ;;  %v11972_v16 = vld [vmem:[#allocation155_spill] sm:$0xff]  ;;  %v6665_v31 = vpack.i.bf16 %v11973_v43, %v10244_v32  ;;  %v11974_v36 = vld [vmem:[#allocation188_spill] sm:$0xff]  ;;  %v11976_v32 = vld [vmem:[#allocation86_spill] sm:$0xff]  ;;  %v6636_v2 = vpack.i.bf16 %v10340_v55, %v10284_v38  ;;  %v6638_v61 = vpack.i.bf16 %v10334_v9, %v10278_v40 }
 0x5ab   : > { %v6626_v57 = vpack.i.bf16 %v10320_v20, %v11972_v16  ;;  %v6667_v42 = vpack.i.bf16 %v11974_v36, %v10238_v29  ;;  %v11975_v7 = vld [vmem:[#allocation52_spill] sm:$0xff]  ;;  %v6671_v10 = vpack.i.bf16 %v11976_v32, %v10256_v28  ;;  %v11977_v29 = vld [vmem:[#allocation29_spill] sm:$0xff]  ;;  %v11979_v28 = vld [vmem:[#allocation87_spill] sm:$0xff]  ;;  %v6640_v6 = vpack.i.bf16 %v10338_v8, %v10282_v46 }
 0x5ac   : > { %v6669_v20 = vpack.i.bf16 %v11975_v7, %v10242_v27  ;;  %v6673_v49 = vpack.i.bf16 %v11977_v29, %v10260_v56  ;;  %v11978_v27 = vld [vmem:[#allocation190_spill] sm:$0xff]  ;;  %v6677_v13 = vpack.i.bf16 %v11979_v28, %v10258_v19  ;;  %v11980_v56 = vld [vmem:[#allocation101_spill] sm:$0xff]  ;;  %v11983_v40 = vld [vmem:[#allocation59_spill] sm:$0xff] }
 0x5ad   : > { %6658 = vxpose.xlu1.b32.cont [2/16] (narrow) %v6657_v52, 8  ;;  %v6675_v44 = vpack.i.bf16 %v11978_v27, %v10254_v37  ;;  %v6679_v38 = vpack.i.bf16 %v11980_v56, %v10272_v63  ;;  %v11981_v55 = vld [vmem:[#allocation146_spill] sm:$0xff]  ;;  %v11984_v51 = vld [vmem:[#allocation160_spill] sm:$0xff]  ;;  %v11986_v19 = vld [vmem:[#allocation47_spill] sm:$0xff] }
 0x5ae   : > { %6621 = vxpose.xlu0.b32.cont [2/16] (narrow) %v6620_v22, 8  ;;  %v6642_v60 = vpack.i.bf16 %v11981_v55, %v10296_v62  ;;  %v11982_v37 = vld [vmem:[#allocation182_spill] sm:$0xff]  ;;  %v6644_v0 = vpack.i.bf16 %v11985_v23, %v11984_v51  ;;  %v11987_v46 = vld [vmem:[#allocation84_spill] sm:$0xff]  ;;  %v11991_v41 = vld [vmem:[#allocation119_spill] sm:$0xff] }
 0x5af   : > { %v6681_v9 = vpack.i.bf16 %v11983_v40, %v11982_v37  ;;  %v6683_v8 = vpack.i.bf16 %v11987_v46, %v11986_v19  ;;  %v11988_v30 = vld [vmem:[#allocation184_spill] sm:$0xff]  ;;  %v11989_v11 = vld [vmem:[#allocation178_spill] sm:$0xff]  ;;  %v11992_v14 = vld [vmem:[#allocation183_spill] sm:$0xff] }
 0x5b0   : > { %v6646_v63 = vpack.i.bf16 %v11989_v11, %v11988_v30  ;;  %v11990_v62 = vld [vmem:[#allocation48_spill] sm:$0xff] }
 0x5b1   : > { %6660 = vxpose.xlu1.b32.cont [3/16] (narrow) %v6659_v45, 8  ;;  %v6685_v17 = vpack.i.bf16 %v11991_v41, %v11990_v62  ;;  %v11993_v12 = vld [vmem:[#allocation180_spill] sm:$0xff] }
 0x5b2   : > { %6623 = vxpose.xlu0.b32.cont [3/16] (narrow) %v6622_v58, 8  ;;  %v6648_v25 = vpack.i.bf16 %v11993_v12, %v11992_v14 }
 0x5b5   : > { %6662 = vxpose.xlu1.b32.cont [4/16] (narrow) %v6661_v48, 8 }
 0x5b6   : > { %6625 = vxpose.xlu0.b32.cont [4/16] (narrow) %v6624_v21, 8 }
 0x5b9   : > { %6664 = vxpose.xlu1.b32.cont [5/16] (narrow) %v6663_v53, 8 }
 0x5ba   : > { %6627 = vxpose.xlu0.b32.cont [5/16] (narrow) %v6626_v57, 8 }
 0x5bd   : > { %6666 = vxpose.xlu1.b32.cont [6/16] (narrow) %v6665_v31, 8 }
 0x5be   : > { %6629 = vxpose.xlu0.b32.cont [6/16] (narrow) %v6628_v59, 8 }
 0x5c1   : > { %6668 = vxpose.xlu1.b32.cont [7/16] (narrow) %v6667_v42, 8 }
 0x5c2   : > { %6631 = vxpose.xlu0.b32.cont [7/16] (narrow) %v6630_v50, 8 }
 0x5c5   : > { %6670 = vxpose.xlu1.b32.cont [8/16] (narrow) %v6669_v20, 8 }
 0x5c6   : > { %6633 = vxpose.xlu0.b32.cont [8/16] (narrow) %v6632_v39, 8 }
 0x5c9   : > { %6672 = vxpose.xlu1.b32.cont [9/16] (narrow) %v6671_v10, 8 }
 0x5ca   : > { %6635 = vxpose.xlu0.b32.cont [9/16] (narrow) %v6634_v47, 8 }
 0x5cd   : > { %6674 = vxpose.xlu1.b32.cont [10/16] (narrow) %v6673_v49, 8 }
 0x5ce   : > { %6637 = vxpose.xlu0.b32.cont [10/16] (narrow) %v6636_v2, 8 }
 0x5d1   : > { %6676 = vxpose.xlu1.b32.cont [11/16] (narrow) %v6675_v44, 8 }
 0x5d2   : > { %6639 = vxpose.xlu0.b32.cont [11/16] (narrow) %v6638_v61, 8 }
 0x5d5   : > { %6678 = vxpose.xlu1.b32.cont [12/16] (narrow) %v6677_v13, 8 }
 0x5d6   : > { %6641 = vxpose.xlu0.b32.cont [12/16] (narrow) %v6640_v6, 8 }
 0x5d9   : > { %6680 = vxpose.xlu1.b32.cont [13/16] (narrow) %v6679_v38, 8 }
 0x5da   : > { %6643 = vxpose.xlu0.b32.cont [13/16] (narrow) %v6642_v60, 8 }
 0x5dd   : > { %6682 = vxpose.xlu1.b32.cont [14/16] (narrow) %v6681_v9, 8 }
 0x5de   : > { %6645 = vxpose.xlu0.b32.cont [14/16] (narrow) %v6644_v0, 8 }
 0x5e1   : > { %6684 = vxpose.xlu1.b32.cont [15/16] (narrow) %v6683_v8, 8 }
 0x5e2   : > { %6647 = vxpose.xlu0.b32.cont [15/16] (narrow) %v6646_v63, 8 }
 0x5e5   : > { %6686 = vxpose.xlu1.b32.end [16/16] (narrow) %v6685_v17, 8 }
 0x5e6   : > { %6649 = vxpose.xlu0.b32.end [16/16] (narrow) %v6648_v25, 8 }
 0x629   : > { %v6687_v26 = vpop.trf.xlu1 }
 0x62a   : > { %v6650_v15 = vpop.trf.xlu0  ;;  %v6691_v33 = vunpack.i.h.bf16 %v6687_v26  ;;  %v6688_v34 = vunpack.i.l.bf16 %v6687_v26 }
 0x62b   : > { %v6654_v3 = vunpack.i.h.bf16 %v6650_v15  ;;  %v6651_v18 = vunpack.i.l.bf16 %v6650_v15 }
 0x62c   : > { %v4926_v52 = vpack.c.bf16 %v6691_v33, %v6688_v34 }
 0x62d   : > { %v4925_v5 = vpack.c.bf16 %v6654_v3, %v6651_v18 }
 0x62e   : > { %4732 = vst [vmem:[%s6809_s9 + $0x8] sm:$0xff] %v4926_v52 }
 0x62f   : > { %4731 = vst [vmem:[%s6809_s9] sm:$0xff] %v4925_v5 }
 0x630 PF: > { %s15_s19 = sadd.s32 1, %s6730_s19   ;;  %s11994_s15 = smov %s6722_s17 }
 0x631   : > { %p12_p13 = scmp.ge.s32.totalorder %s15_s19, 6   ;;  %s11995_s16 = smov %s6726_s18 }
 0x632   : > { %s11996_s17 = smov %s11999_s20  ;;  %s11997_s18 = smov %s12003_s21 }
 0x633   :  { %14 = sbr.rel (!%p12_p13) target bundleno = 3 (0x3), region = 85 }

</bundles_post_ra>
